<compile_context>
chip_gen: v5e
topology: v5e:2x2
jax: 0.10.0
libtpu: 0.0.40
codegen_flags: <defaults>
</compile_context>

<pallas_src>
import jax
import jax.numpy as jnp
from jax.experimental import pallas as pl
from jax.experimental.pallas import tpu as pltpu


KPAD = 80          # conv1 patch features: 3*5*5 = 75, padded to a multiple of 8
C1OUT = 64
C2OUT = 16
POOL1 = 14         # conv1 pooled spatial (14x14)
P1 = POOL1 * POOL1 # 196 pooled pixels per image after conv1
ZROWS = 16         # per-image row stripe fed to K2 (14 valid rows + 2 zero rows)
ZLANES = POOL1 * C1OUT          # 896 = w*64 + c packing of z1
K2COLS = 5 * C2OUT              # 80 = pw*16 + co
FCIN = ZROWS * K2COLS           # 1280 features per image entering fc1 (400 active)


# ---------------------------------------------------------------------------
# Pallas kernels
# ---------------------------------------------------------------------------
def _conv1_pool_kernel(p_ref, w_ref, b_ref, o_ref):
    """conv1-as-matmul + bias + ReLU + 2x2 maxpool for a block of images.

    p_ref: (4, R, KPAD)  im2col patches, pool-window-major; rows = img*196 + ph*14 + pw
    w_ref: (KPAD, 64)    flattened conv1 weight (k-order c,ki,kj; zero-padded rows)
    b_ref: (1, 64)       bias (f32)
    o_ref: (R, 64)       pooled activation (bf16)

    relu(maxpool(conv)) == relu(max_window(patch @ w) + b)  (bias constant per window,
    relu monotone), so the pool is a 4-way elementwise max of matmul results.
    """
    w = w_ref[...]
    m = jnp.dot(p_ref[0], w, preferred_element_type=jnp.float32)
    for i in range(1, 4):                       # static unroll over 2x2 window positions
        m = jnp.maximum(m, jnp.dot(p_ref[i], w, preferred_element_type=jnp.float32))
    o_ref[...] = jnp.maximum(m + b_ref[...], 0.0).astype(o_ref.dtype)


def _conv2_pool_kernel(z_ref, w_ref, b_ref, o_ref):
    """Implicit-GEMM conv2 + bias + ReLU + 2x2 maxpool, no im2col materialisation.

    z_ref: (R, 896)        z1 block, R = B*16 rows (14 valid + 2 zero per image),
                           lanes = w*64 + c  (z1 NHWC row-major)
    w_ref: (2, 5, 896, 80) width-Toeplitz conv2 weights, indexed (dx, ki);
                           columns = pw*16 + co
    b_ref: (1, 80)         conv2 bias tiled over pw (f32)
    o_ref: (R, 80)         pooled activations; valid values at rows img*16 + 2*ph

    conv2(oh, 2pw+dx, co) = sum_ki  z[row=oh+ki, :] @ Wt[dx, ki][:, pw*16+co]
    The ki row shift is applied to the (R, 80) f32 partial results via a sublane roll
    (acc[r] += y[r+ki]); the 2x2 pool is max over dx (elementwise) and dy (roll by 1).
    Rows with oh >= 10 (or odd oh) are finite garbage and are zeroed out later by the
    expanded fc1 weight.
    """
    z = z_ref[...]
    R = z.shape[0]

    def conv_cols(dx):
        acc = jnp.dot(z, w_ref[dx, 0], preferred_element_type=jnp.float32)
        for ki in range(1, 5):                  # static unroll over kernel rows
            y = jnp.dot(z, w_ref[dx, ki], preferred_element_type=jnp.float32)
            acc = acc + pltpu.roll(y, shift=R - ki, axis=0)   # acc[r] += y[r + ki]
        return acc

    m = jnp.maximum(conv_cols(0), conv_cols(1))               # max over pool column dx
    m = jnp.maximum(m + b_ref[...], 0.0)                      # bias + ReLU
    m = jnp.maximum(m, pltpu.roll(m, shift=R - 1, axis=0))    # max over pool row dy
    o_ref[...] = m.astype(o_ref.dtype)


def _fc_head_kernel(x_ref, w1_ref, b1_ref, w2_ref, b2_ref, w3_ref, b3_ref, o_ref):
    """fc1+ReLU -> fc2+ReLU -> fc3, weights resident in VMEM, f32 accumulation."""
    h = jnp.dot(x_ref[...], w1_ref[...], preferred_element_type=jnp.float32) + b1_ref[...]
    h = jnp.maximum(h, 0.0).astype(jnp.bfloat16)
    h = jnp.dot(h, w2_ref[...], preferred_element_type=jnp.float32) + b2_ref[...]
    h = jnp.maximum(h, 0.0).astype(jnp.bfloat16)
    o = jnp.dot(h, w3_ref[...], preferred_element_type=jnp.float32) + b3_ref[...]
    o_ref[...] = o.astype(o_ref.dtype)


# ---------------------------------------------------------------------------
# pallas_call wrappers
# ---------------------------------------------------------------------------
def _conv_block(n_img):
    """Images per conv grid step (amortises the ~0.35us per-step overhead)."""
    return n_img if n_img <= 8 else 8


def conv1_relu_pool(p1, w1, b1, n_img):
    """p1: (4, n_img*196, KPAD) bf16 -> (n_img*196, 64) bf16."""
    B = _conv_block(n_img)
    R = B * P1
    return pl.pallas_call(
        _conv1_pool_kernel,
        out_shape=jax.ShapeDtypeStruct((n_img * P1, C1OUT), jnp.bfloat16),
        grid=(pl.cdiv(n_img, B),),
        in_specs=[
            pl.BlockSpec((4, R, KPAD), lambda i: (0, i, 0)),
            pl.BlockSpec((KPAD, C1OUT), lambda i: (0, 0)),
            pl.BlockSpec((1, C1OUT), lambda i: (0, 0)),
        ],
        out_specs=pl.BlockSpec((R, C1OUT), lambda i: (i, 0)),
        compiler_params=pltpu.CompilerParams(dimension_semantics=("parallel",)),
    )(p1, w1, b1)


def conv2_relu_pool(zin, w2t, b2, n_img):
    """zin: (n_img*16, 896) bf16 (n_img already padded to the block size)
    -> (n_img*16, 80) bf16."""
    B = _conv_block(n_img)
    R = B * ZROWS
    return pl.pallas_call(
        _conv2_pool_kernel,
        out_shape=jax.ShapeDtypeStruct((zin.shape[0], K2COLS), jnp.bfloat16),
        grid=(pl.cdiv(n_img, B),),
        in_specs=[
            pl.BlockSpec((R, ZLANES), lambda i: (i, 0)),
            pl.BlockSpec((2, 5, ZLANES, K2COLS), lambda i: (0, 0, 0, 0)),
            pl.BlockSpec((1, K2COLS), lambda i: (0, 0)),
        ],
        out_specs=pl.BlockSpec((R, K2COLS), lambda i: (i, 0)),
        compiler_params=pltpu.CompilerParams(dimension_semantics=("parallel",)),
    )(zin, w2t, b2)


def fc_head(feat, kp):
    """feat: (N, 1280) bf16 -> (N, 2) f32.  Row-blocked grid, weights resident."""
    N = feat.shape[0]
    BR = N if N <= 512 else 512

    def const(arr):
        return pl.BlockSpec(arr.shape, lambda i: (0, 0))

    return pl.pallas_call(
        _fc_head_kernel,
        out_shape=jax.ShapeDtypeStruct((N, 2), jnp.float32),
        grid=(pl.cdiv(N, BR),),
        in_specs=[
            pl.BlockSpec((BR, feat.shape[1]), lambda i: (i, 0)),
            const(kp["fc1_w"]), const(kp["fc1_b"]),
            const(kp["fc2_w"]), const(kp["fc2_b"]),
            const(kp["fc3_w"]), const(kp["fc3_b"]),
        ],
        out_specs=pl.BlockSpec((BR, 2), lambda i: (i, 0)),
        compiler_params=pltpu.CompilerParams(dimension_semantics=("parallel",)),
    )(feat, kp["fc1_w"], kp["fc1_b"], kp["fc2_w"], kp["fc2_b"], kp["fc3_w"], kp["fc3_b"])


# ---------------------------------------------------------------------------
# Wrapper-side conv1 patch extraction (XLA), grouped by 2x2 pool-window position
# ---------------------------------------------------------------------------
def conv1_pool_patches(x_nchw):
    """(N, 3, 32, 32) NCHW -> (4, N*196, KPAD), pool-window-major.

    axis 0 = dy*2 + dx; row = n*196 + ph*14 + pw; k = c*25 + ki*5 + kj (torch
    conv1.weight.reshape(64, -1) order), zero-padded 75 -> 80."""
    N, C, H, W = x_nchw.shape
    KH = KW = 5
    Ho, Wo = H - KH + 1, W - KW + 1          # 28, 28
    Hp, Wp = Ho // 2, Wo // 2                # 14, 14
    kfeat = C * KH * KW                      # 75
    cols = []
    for ki in range(KH):
        for kj in range(KW):
            cols.append(x_nchw[:, :, ki:ki + Ho, kj:kj + Wo])   # (N, C, 28, 28)
    p = jnp.stack(cols, axis=2)                                 # (N, C, 25, 28, 28)
    p = p.transpose(0, 3, 4, 1, 2).reshape(N, Ho, Wo, kfeat)
    p = jnp.pad(p, ((0, 0), (0, 0), (0, 0), (0, KPAD - kfeat)))
    p = p.reshape(N, Hp, 2, Wp, 2, KPAD).transpose(2, 4, 0, 1, 3, 5)  # (dy,dx,n,ph,pw,k)
    return p.reshape(4, N * Hp * Wp, KPAD)


# ---------------------------------------------------------------------------
# Parameters (PyTorch-convention shapes) and one-time kernel-layout prep
# ---------------------------------------------------------------------------
def init_params(key):
    ks = jax.random.split(key, 10)
    s = 0.05
    return {
        "conv1_w": s * jax.random.normal(ks[0], (64, 3, 5, 5), jnp.float32),
        "conv1_b": s * jax.random.normal(ks[1], (64,), jnp.float32),
        "conv2_w": s * jax.random.normal(ks[2], (16, 64, 5, 5), jnp.float32),
        "conv2_b": s * jax.random.normal(ks[3], (16,), jnp.float32),
        "fc1_w": s * jax.random.normal(ks[4], (120, 400), jnp.float32),  # (out, in)
        "fc1_b": s * jax.random.normal(ks[5], (120,), jnp.float32),
        "fc2_w": s * jax.random.normal(ks[6], (84, 120), jnp.float32),
        "fc2_b": s * jax.random.normal(ks[7], (84,), jnp.float32),
        "fc3_w": s * jax.random.normal(ks[8], (2, 84), jnp.float32),
        "fc3_b": s * jax.random.normal(ks[9], (2,), jnp.float32),
    }


def prepare_params(p):
    """One-time weight relayout (call once; do NOT put inside the jitted forward)."""
    f32, bf16 = jnp.float32, jnp.bfloat16

    # conv1: (64,3,5,5) -> (75,64), rows ordered (c,ki,kj); zero-pad K 75 -> 80.
    w1 = p["conv1_w"].reshape(64, 75).T
    w1 = jnp.pad(w1, ((0, KPAD - 75), (0, 0))).astype(bf16)                 # (80, 64)

    # conv2 -> width-Toeplitz weights Wt[dx, ki][w*64+c, pw*16+co] =
    #   conv2_w[co, c, ki, w - (2*pw + dx)]  if 0 <= w - 2pw - dx <= 4 else 0.
    w2 = p["conv2_w"].astype(f32)                                           # (co,c,ki,kj)
    w_idx = jnp.arange(POOL1).reshape(1, POOL1, 1, 1)
    dx_idx = jnp.arange(2).reshape(2, 1, 1, 1)
    pw_idx = jnp.arange(5).reshape(1, 1, 5, 1)
    kj_idx = jnp.arange(5).reshape(1, 1, 1, 5)
    sel = (w_idx == 2 * pw_idx + dx_idx + kj_idx).astype(f32)               # (2,14,5,5)
    w2t = jnp.einsum("dwpj,ocij->diwcpo", sel, w2)                          # (2,5,14,64,5,16)
    w2t = w2t.reshape(2, 5, ZLANES, K2COLS).astype(bf16)

    # fc1: torch flatten order of the pooled (16,5,5) map is (c, ph, pw); K2 emits a
    # sparse (16 rows x 80 cols) per-image block whose active features sit at
    # f = (2*ph)*80 + pw*16 + c.  Scatter fc1 weight rows there, zeros elsewhere.
    fc1_wT = p["fc1_w"].T.astype(f32)                                       # (400, 120)
    PH, PW, CO = jnp.meshgrid(jnp.arange(5), jnp.arange(5), jnp.arange(16), indexing="ij")
    f_idx = (2 * PH * K2COLS + PW * C2OUT + CO).reshape(-1)
    t_idx = (CO * 25 + PH * 5 + PW).reshape(-1)
    fc1_big = jnp.zeros((FCIN, 120), f32).at[f_idx].set(fc1_wT[t_idx]).astype(bf16)

    return {
        "w1": w1, "b1": p["conv1_b"].reshape(1, C1OUT).astype(f32),
        "w2t": w2t, "b2": jnp.tile(p["conv2_b"], 5).reshape(1, K2COLS).astype(f32),
        "fc1_w": fc1_big, "fc1_b": p["fc1_b"].reshape(1, 120).astype(f32),
        "fc2_w": p["fc2_w"].T.astype(bf16), "fc2_b": p["fc2_b"].reshape(1, 84).astype(f32),
        "fc3_w": p["fc3_w"].T.astype(bf16), "fc3_b": p["fc3_b"].reshape(1, 2).astype(f32),
    }


# ---------------------------------------------------------------------------
# Forward pass (matches Net.forward); expects the prepared weight dict
# ---------------------------------------------------------------------------
def net_forward(x, kp):
    N = x.shape[0]

    # conv1 (3->64, 5x5) + ReLU + maxpool(2,2): one fused kernel over image blocks
    p1 = conv1_pool_patches(x).astype(jnp.bfloat16)              # (4, N*196, 80)
    z1 = conv1_relu_pool(p1, kp["w1"], kp["b1"], N)              # (N*196, 64) bf16
    z1 = z1.reshape(N, POOL1, ZLANES)                            # (N, 14, 896) NHWC packed

    # conv2 (64->16, 5x5) + ReLU + maxpool(2,2): implicit GEMM, no im2col round trip.
    # Pad each image to a 16-row stripe and the batch to a full block (zeros).
    B2 = _conv_block(N)
    M2 = pl.cdiv(N, B2) * B2
    zin = jnp.pad(z1, ((0, M2 - N), (0, ZROWS - POOL1), (0, 0))).reshape(M2 * ZROWS, ZLANES)
    z2 = conv2_relu_pool(zin, kp["w2t"], kp["b2"], M2)           # (M2*16, 80) bf16

    # flatten: the expanded fc1 weight already encodes torch's (c,h,w) flatten order
    # and zeroes the unused (garbage) rows/positions of the K2 output block.
    feat = z2[: N * ZROWS].reshape(N, FCIN)                      # (N, 1280) bf16

    # fc1 + ReLU + fc2 + ReLU + fc3: one fused, row-blocked kernel
    return fc_head(feat, kp)                                     # (N, 2) f32


if __name__ == "__main__":
    key = jax.random.PRNGKey(0)
    k_x, k_p = jax.random.split(key)
    # batch=2, NCHW 3x32x32 (LazyLinear fc1 resolves to 16*5*5 = 400 features)
    x = jax.random.normal(k_x, (2, 3, 32, 32), jnp.float32)
    params = init_params(k_p)
    kp = prepare_params(params)          # hoisted one-time weight relayout

    fwd = jax.jit(net_forward)
    out = jax.block_until_ready(fwd(x, kp))
    assert out.shape == (2, 2) and out.dtype == jnp.float32
    print("KERNEL_OK")
</pallas_src>

<mosaic_0001>
module attributes {stable_mosaic.version = 11 : i64} {
  func.func @_conv1_pool_kernel(%arg0: i32, %arg1: memref<4x392x80xbf16, #tpu.memory_space<vmem>>, %arg2: memref<80x64xbf16, #tpu.memory_space<vmem>>, %arg3: memref<1x64xf32, #tpu.memory_space<vmem>>, %arg4: memref<392x64xbf16, #tpu.memory_space<vmem>>) attributes {dimension_semantics = [#tpu.dimension_semantics<parallel>], iteration_bounds = array<i64: 1>, scalar_prefetch = 0 : i64, scratch_operands = 0 : i64, tpu.core_type = #tpu.core_type<tc>, window_params = [{transform_indices = @transform_0, window_bounds = array<i64: 4, 392, 80>}, {pipeline_mode = #tpu.pipeline_mode<synchronous>, transform_indices = @transform_1, window_bounds = array<i64: 80, 64>}, {pipeline_mode = #tpu.pipeline_mode<synchronous>, transform_indices = @transform_2, window_bounds = array<i64: 1, 64>}, {transform_indices = @transform_3, window_bounds = array<i64: 392, 64>}]} {
    %c0 = arith.constant 0 : index
    %c0_0 = arith.constant 0 : index
    %0 = vector.load %arg2[%c0, %c0_0] : memref<80x64xbf16, #tpu.memory_space<vmem>>, vector<80x64xbf16>
    %c0_1 = arith.constant 0 : index
    %c0_2 = arith.constant 0 : index
    %c0_3 = arith.constant 0 : index
    %1 = vector.load %arg1[%c0_1, %c0_2, %c0_3] : memref<4x392x80xbf16, #tpu.memory_space<vmem>>, vector<1x392x80xbf16>
    %2 = vector.shape_cast %1 : vector<1x392x80xbf16> to vector<392x80xbf16>
    %cst = arith.constant dense<0.000000e+00> : vector<392x64xf32>
    %3 = tpu.matmul %2, %0, %cst {dimension_numbers = #tpu.dot_dimension_numbers<[1], [0], [0], [1], [0, 0, 1, 1], [], []>} : vector<392x80xbf16>, vector<80x64xbf16>, vector<392x64xf32> -> vector<392x64xf32>
    %c1 = arith.constant 1 : index
    %c0_4 = arith.constant 0 : index
    %c0_5 = arith.constant 0 : index
    %4 = vector.load %arg1[%c1, %c0_4, %c0_5] : memref<4x392x80xbf16, #tpu.memory_space<vmem>>, vector<1x392x80xbf16>
    %5 = vector.shape_cast %4 : vector<1x392x80xbf16> to vector<392x80xbf16>
    %cst_6 = arith.constant dense<0.000000e+00> : vector<392x64xf32>
    %6 = tpu.matmul %5, %0, %cst_6 {dimension_numbers = #tpu.dot_dimension_numbers<[1], [0], [0], [1], [0, 0, 1, 1], [], []>} : vector<392x80xbf16>, vector<80x64xbf16>, vector<392x64xf32> -> vector<392x64xf32>
    %7 = arith.maximumf %3, %6 : vector<392x64xf32>
    %c2 = arith.constant 2 : index
    %c0_7 = arith.constant 0 : index
    %c0_8 = arith.constant 0 : index
    %8 = vector.load %arg1[%c2, %c0_7, %c0_8] : memref<4x392x80xbf16, #tpu.memory_space<vmem>>, vector<1x392x80xbf16>
    %9 = vector.shape_cast %8 : vector<1x392x80xbf16> to vector<392x80xbf16>
    %cst_9 = arith.constant dense<0.000000e+00> : vector<392x64xf32>
    %10 = tpu.matmul %9, %0, %cst_9 {dimension_numbers = #tpu.dot_dimension_numbers<[1], [0], [0], [1], [0, 0, 1, 1], [], []>} : vector<392x80xbf16>, vector<80x64xbf16>, vector<392x64xf32> -> vector<392x64xf32>
    %11 = arith.maximumf %7, %10 : vector<392x64xf32>
    %c3 = arith.constant 3 : index
    %c0_10 = arith.constant 0 : index
    %c0_11 = arith.constant 0 : index
    %12 = vector.load %arg1[%c3, %c0_10, %c0_11] : memref<4x392x80xbf16, #tpu.memory_space<vmem>>, vector<1x392x80xbf16>
    %13 = vector.shape_cast %12 : vector<1x392x80xbf16> to vector<392x80xbf16>
    %cst_12 = arith.constant dense<0.000000e+00> : vector<392x64xf32>
    %14 = tpu.matmul %13, %0, %cst_12 {dimension_numbers = #tpu.dot_dimension_numbers<[1], [0], [0], [1], [0, 0, 1, 1], [], []>} : vector<392x80xbf16>, vector<80x64xbf16>, vector<392x64xf32> -> vector<392x64xf32>
    %15 = arith.maximumf %11, %14 : vector<392x64xf32>
    %c0_13 = arith.constant 0 : index
    %c0_14 = arith.constant 0 : index
    %16 = vector.load %arg3[%c0_13, %c0_14] : memref<1x64xf32, #tpu.memory_space<vmem>>, vector<1x64xf32>
    %17 = vector.broadcast %16 : vector<1x64xf32> to vector<392x64xf32>
    %18 = arith.addf %15, %17 : vector<392x64xf32>
    %cst_15 = arith.constant 0.000000e+00 : f32
    %19 = vector.broadcast %cst_15 : f32 to vector<392x64xf32>
    %20 = arith.maximumf %18, %19 : vector<392x64xf32>
    %21 = arith.truncf %20 : vector<392x64xf32> to vector<392x64xbf16>
    %c0_16 = arith.constant 0 : index
    %c0_17 = arith.constant 0 : index
    %22 = vector.load %arg4[%c0_16, %c0_17] : memref<392x64xbf16, #tpu.memory_space<vmem>>, vector<392x64xbf16>
    tpu.vector_store %arg4[%c0_16, %c0_17], %21 {strides = array<i32>} : memref<392x64xbf16, #tpu.memory_space<vmem>>, vector<392x64xbf16>,
    return
  }
  func.func @transform_0(%arg0: i32) -> (i32, i32, i32) {
    %c0_i32 = arith.constant 0 : i32
    %c0_i32_0 = arith.constant 0 : i32
    %c0_i32_1 = arith.constant 0 : i32
    return %c0_i32, %arg0, %c0_i32_0 : i32, i32, i32
  }
  func.func @transform_1(%arg0: i32) -> (i32, i32) {
    %c0_i32 = arith.constant 0 : i32
    %c0_i32_0 = arith.constant 0 : i32
    %c0_i32_1 = arith.constant 0 : i32
    return %c0_i32, %c0_i32_0 : i32, i32
  }
  func.func @transform_2(%arg0: i32) -> (i32, i32) {
    %c0_i32 = arith.constant 0 : i32
    %c0_i32_0 = arith.constant 0 : i32
    %c0_i32_1 = arith.constant 0 : i32
    return %c0_i32, %c0_i32_0 : i32, i32
  }
  func.func @transform_3(%arg0: i32) -> (i32, i32) {
    %c0_i32 = arith.constant 0 : i32
    %c0_i32_0 = arith.constant 0 : i32
    return %arg0, %c0_i32 : i32, i32
  }
}

module attributes {stable_mosaic.version = 11 : i64} {
  func.func @_conv2_pool_kernel(%arg0: i32, %arg1: memref<32x896xbf16, #tpu.memory_space<vmem>>, %arg2: memref<2x5x896x80xbf16, #tpu.memory_space<vmem>>, %arg3: memref<1x80xf32, #tpu.memory_space<vmem>>, %arg4: memref<32x80xbf16, #tpu.memory_space<vmem>>) attributes {dimension_semantics = [#tpu.dimension_semantics<parallel>], iteration_bounds = array<i64: 1>, scalar_prefetch = 0 : i64, scratch_operands = 0 : i64, tpu.core_type = #tpu.core_type<tc>, window_params = [{transform_indices = @transform_0, window_bounds = array<i64: 32, 896>}, {pipeline_mode = #tpu.pipeline_mode<synchronous>, transform_indices = @transform_1, window_bounds = array<i64: 2, 5, 896, 80>}, {pipeline_mode = #tpu.pipeline_mode<synchronous>, transform_indices = @transform_2, window_bounds = array<i64: 1, 80>}, {transform_indices = @transform_3, window_bounds = array<i64: 32, 80>}]} {
    %c0 = arith.constant 0 : index
    %c0_0 = arith.constant 0 : index
    %0 = vector.load %arg1[%c0, %c0_0] : memref<32x896xbf16, #tpu.memory_space<vmem>>, vector<32x896xbf16>
    %c0_1 = arith.constant 0 : index
    %c0_2 = arith.constant 0 : index
    %c0_3 = arith.constant 0 : index
    %c0_4 = arith.constant 0 : index
    %1 = vector.load %arg2[%c0_1, %c0_2, %c0_3, %c0_4] : memref<2x5x896x80xbf16, #tpu.memory_space<vmem>>, vector<1x1x896x80xbf16>
    %2 = vector.shape_cast %1 : vector<1x1x896x80xbf16> to vector<896x80xbf16>
    %cst = arith.constant dense<0.000000e+00> : vector<32x80xf32>
    %3 = tpu.matmul %0, %2, %cst {dimension_numbers = #tpu.dot_dimension_numbers<[1], [0], [0], [1], [0, 0, 1, 1], [], []>} : vector<32x896xbf16>, vector<896x80xbf16>, vector<32x80xf32> -> vector<32x80xf32>
    %c0_5 = arith.constant 0 : index
    %c1 = arith.constant 1 : index
    %c0_6 = arith.constant 0 : index
    %c0_7 = arith.constant 0 : index
    %4 = vector.load %arg2[%c0_5, %c1, %c0_6, %c0_7] : memref<2x5x896x80xbf16, #tpu.memory_space<vmem>>, vector<1x1x896x80xbf16>
    %5 = vector.shape_cast %4 : vector<1x1x896x80xbf16> to vector<896x80xbf16>
    %cst_8 = arith.constant dense<0.000000e+00> : vector<32x80xf32>
    %6 = tpu.matmul %0, %5, %cst_8 {dimension_numbers = #tpu.dot_dimension_numbers<[1], [0], [0], [1], [0, 0, 1, 1], [], []>} : vector<32x896xbf16>, vector<896x80xbf16>, vector<32x80xf32> -> vector<32x80xf32>
    %c31_i32 = arith.constant 31 : i32
    %7 = tpu.dynamic_rotate %6 by %c31_i32 dim 0 : vector<32x80xf32>, i32 -> vector<32x80xf32>
    %8 = arith.addf %3, %7 : vector<32x80xf32>
    %c0_9 = arith.constant 0 : index
    %c2 = arith.constant 2 : index
    %c0_10 = arith.constant 0 : index
    %c0_11 = arith.constant 0 : index
    %9 = vector.load %arg2[%c0_9, %c2, %c0_10, %c0_11] : memref<2x5x896x80xbf16, #tpu.memory_space<vmem>>, vector<1x1x896x80xbf16>
    %10 = vector.shape_cast %9 : vector<1x1x896x80xbf16> to vector<896x80xbf16>
    %cst_12 = arith.constant dense<0.000000e+00> : vector<32x80xf32>
    %11 = tpu.matmul %0, %10, %cst_12 {dimension_numbers = #tpu.dot_dimension_numbers<[1], [0], [0], [1], [0, 0, 1, 1], [], []>} : vector<32x896xbf16>, vector<896x80xbf16>, vector<32x80xf32> -> vector<32x80xf32>
    %c30_i32 = arith.constant 30 : i32
    %12 = tpu.dynamic_rotate %11 by %c30_i32 dim 0 : vector<32x80xf32>, i32 -> vector<32x80xf32>
    %13 = arith.addf %8, %12 : vector<32x80xf32>
    %c0_13 = arith.constant 0 : index
    %c3 = arith.constant 3 : index
    %c0_14 = arith.constant 0 : index
    %c0_15 = arith.constant 0 : index
    %14 = vector.load %arg2[%c0_13, %c3, %c0_14, %c0_15] : memref<2x5x896x80xbf16, #tpu.memory_space<vmem>>, vector<1x1x896x80xbf16>
    %15 = vector.shape_cast %14 : vector<1x1x896x80xbf16> to vector<896x80xbf16>
    %cst_16 = arith.constant dense<0.000000e+00> : vector<32x80xf32>
    %16 = tpu.matmul %0, %15, %cst_16 {dimension_numbers = #tpu.dot_dimension_numbers<[1], [0], [0], [1], [0, 0, 1, 1], [], []>} : vector<32x896xbf16>, vector<896x80xbf16>, vector<32x80xf32> -> vector<32x80xf32>
    %c29_i32 = arith.constant 29 : i32
    %17 = tpu.dynamic_rotate %16 by %c29_i32 dim 0 : vector<32x80xf32>, i32 -> vector<32x80xf32>
    %18 = arith.addf %13, %17 : vector<32x80xf32>
    %c0_17 = arith.constant 0 : index
    %c4 = arith.constant 4 : index
    %c0_18 = arith.constant 0 : index
    %c0_19 = arith.constant 0 : index
    %19 = vector.load %arg2[%c0_17, %c4, %c0_18, %c0_19] : memref<2x5x896x80xbf16, #tpu.memory_space<vmem>>, vector<1x1x896x80xbf16>
    %20 = vector.shape_cast %19 : vector<1x1x896x80xbf16> to vector<896x80xbf16>
    %cst_20 = arith.constant dense<0.000000e+00> : vector<32x80xf32>
    %21 = tpu.matmul %0, %20, %cst_20 {dimension_numbers = #tpu.dot_dimension_numbers<[1], [0], [0], [1], [0, 0, 1, 1], [], []>} : vector<32x896xbf16>, vector<896x80xbf16>, vector<32x80xf32> -> vector<32x80xf32>
    %c28_i32 = arith.constant 28 : i32
    %22 = tpu.dynamic_rotate %21 by %c28_i32 dim 0 : vector<32x80xf32>, i32 -> vector<32x80xf32>
    %23 = arith.addf %18, %22 : vector<32x80xf32>
    %c1_21 = arith.constant 1 : index
    %c0_22 = arith.constant 0 : index
    %c0_23 = arith.constant 0 : index
    %c0_24 = arith.constant 0 : index
    %24 = vector.load %arg2[%c1_21, %c0_22, %c0_23, %c0_24] : memref<2x5x896x80xbf16, #tpu.memory_space<vmem>>, vector<1x1x896x80xbf16>
    %25 = vector.shape_cast %24 : vector<1x1x896x80xbf16> to vector<896x80xbf16>
    %cst_25 = arith.constant dense<0.000000e+00> : vector<32x80xf32>
    %26 = tpu.matmul %0, %25, %cst_25 {dimension_numbers = #tpu.dot_dimension_numbers<[1], [0], [0], [1], [0, 0, 1, 1], [], []>} : vector<32x896xbf16>, vector<896x80xbf16>, vector<32x80xf32> -> vector<32x80xf32>
    %c1_26 = arith.constant 1 : index
    %c1_27 = arith.constant 1 : index
    %c0_28 = arith.constant 0 : index
    %c0_29 = arith.constant 0 : index
    %27 = vector.load %arg2[%c1_26, %c1_27, %c0_28, %c0_29] : memref<2x5x896x80xbf16, #tpu.memory_space<vmem>>, vector<1x1x896x80xbf16>
    %28 = vector.shape_cast %27 : vector<1x1x896x80xbf16> to vector<896x80xbf16>
    %cst_30 = arith.constant dense<0.000000e+00> : vector<32x80xf32>
    %29 = tpu.matmul %0, %28, %cst_30 {dimension_numbers = #tpu.dot_dimension_numbers<[1], [0], [0], [1], [0, 0, 1, 1], [], []>} : vector<32x896xbf16>, vector<896x80xbf16>, vector<32x80xf32> -> vector<32x80xf32>
    %c31_i32_31 = arith.constant 31 : i32
    %30 = tpu.dynamic_rotate %29 by %c31_i32_31 dim 0 : vector<32x80xf32>, i32 -> vector<32x80xf32>
    %31 = arith.addf %26, %30 : vector<32x80xf32>
    %c1_32 = arith.constant 1 : index
    %c2_33 = arith.constant 2 : index
    %c0_34 = arith.constant 0 : index
    %c0_35 = arith.constant 0 : index
    %32 = vector.load %arg2[%c1_32, %c2_33, %c0_34, %c0_35] : memref<2x5x896x80xbf16, #tpu.memory_space<vmem>>, vector<1x1x896x80xbf16>
    %33 = vector.shape_cast %32 : vector<1x1x896x80xbf16> to vector<896x80xbf16>
    %cst_36 = arith.constant dense<0.000000e+00> : vector<32x80xf32>
    %34 = tpu.matmul %0, %33, %cst_36 {dimension_numbers = #tpu.dot_dimension_numbers<[1], [0], [0], [1], [0, 0, 1, 1], [], []>} : vector<32x896xbf16>, vector<896x80xbf16>, vector<32x80xf32> -> vector<32x80xf32>
    %c30_i32_37 = arith.constant 30 : i32
    %35 = tpu.dynamic_rotate %34 by %c30_i32_37 dim 0 : vector<32x80xf32>, i32 -> vector<32x80xf32>
    %36 = arith.addf %31, %35 : vector<32x80xf32>
    %c1_38 = arith.constant 1 : index
    %c3_39 = arith.constant 3 : index
    %c0_40 = arith.constant 0 : index
    %c0_41 = arith.constant 0 : index
    %37 = vector.load %arg2[%c1_38, %c3_39, %c0_40, %c0_41] : memref<2x5x896x80xbf16, #tpu.memory_space<vmem>>, vector<1x1x896x80xbf16>
    %38 = vector.shape_cast %37 : vector<1x1x896x80xbf16> to vector<896x80xbf16>
    %cst_42 = arith.constant dense<0.000000e+00> : vector<32x80xf32>
    %39 = tpu.matmul %0, %38, %cst_42 {dimension_numbers = #tpu.dot_dimension_numbers<[1], [0], [0], [1], [0, 0, 1, 1], [], []>} : vector<32x896xbf16>, vector<896x80xbf16>, vector<32x80xf32> -> vector<32x80xf32>
    %c29_i32_43 = arith.constant 29 : i32
    %40 = tpu.dynamic_rotate %39 by %c29_i32_43 dim 0 : vector<32x80xf32>, i32 -> vector<32x80xf32>
    %41 = arith.addf %36, %40 : vector<32x80xf32>
    %c1_44 = arith.constant 1 : index
    %c4_45 = arith.constant 4 : index
    %c0_46 = arith.constant 0 : index
    %c0_47 = arith.constant 0 : index
    %42 = vector.load %arg2[%c1_44, %c4_45, %c0_46, %c0_47] : memref<2x5x896x80xbf16, #tpu.memory_space<vmem>>, vector<1x1x896x80xbf16>
    %43 = vector.shape_cast %42 : vector<1x1x896x80xbf16> to vector<896x80xbf16>
    %cst_48 = arith.constant dense<0.000000e+00> : vector<32x80xf32>
    %44 = tpu.matmul %0, %43, %cst_48 {dimension_numbers = #tpu.dot_dimension_numbers<[1], [0], [0], [1], [0, 0, 1, 1], [], []>} : vector<32x896xbf16>, vector<896x80xbf16>, vector<32x80xf32> -> vector<32x80xf32>
    %c28_i32_49 = arith.constant 28 : i32
    %45 = tpu.dynamic_rotate %44 by %c28_i32_49 dim 0 : vector<32x80xf32>, i32 -> vector<32x80xf32>
    %46 = arith.addf %41, %45 : vector<32x80xf32>
    %47 = arith.maximumf %23, %46 : vector<32x80xf32>
    %c0_50 = arith.constant 0 : index
    %c0_51 = arith.constant 0 : index
    %48 = vector.load %arg3[%c0_50, %c0_51] : memref<1x80xf32, #tpu.memory_space<vmem>>, vector<1x80xf32>
    %49 = vector.broadcast %48 : vector<1x80xf32> to vector<32x80xf32>
    %50 = arith.addf %47, %49 : vector<32x80xf32>
    %cst_52 = arith.constant 0.000000e+00 : f32
    %51 = vector.broadcast %cst_52 : f32 to vector<32x80xf32>
    %52 = arith.maximumf %50, %51 : vector<32x80xf32>
    %c31_i32_53 = arith.constant 31 : i32
    %53 = tpu.dynamic_rotate %52 by %c31_i32_53 dim 0 : vector<32x80xf32>, i32 -> vector<32x80xf32>
    %54 = arith.maximumf %52, %53 : vector<32x80xf32>
    %55 = arith.truncf %54 : vector<32x80xf32> to vector<32x80xbf16>
    %c0_54 = arith.constant 0 : index
    %c0_55 = arith.constant 0 : index
    %56 = vector.load %arg4[%c0_54, %c0_55] : memref<32x80xbf16, #tpu.memory_space<vmem>>, vector<32x80xbf16>
    tpu.vector_store %arg4[%c0_54, %c0_55], %55 {strides = array<i32>} : memref<32x80xbf16, #tpu.memory_space<vmem>>, vector<32x80xbf16>,
    return
  }
  func.func @transform_0(%arg0: i32) -> (i32, i32) {
    %c0_i32 = arith.constant 0 : i32
    %c0_i32_0 = arith.constant 0 : i32
    return %arg0, %c0_i32 : i32, i32
  }
  func.func @transform_1(%arg0: i32) -> (i32, i32, i32, i32) {
    %c0_i32 = arith.constant 0 : i32
    %c0_i32_0 = arith.constant 0 : i32
    %c0_i32_1 = arith.constant 0 : i32
    %c0_i32_2 = arith.constant 0 : i32
    %c0_i32_3 = arith.constant 0 : i32
    return %c0_i32, %c0_i32_0, %c0_i32_1, %c0_i32_2 : i32, i32, i32, i32
  }
  func.func @transform_2(%arg0: i32) -> (i32, i32) {
    %c0_i32 = arith.constant 0 : i32
    %c0_i32_0 = arith.constant 0 : i32
    %c0_i32_1 = arith.constant 0 : i32
    return %c0_i32, %c0_i32_0 : i32, i32
  }
  func.func @transform_3(%arg0: i32) -> (i32, i32) {
    %c0_i32 = arith.constant 0 : i32
    %c0_i32_0 = arith.constant 0 : i32
    return %arg0, %c0_i32 : i32, i32
  }
}

module attributes {stable_mosaic.version = 11 : i64} {
  func.func @_fc_head_kernel(%arg0: i32, %arg1: memref<2x1280xbf16, #tpu.memory_space<vmem>>, %arg2: memref<1280x120xbf16, #tpu.memory_space<vmem>>, %arg3: memref<1x120xf32, #tpu.memory_space<vmem>>, %arg4: memref<120x84xbf16, #tpu.memory_space<vmem>>, %arg5: memref<1x84xf32, #tpu.memory_space<vmem>>, %arg6: memref<84x2xbf16, #tpu.memory_space<vmem>>, %arg7: memref<1x2xf32, #tpu.memory_space<vmem>>, %arg8: memref<2x2xf32, #tpu.memory_space<vmem>>) attributes {dimension_semantics = [#tpu.dimension_semantics<parallel>], iteration_bounds = array<i64: 1>, scalar_prefetch = 0 : i64, scratch_operands = 0 : i64, tpu.core_type = #tpu.core_type<tc>, window_params = [{transform_indices = @transform_0, window_bounds = array<i64: 2, 1280>}, {pipeline_mode = #tpu.pipeline_mode<synchronous>, transform_indices = @transform_1, window_bounds = array<i64: 1280, 120>}, {pipeline_mode = #tpu.pipeline_mode<synchronous>, transform_indices = @transform_2, window_bounds = array<i64: 1, 120>}, {pipeline_mode = #tpu.pipeline_mode<synchronous>, transform_indices = @transform_3, window_bounds = array<i64: 120, 84>}, {pipeline_mode = #tpu.pipeline_mode<synchronous>, transform_indices = @transform_4, window_bounds = array<i64: 1, 84>}, {pipeline_mode = #tpu.pipeline_mode<synchronous>, transform_indices = @transform_5, window_bounds = array<i64: 84, 2>}, {pipeline_mode = #tpu.pipeline_mode<synchronous>, transform_indices = @transform_6, window_bounds = array<i64: 1, 2>}, {transform_indices = @transform_7, window_bounds = array<i64: 2, 2>}]} {
    %c0 = arith.constant 0 : index
    %c0_0 = arith.constant 0 : index
    %0 = vector.load %arg1[%c0, %c0_0] : memref<2x1280xbf16, #tpu.memory_space<vmem>>, vector<2x1280xbf16>
    %c0_1 = arith.constant 0 : index
    %c0_2 = arith.constant 0 : index
    %1 = vector.load %arg2[%c0_1, %c0_2] : memref<1280x120xbf16, #tpu.memory_space<vmem>>, vector<1280x120xbf16>
    %cst = arith.constant dense<0.000000e+00> : vector<2x120xf32>
    %2 = tpu.matmul %0, %1, %cst {dimension_numbers = #tpu.dot_dimension_numbers<[1], [0], [0], [1], [0, 0, 1, 1], [], []>} : vector<2x1280xbf16>, vector<1280x120xbf16>, vector<2x120xf32> -> vector<2x120xf32>
    %c0_3 = arith.constant 0 : index
    %c0_4 = arith.constant 0 : index
    %3 = vector.load %arg3[%c0_3, %c0_4] : memref<1x120xf32, #tpu.memory_space<vmem>>, vector<1x120xf32>
    %4 = vector.broadcast %3 : vector<1x120xf32> to vector<2x120xf32>
    %5 = arith.addf %2, %4 : vector<2x120xf32>
    %cst_5 = arith.constant 0.000000e+00 : f32
    %6 = vector.broadcast %cst_5 : f32 to vector<2x120xf32>
    %7 = arith.maximumf %5, %6 : vector<2x120xf32>
    %8 = arith.truncf %7 : vector<2x120xf32> to vector<2x120xbf16>
    %c0_6 = arith.constant 0 : index
    %c0_7 = arith.constant 0 : index
    %9 = vector.load %arg4[%c0_6, %c0_7] : memref<120x84xbf16, #tpu.memory_space<vmem>>, vector<120x84xbf16>
    %cst_8 = arith.constant dense<0.000000e+00> : vector<2x84xf32>
    %10 = tpu.matmul %8, %9, %cst_8 {dimension_numbers = #tpu.dot_dimension_numbers<[1], [0], [0], [1], [0, 0, 1, 1], [], []>} : vector<2x120xbf16>, vector<120x84xbf16>, vector<2x84xf32> -> vector<2x84xf32>
    %c0_9 = arith.constant 0 : index
    %c0_10 = arith.constant 0 : index
    %11 = vector.load %arg5[%c0_9, %c0_10] : memref<1x84xf32, #tpu.memory_space<vmem>>, vector<1x84xf32>
    %12 = vector.broadcast %11 : vector<1x84xf32> to vector<2x84xf32>
    %13 = arith.addf %10, %12 : vector<2x84xf32>
    %cst_11 = arith.constant 0.000000e+00 : f32
    %14 = vector.broadcast %cst_11 : f32 to vector<2x84xf32>
    %15 = arith.maximumf %13, %14 : vector<2x84xf32>
    %16 = arith.truncf %15 : vector<2x84xf32> to vector<2x84xbf16>
    %c0_12 = arith.constant 0 : index
    %c0_13 = arith.constant 0 : index
    %17 = vector.load %arg6[%c0_12, %c0_13] : memref<84x2xbf16, #tpu.memory_space<vmem>>, vector<84x2xbf16>
    %cst_14 = arith.constant dense<0.000000e+00> : vector<2x2xf32>
    %18 = tpu.matmul %16, %17, %cst_14 {dimension_numbers = #tpu.dot_dimension_numbers<[1], [0], [0], [1], [0, 0, 1, 1], [], []>} : vector<2x84xbf16>, vector<84x2xbf16>, vector<2x2xf32> -> vector<2x2xf32>
    %c0_15 = arith.constant 0 : index
    %c0_16 = arith.constant 0 : index
    %19 = vector.load %arg7[%c0_15, %c0_16] : memref<1x2xf32, #tpu.memory_space<vmem>>, vector<1x2xf32>
    %20 = vector.broadcast %19 : vector<1x2xf32> to vector<2x2xf32>
    %21 = arith.addf %18, %20 : vector<2x2xf32>
    %c0_17 = arith.constant 0 : index
    %c0_18 = arith.constant 0 : index
    %22 = vector.load %arg8[%c0_17, %c0_18] : memref<2x2xf32, #tpu.memory_space<vmem>>, vector<2x2xf32>
    tpu.vector_store %arg8[%c0_17, %c0_18], %21 {strides = array<i32>} : memref<2x2xf32, #tpu.memory_space<vmem>>, vector<2x2xf32>,
    return
  }
  func.func @transform_0(%arg0: i32) -> (i32, i32) {
    %c0_i32 = arith.constant 0 : i32
    %c0_i32_0 = arith.constant 0 : i32
    return %arg0, %c0_i32 : i32, i32
  }
  func.func @transform_1(%arg0: i32) -> (i32, i32) {
    %c0_i32 = arith.constant 0 : i32
    %c0_i32_0 = arith.constant 0 : i32
    %c0_i32_1 = arith.constant 0 : i32
    return %c0_i32, %c0_i32_0 : i32, i32
  }
  func.func @transform_2(%arg0: i32) -> (i32, i32) {
    %c0_i32 = arith.constant 0 : i32
    %c0_i32_0 = arith.constant 0 : i32
    %c0_i32_1 = arith.constant 0 : i32
    return %c0_i32, %c0_i32_0 : i32, i32
  }
  func.func @transform_3(%arg0: i32) -> (i32, i32) {
    %c0_i32 = arith.constant 0 : i32
    %c0_i32_0 = arith.constant 0 : i32
    %c0_i32_1 = arith.constant 0 : i32
    return %c0_i32, %c0_i32_0 : i32, i32
  }
  func.func @transform_4(%arg0: i32) -> (i32, i32) {
    %c0_i32 = arith.constant 0 : i32
    %c0_i32_0 = arith.constant 0 : i32
    %c0_i32_1 = arith.constant 0 : i32
    return %c0_i32, %c0_i32_0 : i32, i32
  }
  func.func @transform_5(%arg0: i32) -> (i32, i32) {
    %c0_i32 = arith.constant 0 : i32
    %c0_i32_0 = arith.constant 0 : i32
    %c0_i32_1 = arith.constant 0 : i32
    return %c0_i32, %c0_i32_0 : i32, i32
  }
  func.func @transform_6(%arg0: i32) -> (i32, i32) {
    %c0_i32 = arith.constant 0 : i32
    %c0_i32_0 = arith.constant 0 : i32
    %c0_i32_1 = arith.constant 0 : i32
    return %c0_i32, %c0_i32_0 : i32, i32
  }
  func.func @transform_7(%arg0: i32) -> (i32, i32) {
    %c0_i32 = arith.constant 0 : i32
    %c0_i32_0 = arith.constant 0 : i32
    return %arg0, %c0_i32 : i32, i32
  }
}

</mosaic_0001>

<bundles_post_ra>
// kernel: net_forward.3
= control target key start
LH: loop header
LB: loop body
LE: loop exit
PB: predicated region body
PF: predicated region fallthrough
CT: control target
= control target key end

     0   :  { %vm227_vm0 = vcmask 654336   ;;  %vm1877_vm1 = vcmask 519168   ;;  %s3375_s1 = inlined_call_operand.vmem [shape: bf16[80,64], index: 1, kind: input, shape index: {}]   ;;  %s3376_s0 = inlined_call_operand.vmem [shape: bf16[4,392,80], index: 0, kind: input, shape index: {}]   ;;  %s3377_s2 = inlined_call_operand.vmem [shape: f32[1,64], index: 2, kind: input, shape index: {}]   ;;  %s3378_s3 = inlined_call_operand.vmem [shape: bf16[392,64], index: 3, kind: output, shape index: {}]  }
   0x1   :  { %v2586_v0 = vld [vmem:[%s3375_s1 + $0x20] sm:$0xff]  ;;  %v2585_v1 = vld [vmem:[%s3375_s1 + $0x18] sm:$0xff]  ;;  %v2584_v2 = vld [vmem:[%s3375_s1 + $0x10] sm:$0xff] }
   0x2   :  { %306 = vmatpush.bf16.msra.mxu0 %v2586_v0  ;;  %687 = vmatpush.bf16.msra.mxu1 %v2586_v0  ;;  %v2583_v3 = vld [vmem:[%s3375_s1 + $0x8] sm:$0xff]  ;;  %v2582_v4 = vld [vmem:[%s3375_s1] sm:$0xff]  ;;  %v2636_v11 = vld [vmem:[%s3376_s0 + $0x190] sm:$0xff] }
   0x3   :  { %1117 = vmatpush.bf16.msra.mxu2 %v2586_v0  ;;  %1547 = vmatpush.bf16.msra.mxu3 %v2586_v0  ;;  %v2587_v5 = vld [vmem:[%s3376_s0] sm:$0xff]  ;;  %v2635_v7 = vld [vmem:[%s3376_s0 + $0x188] sm:$0xff]  ;;  %v2660_v12 = vld [vmem:[%s3376_s0 + $0x254] sm:$0xff] }
   0x4   :  { %v2611_v6 = vld [vmem:[%s3376_s0 + $0xc4] sm:$0xff]  ;;  %v2659_v8 = vld [vmem:[%s3376_s0 + $0x24c] sm:$0xff]  ;;  %v2613_v14 = vld [vmem:[%s3376_s0 + $0xd4] sm:$0xff] }
   0x5   :  { %v2588_v9 = vld [vmem:[%s3376_s0 + $0x8] sm:$0xff]  ;;  %v2589_v13 = vld [vmem:[%s3376_s0 + $0x10] sm:$0xff]  ;;  %v2637_v15 = vld [vmem:[%s3376_s0 + $0x198] sm:$0xff] }
   0x6   :  { %307 = vmatpush.bf16.msra.mxu0 %v2585_v1  ;;  %688 = vmatpush.bf16.msra.mxu1 %v2585_v1  ;;  %v2612_v10 = vld [vmem:[%s3376_s0 + $0xcc] sm:$0xff]  ;;  %v2661_v16 = vld [vmem:[%s3376_s0 + $0x25c] sm:$0xff]  ;;  %v2662_v20 = vld [vmem:[%s3376_s0 + $0x264] sm:$0xff] }
   0x7   :  { %1118 = vmatpush.bf16.msra.mxu2 %v2585_v1  ;;  %1548 = vmatpush.bf16.msra.mxu3 %v2585_v1  ;;  %v2590_v17 = vld [vmem:[%s3376_s0 + $0x18] sm:$0xff]  ;;  %v2638_v19 = vld [vmem:[%s3376_s0 + $0x1a0] sm:$0xff]  ;;  %v2639_v23 = vld [vmem:[%s3376_s0 + $0x1a8] sm:$0xff] }
   0x8   :  { %v2614_v18 = vld [vmem:[%s3376_s0 + $0xdc] sm:$0xff]  ;;  %v2615_v22 = vld [vmem:[%s3376_s0 + $0xe4] sm:$0xff]  ;;  %v2663_v24 = vld [vmem:[%s3376_s0 + $0x26c] sm:$0xff] }
   0x9   :  { %v2591_v21 = vld [vmem:[%s3376_s0 + $0x20] sm:$0xff]  ;;  %v2592_v25 = vld [vmem:[%s3376_s0 + $0x28] sm:$0xff]  ;;  %v2640_v27 = vld [vmem:[%s3376_s0 + $0x1b0] sm:$0xff] }
   0xa   :  { %308 = vmatpush.bf16.msra.mxu0 %v2584_v2  ;;  %689 = vmatpush.bf16.msra.mxu1 %v2584_v2  ;;  %v2616_v26 = vld [vmem:[%s3376_s0 + $0xec] sm:$0xff]  ;;  %v2664_v28 = vld [vmem:[%s3376_s0 + $0x274] sm:$0xff]  ;;  %v2665_v32 = vld [vmem:[%s3376_s0 + $0x27c] sm:$0xff] }
   0xb   :  { %1119 = vmatpush.bf16.msra.mxu2 %v2584_v2  ;;  %1549 = vmatpush.bf16.msra.mxu3 %v2584_v2  ;;  %v2593_v29 = vld [vmem:[%s3376_s0 + $0x30] sm:$0xff]  ;;  %v2641_v31 = vld [vmem:[%s3376_s0 + $0x1b8] sm:$0xff]  ;;  %v2642_v35 = vld [vmem:[%s3376_s0 + $0x1c0] sm:$0xff] }
   0xc   :  { %v2617_v30 = vld [vmem:[%s3376_s0 + $0xf4] sm:$0xff]  ;;  %v2618_v34 = vld [vmem:[%s3376_s0 + $0xfc] sm:$0xff]  ;;  %v2666_v36 = vld [vmem:[%s3376_s0 + $0x284] sm:$0xff] }
   0xd   :  { %v2594_v33 = vld [vmem:[%s3376_s0 + $0x38] sm:$0xff]  ;;  %v2595_v37 = vld [vmem:[%s3376_s0 + $0x40] sm:$0xff]  ;;  %v2643_v41 = vld [vmem:[%s3376_s0 + $0x1c8] sm:$0xff] }
   0xe   :  { %309 = vmatpush.bf16.msra.mxu0 %v2583_v3  ;;  %690 = vmatpush.bf16.msra.mxu1 %v2583_v3  ;;  %v2619_v38 = vld [vmem:[%s3376_s0 + $0x104] sm:$0xff]  ;;  %v2667_v42 = vld [vmem:[%s3376_s0 + $0x28c] sm:$0xff]  ;;  %v2867_v47 = vld [vmem:[%s3377_s2] ss:$0 sm:$0xff] }
   0xf   :  { %1120 = vmatpush.bf16.msra.mxu2 %v2583_v3  ;;  %1550 = vmatpush.bf16.msra.mxu3 %v2583_v3  ;;  %v2596_v56 = vld [vmem:[%s3376_s0 + $0x48] sm:$0xff]  ;;  %v2644_v62 = vld [vmem:[%s3376_s0 + $0x1d0] sm:$0xff] }
  0x10   :  { %v2620_v57 = vld [vmem:[%s3376_s0 + $0x10c] sm:$0xff]  ;;  %v2668_v63 = vld [vmem:[%s3376_s0 + $0x294] sm:$0xff] }
  0x12   :  { %310 = vmatpush.bf16.msra.mxu0 %v2582_v4  ;;  %691 = vmatpush.bf16.msra.mxu1 %v2582_v4 }
  0x13   :  { %1121 = vmatpush.bf16.msra.mxu2 %v2582_v4  ;;  %1551 = vmatpush.bf16.msra.mxu3 %v2582_v4 }
  0x15   :  { %2047 = vmatmul.msk.bf16.vlgmr.msra.gmra.mxu0 %vm227_vm0, %v2587_v5  ;;  %2217 = vmatmul.msk.bf16.vlgmr.msra.gmra.mxu1 %vm227_vm0, %v2611_v6 }
  0x16   :  { %2387 = vmatmul.msk.bf16.vlgmr.msra.gmra.mxu2 %vm227_vm0, %v2635_v7  ;;  %2557 = vmatmul.msk.bf16.vlgmr.msra.gmra.mxu3 %vm227_vm0, %v2659_v8 }
  0x25   :  { %2048 = vmatmul.msk.bf16.gmra.mxu0 %vm227_vm0, %v2588_v9  ;;  %2218 = vmatmul.msk.bf16.gmra.mxu1 %vm227_vm0, %v2612_v10 }
  0x26   :  { %2388 = vmatmul.msk.bf16.gmra.mxu2 %vm227_vm0, %v2636_v11  ;;  %2558 = vmatmul.msk.bf16.gmra.mxu3 %vm227_vm0, %v2660_v12 }
  0x35   :  { %2049 = vmatmul.msk.bf16.gmra.mxu0 %vm227_vm0, %v2589_v13  ;;  %2219 = vmatmul.msk.bf16.gmra.mxu1 %vm227_vm0, %v2613_v14 }
  0x36   :  { %2389 = vmatmul.msk.bf16.gmra.mxu2 %vm227_vm0, %v2637_v15  ;;  %2559 = vmatmul.msk.bf16.gmra.mxu3 %vm227_vm0, %v2661_v16  ;;  %v2597_v16 = vld [vmem:[%s3376_s0 + $0x50] sm:$0xff] }
  0x45   :  { %2050 = vmatmul.msk.bf16.gmra.mxu0 %vm227_vm0, %v2590_v17  ;;  %2220 = vmatmul.msk.bf16.gmra.mxu1 %vm227_vm0, %v2614_v18  ;;  %v2621_v17 = vld [vmem:[%s3376_s0 + $0x114] sm:$0xff] }
  0x46   :  { %2390 = vmatmul.msk.bf16.gmra.mxu2 %vm227_vm0, %v2638_v19  ;;  %2560 = vmatmul.msk.bf16.gmra.mxu3 %vm227_vm0, %v2662_v20 }
  0x55   :  { %2051 = vmatmul.msk.bf16.gmra.mxu0 %vm227_vm0, %v2591_v21  ;;  %2221 = vmatmul.msk.bf16.gmra.mxu1 %vm227_vm0, %v2615_v22  ;;  %v2645_v22 = vld [vmem:[%s3376_s0 + $0x1d8] sm:$0xff] }
  0x56   :  { %2391 = vmatmul.msk.bf16.gmra.mxu2 %vm227_vm0, %v2639_v23  ;;  %2561 = vmatmul.msk.bf16.gmra.mxu3 %vm227_vm0, %v2663_v24  ;;  %v2669_v23 = vld [vmem:[%s3376_s0 + $0x29c] sm:$0xff] }
  0x65   :  { %2052 = vmatmul.msk.bf16.gmra.mxu0 %vm227_vm0, %v2592_v25  ;;  %2222 = vmatmul.msk.bf16.gmra.mxu1 %vm227_vm0, %v2616_v26 }
  0x66   :  { %2392 = vmatmul.msk.bf16.gmra.mxu2 %vm227_vm0, %v2640_v27  ;;  %2562 = vmatmul.msk.bf16.gmra.mxu3 %vm227_vm0, %v2664_v28 }
  0x75   :  { %2053 = vmatmul.msk.bf16.gmra.mxu0 %vm227_vm0, %v2593_v29  ;;  %2223 = vmatmul.msk.bf16.gmra.mxu1 %vm227_vm0, %v2617_v30 }
  0x76   :  { %2393 = vmatmul.msk.bf16.gmra.mxu2 %vm227_vm0, %v2641_v31  ;;  %2563 = vmatmul.msk.bf16.gmra.mxu3 %vm227_vm0, %v2665_v32 }
  0x85   :  { %2054 = vmatmul.msk.bf16.gmra.mxu0 %vm227_vm0, %v2594_v33  ;;  %2224 = vmatmul.msk.bf16.gmra.mxu1 %vm227_vm0, %v2618_v34 }
  0x86   :  { %2394 = vmatmul.msk.bf16.gmra.mxu2 %vm227_vm0, %v2642_v35  ;;  %2564 = vmatmul.msk.bf16.gmra.mxu3 %vm227_vm0, %v2666_v36 }
  0x92   :  { %v312_v39 = vpop.f32.mrf.mxu0  ;;  %v693_v40 = vpop.f32.mrf.mxu1 }
  0x93   :  { %v817_v43 = vmax.f32 %v312_v39, %v693_v40  ;;  %v2598_v40 = vld [vmem:[%s3376_s0 + $0x58] sm:$0xff] }
  0x95   :  { %2055 = vmatmul.msk.bf16.gmra.mxu0 %vm227_vm0, %v2595_v37  ;;  %2225 = vmatmul.msk.bf16.gmra.mxu1 %vm227_vm0, %v2619_v38 }
  0x96   :  { %2395 = vmatmul.msk.bf16.gmra.mxu2 %vm227_vm0, %v2643_v41  ;;  %2565 = vmatmul.msk.bf16.gmra.mxu3 %vm227_vm0, %v2667_v42  ;;  %v2622_v41 = vld [vmem:[%s3376_s0 + $0x11c] sm:$0xff] }
  0x99   :  { %v1123_v44 = vpop.f32.mrf.mxu2  ;;  %v1553_v45 = vpop.f32.mrf.mxu3 }
  0x9a   :  { %v1247_v46 = vmax.f32 %v817_v43, %v1123_v44  ;;  %v314_v48 = vpop.f32.mrf.mxu0  ;;  %v695_v49 = vpop.f32.mrf.mxu1 }
  0x9b   :  { %v818_v53 = vmax.f32 %v314_v48, %v695_v49  ;;  %v2670_v48 = vld [vmem:[%s3376_s0 + $0x2a4] sm:$0xff] }
  0x9c   :  { %v1677_v50 = vmax.f32 %v1247_v46, %v1553_v45  ;;  %v2646_v46 = vld [vmem:[%s3376_s0 + $0x1e0] sm:$0xff] }
  0x9e   :  { %v1730_v51 = vadd.f32 %v2867_v47, %v1677_v50 }
  0xa0   :  { %v1779_v52 = vmax.f32 %v1730_v51, 0.0 }
  0xa1   :  { %v1125_v54 = vpop.f32.mrf.mxu2  ;;  %v1555_v55 = vpop.f32.mrf.mxu3 }
  0xa2   :  { %v1828_v58 = vpack.c.bf16 %v1779_v52, %v1779_v52  ;;  %v1248_v59 = vmax.f32 %v818_v53, %v1125_v54  ;;  %v317_v60 = vpop.f32.mrf.mxu0  ;;  %v698_v61 = vpop.f32.mrf.mxu1 }
  0xa3   :  { %v819_v2 = vmax.f32 %v317_v60, %v698_v61 }
  0xa4   :  { %1878 = vst.msk [vmem:[%s3378_s3] sm:$0xf] %vm1877_vm1, %v1828_v58  ;;  %v1678_v0 = vmax.f32 %v1248_v59, %v1555_v55 }
  0xa5   :  { %2056 = vmatmul.msk.bf16.gmra.mxu0 %vm227_vm0, %v2596_v56  ;;  %2226 = vmatmul.msk.bf16.gmra.mxu1 %vm227_vm0, %v2620_v57 }
  0xa6   :  { %v1731_v1 = vadd.f32 %v2867_v47, %v1678_v0  ;;  %2396 = vmatmul.msk.bf16.gmra.mxu2 %vm227_vm0, %v2644_v62  ;;  %2566 = vmatmul.msk.bf16.gmra.mxu3 %vm227_vm0, %v2668_v63 }
  0xa8   :  { %v1780_v3 = vmax.f32 %v1731_v1, 0.0  ;;  %v2599_v1 = vld [vmem:[%s3376_s0 + $0x60] sm:$0xff] }
  0xa9   :  { %v1128_v4 = vpop.f32.mrf.mxu2  ;;  %v1558_v5 = vpop.f32.mrf.mxu3 }
  0xaa   :  { %v1829_v6 = vpack.c.bf16 %v1780_v3, %v1780_v3  ;;  %v1249_v7 = vmax.f32 %v819_v2, %v1128_v4  ;;  %v319_v8 = vpop.f32.mrf.mxu0  ;;  %v700_v9 = vpop.f32.mrf.mxu1  ;;  %v2623_v2 = vld [vmem:[%s3376_s0 + $0x124] sm:$0xff] }
  0xab   :  { %v820_v13 = vmax.f32 %v319_v8, %v700_v9  ;;  %v2671_v8 = vld [vmem:[%s3376_s0 + $0x2ac] sm:$0xff] }
  0xac   :  { %1879 = vst.msk [vmem:[%s3378_s3 + $0x4] sm:$0xf] %vm1877_vm1, %v1829_v6  ;;  %v1679_v10 = vmax.f32 %v1249_v7, %v1558_v5  ;;  %v2647_v7 = vld [vmem:[%s3376_s0 + $0x1e8] sm:$0xff] }
  0xae   :  { %v1732_v11 = vadd.f32 %v2867_v47, %v1679_v10 }
  0xb0   :  { %v1781_v12 = vmax.f32 %v1732_v11, 0.0 }
  0xb1   :  { %v1130_v14 = vpop.f32.mrf.mxu2  ;;  %v1560_v15 = vpop.f32.mrf.mxu3 }
  0xb2   :  { %v1830_v18 = vpack.c.bf16 %v1781_v12, %v1781_v12  ;;  %v1250_v19 = vmax.f32 %v820_v13, %v1130_v14  ;;  %v322_v20 = vpop.f32.mrf.mxu0  ;;  %v703_v21 = vpop.f32.mrf.mxu1 }
  0xb3   :  { %v821_v26 = vmax.f32 %v322_v20, %v703_v21 }
  0xb4   :  { %1880 = vst.msk [vmem:[%s3378_s3 + $0x8] sm:$0xf] %vm1877_vm1, %v1830_v18  ;;  %v1680_v24 = vmax.f32 %v1250_v19, %v1560_v15 }
  0xb5   :  { %2057 = vmatmul.msk.bf16.gmra.mxu0 %vm227_vm0, %v2597_v16  ;;  %2227 = vmatmul.msk.bf16.gmra.mxu1 %vm227_vm0, %v2621_v17 }
  0xb6   :  { %v1733_v25 = vadd.f32 %v2867_v47, %v1680_v24  ;;  %2397 = vmatmul.msk.bf16.gmra.mxu2 %vm227_vm0, %v2645_v22  ;;  %2567 = vmatmul.msk.bf16.gmra.mxu3 %vm227_vm0, %v2669_v23 }
  0xb8   :  { %v1782_v27 = vmax.f32 %v1733_v25, 0.0  ;;  %v2600_v25 = vld [vmem:[%s3376_s0 + $0x68] sm:$0xff] }
  0xb9   :  { %v1133_v28 = vpop.f32.mrf.mxu2  ;;  %v1563_v29 = vpop.f32.mrf.mxu3 }
  0xba   :  { %v1831_v30 = vpack.c.bf16 %v1782_v27, %v1782_v27  ;;  %v1251_v31 = vmax.f32 %v821_v26, %v1133_v28  ;;  %v324_v32 = vpop.f32.mrf.mxu0  ;;  %v705_v33 = vpop.f32.mrf.mxu1  ;;  %v2624_v26 = vld [vmem:[%s3376_s0 + $0x12c] sm:$0xff] }
  0xbb   :  { %v822_v37 = vmax.f32 %v324_v32, %v705_v33  ;;  %v2672_v32 = vld [vmem:[%s3376_s0 + $0x2b4] sm:$0xff] }
  0xbc   :  { %1881 = vst.msk [vmem:[%s3378_s3 + $0xc] sm:$0xf] %vm1877_vm1, %v1831_v30  ;;  %v1681_v34 = vmax.f32 %v1251_v31, %v1563_v29  ;;  %v2648_v31 = vld [vmem:[%s3376_s0 + $0x1f0] sm:$0xff] }
  0xbe   :  { %v1734_v35 = vadd.f32 %v2867_v47, %v1681_v34 }
  0xc0   :  { %v1783_v36 = vmax.f32 %v1734_v35, 0.0 }
  0xc1   :  { %v1135_v38 = vpop.f32.mrf.mxu2  ;;  %v1565_v39 = vpop.f32.mrf.mxu3 }
  0xc2   :  { %v1832_v42 = vpack.c.bf16 %v1783_v36, %v1783_v36  ;;  %v1252_v43 = vmax.f32 %v822_v37, %v1135_v38  ;;  %v327_v44 = vpop.f32.mrf.mxu0  ;;  %v708_v45 = vpop.f32.mrf.mxu1 }
  0xc3   :  { %v823_v51 = vmax.f32 %v327_v44, %v708_v45 }
  0xc4   :  { %1882 = vst.msk [vmem:[%s3378_s3 + $0x10] sm:$0xf] %vm1877_vm1, %v1832_v42  ;;  %v1682_v49 = vmax.f32 %v1252_v43, %v1565_v39 }
  0xc5   :  { %2058 = vmatmul.msk.bf16.gmra.mxu0 %vm227_vm0, %v2598_v40  ;;  %2228 = vmatmul.msk.bf16.gmra.mxu1 %vm227_vm0, %v2622_v41 }
  0xc6   :  { %v1735_v50 = vadd.f32 %v2867_v47, %v1682_v49  ;;  %2398 = vmatmul.msk.bf16.gmra.mxu2 %vm227_vm0, %v2646_v46  ;;  %2568 = vmatmul.msk.bf16.gmra.mxu3 %vm227_vm0, %v2670_v48 }
  0xc8   :  { %v1784_v52 = vmax.f32 %v1735_v50, 0.0  ;;  %v2601_v50 = vld [vmem:[%s3376_s0 + $0x70] sm:$0xff] }
  0xc9   :  { %v1138_v53 = vpop.f32.mrf.mxu2  ;;  %v1568_v54 = vpop.f32.mrf.mxu3 }
  0xca   :  { %v1833_v55 = vpack.c.bf16 %v1784_v52, %v1784_v52  ;;  %v1253_v56 = vmax.f32 %v823_v51, %v1138_v53  ;;  %v329_v57 = vpop.f32.mrf.mxu0  ;;  %v710_v58 = vpop.f32.mrf.mxu1  ;;  %v2625_v51 = vld [vmem:[%s3376_s0 + $0x134] sm:$0xff] }
  0xcb   :  { %v824_v62 = vmax.f32 %v329_v57, %v710_v58  ;;  %v2673_v57 = vld [vmem:[%s3376_s0 + $0x2bc] sm:$0xff] }
  0xcc   :  { %1883 = vst.msk [vmem:[%s3378_s3 + $0x14] sm:$0xf] %vm1877_vm1, %v1833_v55  ;;  %v1683_v59 = vmax.f32 %v1253_v56, %v1568_v54  ;;  %v2649_v56 = vld [vmem:[%s3376_s0 + $0x1f8] sm:$0xff] }
  0xce   :  { %v1736_v60 = vadd.f32 %v2867_v47, %v1683_v59 }
  0xd0   :  { %v1785_v61 = vmax.f32 %v1736_v60, 0.0 }
  0xd1   :  { %v1140_v63 = vpop.f32.mrf.mxu2  ;;  %v1570_v0 = vpop.f32.mrf.mxu3 }
  0xd2   :  { %v1834_v3 = vpack.c.bf16 %v1785_v61, %v1785_v61  ;;  %v1254_v4 = vmax.f32 %v824_v62, %v1140_v63  ;;  %v332_v5 = vpop.f32.mrf.mxu0  ;;  %v713_v6 = vpop.f32.mrf.mxu1 }
  0xd3   :  { %v825_v11 = vmax.f32 %v332_v5, %v713_v6 }
  0xd4   :  { %1884 = vst.msk [vmem:[%s3378_s3 + $0x18] sm:$0xf] %vm1877_vm1, %v1834_v3  ;;  %v1684_v9 = vmax.f32 %v1254_v4, %v1570_v0 }
  0xd5   :  { %2059 = vmatmul.msk.bf16.gmra.mxu0 %vm227_vm0, %v2599_v1  ;;  %2229 = vmatmul.msk.bf16.gmra.mxu1 %vm227_vm0, %v2623_v2 }
  0xd6   :  { %v1737_v10 = vadd.f32 %v2867_v47, %v1684_v9  ;;  %2399 = vmatmul.msk.bf16.gmra.mxu2 %vm227_vm0, %v2647_v7  ;;  %2569 = vmatmul.msk.bf16.gmra.mxu3 %vm227_vm0, %v2671_v8 }
  0xd8   :  { %v1786_v12 = vmax.f32 %v1737_v10, 0.0  ;;  %v2602_v10 = vld [vmem:[%s3376_s0 + $0x78] sm:$0xff] }
  0xd9   :  { %v1143_v13 = vpop.f32.mrf.mxu2  ;;  %v1573_v14 = vpop.f32.mrf.mxu3 }
  0xda   :  { %v1835_v15 = vpack.c.bf16 %v1786_v12, %v1786_v12  ;;  %v1255_v16 = vmax.f32 %v825_v11, %v1143_v13  ;;  %v334_v17 = vpop.f32.mrf.mxu0  ;;  %v715_v18 = vpop.f32.mrf.mxu1  ;;  %v2626_v11 = vld [vmem:[%s3376_s0 + $0x13c] sm:$0xff] }
  0xdb   :  { %v826_v22 = vmax.f32 %v334_v17, %v715_v18  ;;  %v2674_v17 = vld [vmem:[%s3376_s0 + $0x2c4] sm:$0xff] }
  0xdc   :  { %1885 = vst.msk [vmem:[%s3378_s3 + $0x1c] sm:$0xf] %vm1877_vm1, %v1835_v15  ;;  %v1685_v19 = vmax.f32 %v1255_v16, %v1573_v14  ;;  %v2650_v16 = vld [vmem:[%s3376_s0 + $0x200] sm:$0xff] }
  0xde   :  { %v1738_v20 = vadd.f32 %v2867_v47, %v1685_v19 }
  0xe0   :  { %v1787_v21 = vmax.f32 %v1738_v20, 0.0 }
  0xe1   :  { %v1145_v23 = vpop.f32.mrf.mxu2  ;;  %v1575_v24 = vpop.f32.mrf.mxu3 }
  0xe2   :  { %v1836_v27 = vpack.c.bf16 %v1787_v21, %v1787_v21  ;;  %v1256_v28 = vmax.f32 %v826_v22, %v1145_v23  ;;  %v337_v29 = vpop.f32.mrf.mxu0  ;;  %v718_v30 = vpop.f32.mrf.mxu1 }
  0xe3   :  { %v827_v35 = vmax.f32 %v337_v29, %v718_v30 }
  0xe4   :  { %1886 = vst.msk [vmem:[%s3378_s3 + $0x20] sm:$0xf] %vm1877_vm1, %v1836_v27  ;;  %v1686_v33 = vmax.f32 %v1256_v28, %v1575_v24 }
  0xe5   :  { %2060 = vmatmul.msk.bf16.gmra.mxu0 %vm227_vm0, %v2600_v25  ;;  %2230 = vmatmul.msk.bf16.gmra.mxu1 %vm227_vm0, %v2624_v26 }
  0xe6   :  { %v1739_v34 = vadd.f32 %v2867_v47, %v1686_v33  ;;  %2400 = vmatmul.msk.bf16.gmra.mxu2 %vm227_vm0, %v2648_v31  ;;  %2570 = vmatmul.msk.bf16.gmra.mxu3 %vm227_vm0, %v2672_v32 }
  0xe8   :  { %v1788_v36 = vmax.f32 %v1739_v34, 0.0  ;;  %v2603_v34 = vld [vmem:[%s3376_s0 + $0x80] sm:$0xff] }
  0xe9   :  { %v1148_v37 = vpop.f32.mrf.mxu2  ;;  %v1578_v38 = vpop.f32.mrf.mxu3 }
  0xea   :  { %v1837_v39 = vpack.c.bf16 %v1788_v36, %v1788_v36  ;;  %v1257_v40 = vmax.f32 %v827_v35, %v1148_v37  ;;  %v339_v41 = vpop.f32.mrf.mxu0  ;;  %v720_v42 = vpop.f32.mrf.mxu1  ;;  %v2627_v35 = vld [vmem:[%s3376_s0 + $0x144] sm:$0xff] }
  0xeb   :  { %v828_v46 = vmax.f32 %v339_v41, %v720_v42  ;;  %v2675_v41 = vld [vmem:[%s3376_s0 + $0x2cc] sm:$0xff] }
  0xec   :  { %1887 = vst.msk [vmem:[%s3378_s3 + $0x24] sm:$0xf] %vm1877_vm1, %v1837_v39  ;;  %v1687_v43 = vmax.f32 %v1257_v40, %v1578_v38  ;;  %v2651_v40 = vld [vmem:[%s3376_s0 + $0x208] sm:$0xff] }
  0xee   :  { %v1740_v44 = vadd.f32 %v2867_v47, %v1687_v43 }
  0xf0   :  { %v1789_v45 = vmax.f32 %v1740_v44, 0.0 }
  0xf1   :  { %v1150_v48 = vpop.f32.mrf.mxu2  ;;  %v1580_v49 = vpop.f32.mrf.mxu3 }
  0xf2   :  { %v1838_v52 = vpack.c.bf16 %v1789_v45, %v1789_v45  ;;  %v1258_v53 = vmax.f32 %v828_v46, %v1150_v48  ;;  %v342_v54 = vpop.f32.mrf.mxu0  ;;  %v723_v55 = vpop.f32.mrf.mxu1 }
  0xf3   :  { %v829_v60 = vmax.f32 %v342_v54, %v723_v55 }
  0xf4   :  { %1888 = vst.msk [vmem:[%s3378_s3 + $0x28] sm:$0xf] %vm1877_vm1, %v1838_v52  ;;  %v1688_v58 = vmax.f32 %v1258_v53, %v1580_v49 }
  0xf5   :  { %2061 = vmatmul.msk.bf16.gmra.mxu0 %vm227_vm0, %v2601_v50  ;;  %2231 = vmatmul.msk.bf16.gmra.mxu1 %vm227_vm0, %v2625_v51 }
  0xf6   :  { %v1741_v59 = vadd.f32 %v2867_v47, %v1688_v58  ;;  %2401 = vmatmul.msk.bf16.gmra.mxu2 %vm227_vm0, %v2649_v56  ;;  %2571 = vmatmul.msk.bf16.gmra.mxu3 %vm227_vm0, %v2673_v57 }
  0xf8   :  { %v1790_v61 = vmax.f32 %v1741_v59, 0.0  ;;  %v2604_v59 = vld [vmem:[%s3376_s0 + $0x88] sm:$0xff] }
  0xf9   :  { %v1153_v62 = vpop.f32.mrf.mxu2  ;;  %v1583_v63 = vpop.f32.mrf.mxu3 }
  0xfa   :  { %v1839_v0 = vpack.c.bf16 %v1790_v61, %v1790_v61  ;;  %v1259_v1 = vmax.f32 %v829_v60, %v1153_v62  ;;  %v344_v2 = vpop.f32.mrf.mxu0  ;;  %v725_v3 = vpop.f32.mrf.mxu1  ;;  %v2628_v60 = vld [vmem:[%s3376_s0 + $0x14c] sm:$0xff] }
  0xfb   :  { %v830_v7 = vmax.f32 %v344_v2, %v725_v3  ;;  %v2676_v2 = vld [vmem:[%s3376_s0 + $0x2d4] sm:$0xff] }
  0xfc   :  { %1889 = vst.msk [vmem:[%s3378_s3 + $0x2c] sm:$0xf] %vm1877_vm1, %v1839_v0  ;;  %v1689_v4 = vmax.f32 %v1259_v1, %v1583_v63  ;;  %v2652_v1 = vld [vmem:[%s3376_s0 + $0x210] sm:$0xff] }
  0xfe   :  { %v1742_v5 = vadd.f32 %v2867_v47, %v1689_v4 }
 0x100   :  { %v1791_v6 = vmax.f32 %v1742_v5, 0.0 }
 0x101   :  { %v1155_v8 = vpop.f32.mrf.mxu2  ;;  %v1585_v9 = vpop.f32.mrf.mxu3 }
 0x102   :  { %v1840_v12 = vpack.c.bf16 %v1791_v6, %v1791_v6  ;;  %v1260_v13 = vmax.f32 %v830_v7, %v1155_v8  ;;  %v347_v14 = vpop.f32.mrf.mxu0  ;;  %v728_v15 = vpop.f32.mrf.mxu1 }
 0x103   :  { %v831_v20 = vmax.f32 %v347_v14, %v728_v15 }
 0x104   :  { %1890 = vst.msk [vmem:[%s3378_s3 + $0x30] sm:$0xf] %vm1877_vm1, %v1840_v12  ;;  %v1690_v18 = vmax.f32 %v1260_v13, %v1585_v9 }
 0x105   :  { %2062 = vmatmul.msk.bf16.gmra.mxu0 %vm227_vm0, %v2602_v10  ;;  %2232 = vmatmul.msk.bf16.gmra.mxu1 %vm227_vm0, %v2626_v11 }
 0x106   :  { %v1743_v19 = vadd.f32 %v2867_v47, %v1690_v18  ;;  %2402 = vmatmul.msk.bf16.gmra.mxu2 %vm227_vm0, %v2650_v16  ;;  %2572 = vmatmul.msk.bf16.gmra.mxu3 %vm227_vm0, %v2674_v17 }
 0x108   :  { %v1792_v21 = vmax.f32 %v1743_v19, 0.0  ;;  %v2605_v19 = vld [vmem:[%s3376_s0 + $0x90] sm:$0xff] }
 0x109   :  { %v1158_v22 = vpop.f32.mrf.mxu2  ;;  %v1588_v23 = vpop.f32.mrf.mxu3 }
 0x10a   :  { %v1841_v24 = vpack.c.bf16 %v1792_v21, %v1792_v21  ;;  %v1261_v25 = vmax.f32 %v831_v20, %v1158_v22  ;;  %v349_v26 = vpop.f32.mrf.mxu0  ;;  %v730_v27 = vpop.f32.mrf.mxu1  ;;  %v2629_v20 = vld [vmem:[%s3376_s0 + $0x154] sm:$0xff] }
 0x10b   :  { %v832_v31 = vmax.f32 %v349_v26, %v730_v27  ;;  %v2677_v26 = vld [vmem:[%s3376_s0 + $0x2dc] sm:$0xff] }
 0x10c   :  { %1891 = vst.msk [vmem:[%s3378_s3 + $0x34] sm:$0xf] %vm1877_vm1, %v1841_v24  ;;  %v1691_v28 = vmax.f32 %v1261_v25, %v1588_v23  ;;  %v2653_v25 = vld [vmem:[%s3376_s0 + $0x218] sm:$0xff] }
 0x10e   :  { %v1744_v29 = vadd.f32 %v2867_v47, %v1691_v28 }
 0x110   :  { %v1793_v30 = vmax.f32 %v1744_v29, 0.0 }
 0x111   :  { %v1160_v32 = vpop.f32.mrf.mxu2  ;;  %v1590_v33 = vpop.f32.mrf.mxu3 }
 0x112   :  { %v1842_v36 = vpack.c.bf16 %v1793_v30, %v1793_v30  ;;  %v1262_v37 = vmax.f32 %v832_v31, %v1160_v32  ;;  %v352_v38 = vpop.f32.mrf.mxu0  ;;  %v733_v39 = vpop.f32.mrf.mxu1 }
 0x113   :  { %v833_v44 = vmax.f32 %v352_v38, %v733_v39 }
 0x114   :  { %1892 = vst.msk [vmem:[%s3378_s3 + $0x38] sm:$0xf] %vm1877_vm1, %v1842_v36  ;;  %v1692_v42 = vmax.f32 %v1262_v37, %v1590_v33 }
 0x115   :  { %2063 = vmatmul.msk.bf16.gmra.mxu0 %vm227_vm0, %v2603_v34  ;;  %2233 = vmatmul.msk.bf16.gmra.mxu1 %vm227_vm0, %v2627_v35 }
 0x116   :  { %v1745_v43 = vadd.f32 %v2867_v47, %v1692_v42  ;;  %2403 = vmatmul.msk.bf16.gmra.mxu2 %vm227_vm0, %v2651_v40  ;;  %2573 = vmatmul.msk.bf16.gmra.mxu3 %vm227_vm0, %v2675_v41 }
 0x118   :  { %v1794_v45 = vmax.f32 %v1745_v43, 0.0  ;;  %v2606_v43 = vld [vmem:[%s3376_s0 + $0x98] sm:$0xff] }
 0x119   :  { %v1163_v46 = vpop.f32.mrf.mxu2  ;;  %v1593_v48 = vpop.f32.mrf.mxu3 }
 0x11a   :  { %v1843_v49 = vpack.c.bf16 %v1794_v45, %v1794_v45  ;;  %v1263_v50 = vmax.f32 %v833_v44, %v1163_v46  ;;  %v354_v51 = vpop.f32.mrf.mxu0  ;;  %v735_v52 = vpop.f32.mrf.mxu1  ;;  %v2630_v44 = vld [vmem:[%s3376_s0 + $0x15c] sm:$0xff] }
 0x11b   :  { %v834_v56 = vmax.f32 %v354_v51, %v735_v52  ;;  %v2678_v51 = vld [vmem:[%s3376_s0 + $0x2e4] sm:$0xff] }
 0x11c   :  { %1893 = vst.msk [vmem:[%s3378_s3 + $0x3c] sm:$0xf] %vm1877_vm1, %v1843_v49  ;;  %v1693_v53 = vmax.f32 %v1263_v50, %v1593_v48  ;;  %v2654_v50 = vld [vmem:[%s3376_s0 + $0x220] sm:$0xff] }
 0x11e   :  { %v1746_v54 = vadd.f32 %v2867_v47, %v1693_v53 }
 0x120   :  { %v1795_v55 = vmax.f32 %v1746_v54, 0.0 }
 0x121   :  { %v1165_v57 = vpop.f32.mrf.mxu2  ;;  %v1595_v58 = vpop.f32.mrf.mxu3 }
 0x122   :  { %v1844_v61 = vpack.c.bf16 %v1795_v55, %v1795_v55  ;;  %v1264_v62 = vmax.f32 %v834_v56, %v1165_v57  ;;  %v357_v63 = vpop.f32.mrf.mxu0  ;;  %v738_v0 = vpop.f32.mrf.mxu1 }
 0x123   :  { %v835_v5 = vmax.f32 %v357_v63, %v738_v0 }
 0x124   :  { %1894 = vst.msk [vmem:[%s3378_s3 + $0x40] sm:$0xf] %vm1877_vm1, %v1844_v61  ;;  %v1694_v3 = vmax.f32 %v1264_v62, %v1595_v58 }
 0x125   :  { %2064 = vmatmul.msk.bf16.gmra.mxu0 %vm227_vm0, %v2604_v59  ;;  %2234 = vmatmul.msk.bf16.gmra.mxu1 %vm227_vm0, %v2628_v60 }
 0x126   :  { %v1747_v4 = vadd.f32 %v2867_v47, %v1694_v3  ;;  %2404 = vmatmul.msk.bf16.gmra.mxu2 %vm227_vm0, %v2652_v1  ;;  %2574 = vmatmul.msk.bf16.gmra.mxu3 %vm227_vm0, %v2676_v2 }
 0x128   :  { %v1796_v6 = vmax.f32 %v1747_v4, 0.0  ;;  %v2607_v4 = vld [vmem:[%s3376_s0 + $0xa0] sm:$0xff] }
 0x129   :  { %v1168_v7 = vpop.f32.mrf.mxu2  ;;  %v1598_v8 = vpop.f32.mrf.mxu3 }
 0x12a   :  { %v1845_v9 = vpack.c.bf16 %v1796_v6, %v1796_v6  ;;  %v1265_v10 = vmax.f32 %v835_v5, %v1168_v7  ;;  %v359_v11 = vpop.f32.mrf.mxu0  ;;  %v740_v12 = vpop.f32.mrf.mxu1  ;;  %v2631_v5 = vld [vmem:[%s3376_s0 + $0x164] sm:$0xff] }
 0x12b   :  { %v836_v16 = vmax.f32 %v359_v11, %v740_v12  ;;  %v2679_v11 = vld [vmem:[%s3376_s0 + $0x2ec] sm:$0xff] }
 0x12c   :  { %1895 = vst.msk [vmem:[%s3378_s3 + $0x44] sm:$0xf] %vm1877_vm1, %v1845_v9  ;;  %v1695_v13 = vmax.f32 %v1265_v10, %v1598_v8  ;;  %v2655_v10 = vld [vmem:[%s3376_s0 + $0x228] sm:$0xff] }
 0x12e   :  { %v1748_v14 = vadd.f32 %v2867_v47, %v1695_v13 }
 0x130   :  { %v1797_v15 = vmax.f32 %v1748_v14, 0.0 }
 0x131   :  { %v1170_v17 = vpop.f32.mrf.mxu2  ;;  %v1600_v18 = vpop.f32.mrf.mxu3 }
 0x132   :  { %v1846_v21 = vpack.c.bf16 %v1797_v15, %v1797_v15  ;;  %v1266_v22 = vmax.f32 %v836_v16, %v1170_v17  ;;  %v362_v23 = vpop.f32.mrf.mxu0  ;;  %v743_v24 = vpop.f32.mrf.mxu1 }
 0x133   :  { %v837_v29 = vmax.f32 %v362_v23, %v743_v24 }
 0x134   :  { %1896 = vst.msk [vmem:[%s3378_s3 + $0x48] sm:$0xf] %vm1877_vm1, %v1846_v21  ;;  %v1696_v27 = vmax.f32 %v1266_v22, %v1600_v18 }
 0x135   :  { %2065 = vmatmul.msk.bf16.gmra.mxu0 %vm227_vm0, %v2605_v19  ;;  %2235 = vmatmul.msk.bf16.gmra.mxu1 %vm227_vm0, %v2629_v20 }
 0x136   :  { %v1749_v28 = vadd.f32 %v2867_v47, %v1696_v27  ;;  %2405 = vmatmul.msk.bf16.gmra.mxu2 %vm227_vm0, %v2653_v25  ;;  %2575 = vmatmul.msk.bf16.gmra.mxu3 %vm227_vm0, %v2677_v26 }
 0x138   :  { %v1798_v30 = vmax.f32 %v1749_v28, 0.0  ;;  %v2608_v28 = vld [vmem:[%s3376_s0 + $0xa8] sm:$0xff] }
 0x139   :  { %v1173_v31 = vpop.f32.mrf.mxu2  ;;  %v1603_v32 = vpop.f32.mrf.mxu3 }
 0x13a   :  { %v1847_v33 = vpack.c.bf16 %v1798_v30, %v1798_v30  ;;  %v1267_v34 = vmax.f32 %v837_v29, %v1173_v31  ;;  %v364_v35 = vpop.f32.mrf.mxu0  ;;  %v745_v36 = vpop.f32.mrf.mxu1  ;;  %v2632_v29 = vld [vmem:[%s3376_s0 + $0x16c] sm:$0xff] }
 0x13b   :  { %v838_v40 = vmax.f32 %v364_v35, %v745_v36  ;;  %v2680_v35 = vld [vmem:[%s3376_s0 + $0x2f4] sm:$0xff] }
 0x13c   :  { %1897 = vst.msk [vmem:[%s3378_s3 + $0x4c] sm:$0xf] %vm1877_vm1, %v1847_v33  ;;  %v1697_v37 = vmax.f32 %v1267_v34, %v1603_v32  ;;  %v2656_v34 = vld [vmem:[%s3376_s0 + $0x230] sm:$0xff] }
 0x13e   :  { %v1750_v38 = vadd.f32 %v2867_v47, %v1697_v37 }
 0x140   :  { %v1799_v39 = vmax.f32 %v1750_v38, 0.0 }
 0x141   :  { %v1175_v41 = vpop.f32.mrf.mxu2  ;;  %v1605_v42 = vpop.f32.mrf.mxu3 }
 0x142   :  { %v1848_v45 = vpack.c.bf16 %v1799_v39, %v1799_v39  ;;  %v1268_v46 = vmax.f32 %v838_v40, %v1175_v41  ;;  %v367_v48 = vpop.f32.mrf.mxu0  ;;  %v748_v49 = vpop.f32.mrf.mxu1 }
 0x143   :  { %v839_v54 = vmax.f32 %v367_v48, %v748_v49 }
 0x144   :  { %1898 = vst.msk [vmem:[%s3378_s3 + $0x50] sm:$0xf] %vm1877_vm1, %v1848_v45  ;;  %v1698_v52 = vmax.f32 %v1268_v46, %v1605_v42 }
 0x145   :  { %2066 = vmatmul.msk.bf16.gmra.mxu0 %vm227_vm0, %v2606_v43  ;;  %2236 = vmatmul.msk.bf16.gmra.mxu1 %vm227_vm0, %v2630_v44 }
 0x146   :  { %v1751_v53 = vadd.f32 %v2867_v47, %v1698_v52  ;;  %2406 = vmatmul.msk.bf16.gmra.mxu2 %vm227_vm0, %v2654_v50  ;;  %2576 = vmatmul.msk.bf16.gmra.mxu3 %vm227_vm0, %v2678_v51 }
 0x148   :  { %v1800_v55 = vmax.f32 %v1751_v53, 0.0  ;;  %v2609_v53 = vld [vmem:[%s3376_s0 + $0xb0] sm:$0xff] }
 0x149   :  { %v1178_v56 = vpop.f32.mrf.mxu2  ;;  %v1608_v57 = vpop.f32.mrf.mxu3 }
 0x14a   :  { %v1849_v58 = vpack.c.bf16 %v1800_v55, %v1800_v55  ;;  %v1269_v59 = vmax.f32 %v839_v54, %v1178_v56  ;;  %v369_v60 = vpop.f32.mrf.mxu0  ;;  %v750_v61 = vpop.f32.mrf.mxu1  ;;  %v2633_v54 = vld [vmem:[%s3376_s0 + $0x174] sm:$0xff] }
 0x14b   :  { %v840_v1 = vmax.f32 %v369_v60, %v750_v61  ;;  %v2681_v60 = vld [vmem:[%s3376_s0 + $0x2fc] sm:$0xff] }
 0x14c   :  { %1899 = vst.msk [vmem:[%s3378_s3 + $0x54] sm:$0xf] %vm1877_vm1, %v1849_v58  ;;  %v1699_v62 = vmax.f32 %v1269_v59, %v1608_v57  ;;  %v2657_v59 = vld [vmem:[%s3376_s0 + $0x238] sm:$0xff] }
 0x14e   :  { %v1752_v63 = vadd.f32 %v2867_v47, %v1699_v62 }
 0x150   :  { %v1801_v0 = vmax.f32 %v1752_v63, 0.0 }
 0x151   :  { %v1180_v2 = vpop.f32.mrf.mxu2  ;;  %v1610_v3 = vpop.f32.mrf.mxu3 }
 0x152   :  { %v1850_v6 = vpack.c.bf16 %v1801_v0, %v1801_v0  ;;  %v1270_v7 = vmax.f32 %v840_v1, %v1180_v2  ;;  %v372_v8 = vpop.f32.mrf.mxu0  ;;  %v753_v9 = vpop.f32.mrf.mxu1 }
 0x153   :  { %v841_v14 = vmax.f32 %v372_v8, %v753_v9 }
 0x154   :  { %1900 = vst.msk [vmem:[%s3378_s3 + $0x58] sm:$0xf] %vm1877_vm1, %v1850_v6  ;;  %v1700_v12 = vmax.f32 %v1270_v7, %v1610_v3 }
 0x155   :  { %2067 = vmatmul.msk.bf16.gmra.mxu0 %vm227_vm0, %v2607_v4  ;;  %2237 = vmatmul.msk.bf16.gmra.mxu1 %vm227_vm0, %v2631_v5 }
 0x156   :  { %v1753_v13 = vadd.f32 %v2867_v47, %v1700_v12  ;;  %2407 = vmatmul.msk.bf16.gmra.mxu2 %vm227_vm0, %v2655_v10  ;;  %2577 = vmatmul.msk.bf16.gmra.mxu3 %vm227_vm0, %v2679_v11 }
 0x158   :  { %v1802_v15 = vmax.f32 %v1753_v13, 0.0  ;;  %v2610_v13 = vld [vmem:[%s3376_s0 + $0xb8] sm:$0xff] }
 0x159   :  { %v1183_v16 = vpop.f32.mrf.mxu2  ;;  %v1613_v17 = vpop.f32.mrf.mxu3 }
 0x15a   :  { %v1851_v18 = vpack.c.bf16 %v1802_v15, %v1802_v15  ;;  %v1271_v19 = vmax.f32 %v841_v14, %v1183_v16  ;;  %v374_v20 = vpop.f32.mrf.mxu0  ;;  %v755_v21 = vpop.f32.mrf.mxu1  ;;  %v2634_v14 = vld [vmem:[%s3376_s0 + $0x17c] sm:$0xff] }
 0x15b   :  { %v842_v25 = vmax.f32 %v374_v20, %v755_v21  ;;  %v2682_v20 = vld [vmem:[%s3376_s0 + $0x304] sm:$0xff] }
 0x15c   :  { %1901 = vst.msk [vmem:[%s3378_s3 + $0x5c] sm:$0xf] %vm1877_vm1, %v1851_v18  ;;  %v1701_v22 = vmax.f32 %v1271_v19, %v1613_v17  ;;  %v2658_v19 = vld [vmem:[%s3376_s0 + $0x240] sm:$0xff] }
 0x15e   :  { %v1754_v23 = vadd.f32 %v2867_v47, %v1701_v22 }
 0x160   :  { %v1803_v24 = vmax.f32 %v1754_v23, 0.0 }
 0x161   :  { %v1185_v26 = vpop.f32.mrf.mxu2  ;;  %v1615_v27 = vpop.f32.mrf.mxu3 }
 0x162   :  { %v1852_v30 = vpack.c.bf16 %v1803_v24, %v1803_v24  ;;  %v1272_v31 = vmax.f32 %v842_v25, %v1185_v26  ;;  %v377_v32 = vpop.f32.mrf.mxu0  ;;  %v758_v33 = vpop.f32.mrf.mxu1 }
 0x163   :  { %v843_v38 = vmax.f32 %v377_v32, %v758_v33  ;;  %v2120_v32 = vld [vmem:[%s3376_s0 + $0x184] sm:$0xf]  ;;  %v2290_v33 = vld [vmem:[%s3376_s0 + $0x248] sm:$0xf] }
 0x164   :  { %1902 = vst.msk [vmem:[%s3378_s3 + $0x60] sm:$0xf] %vm1877_vm1, %v1852_v30  ;;  %v1702_v36 = vmax.f32 %v1272_v31, %v1615_v27  ;;  %v73_v31 = vld [vmem:[%s3376_s0 + $0xc0] sm:$0xf] }
 0x165   :  { %2068 = vmatmul.msk.bf16.gmra.mxu0 %vm227_vm0, %v2608_v28  ;;  %2238 = vmatmul.msk.bf16.gmra.mxu1 %vm227_vm0, %v2632_v29 }
 0x166   :  { %v1755_v37 = vadd.f32 %v2867_v47, %v1702_v36  ;;  %2408 = vmatmul.msk.bf16.gmra.mxu2 %vm227_vm0, %v2656_v34  ;;  %2578 = vmatmul.msk.bf16.gmra.mxu3 %vm227_vm0, %v2680_v35  ;;  %v2460_v34 = vld [vmem:[%s3376_s0 + $0x30c] sm:$0xf]  ;;  %v171_v36 = vunpack.c.l.b16 %v73_v31 }
 0x168   :  { %v1804_v39 = vmax.f32 %v1755_v37, 0.0  ;;  %v583_v37 = vunpack.c.l.b16 %v2120_v32 }
 0x169   :  { %v1188_v40 = vpop.f32.mrf.mxu2  ;;  %v1618_v41 = vpop.f32.mrf.mxu3 }
 0x16a   :  { %v1853_v42 = vpack.c.bf16 %v1804_v39, %v1804_v39  ;;  %v1273_v43 = vmax.f32 %v843_v38, %v1188_v40  ;;  %v379_v44 = vpop.f32.mrf.mxu0  ;;  %v760_v45 = vpop.f32.mrf.mxu1  ;;  %v1013_v39 = vunpack.c.l.b16 %v2290_v33  ;;  %v1443_v40 = vunpack.c.l.b16 %v2460_v34 }
 0x16b   :  { %v844_v50 = vmax.f32 %v379_v44, %v760_v45  ;;  %v196_v45 = vpack.c.b16 %v171_v36, %v171_v36 }
 0x16c   :  { %1903 = vst.msk [vmem:[%s3378_s3 + $0x64] sm:$0xf] %vm1877_vm1, %v1853_v42  ;;  %v1703_v46 = vmax.f32 %v1273_v43, %v1618_v41 }
 0x16e   :  { %v1756_v48 = vadd.f32 %v2867_v47, %v1703_v46  ;;  %v608_v46 = vpack.c.b16 %v583_v37, %v583_v37 }
 0x170   :  { %v1805_v49 = vmax.f32 %v1756_v48, 0.0 }
 0x171   :  { %v1190_v51 = vpop.f32.mrf.mxu2  ;;  %v1620_v52 = vpop.f32.mrf.mxu3 }
 0x172   :  { %v1854_v55 = vpack.c.bf16 %v1805_v49, %v1805_v49  ;;  %v1274_v56 = vmax.f32 %v844_v50, %v1190_v51  ;;  %v382_v57 = vpop.f32.mrf.mxu0  ;;  %v763_v58 = vpop.f32.mrf.mxu1 }
 0x173   :  { %v845_v63 = vmax.f32 %v382_v57, %v763_v58 }
 0x174   :  { %1904 = vst.msk [vmem:[%s3378_s3 + $0x68] sm:$0xf] %vm1877_vm1, %v1854_v55  ;;  %v1704_v61 = vmax.f32 %v1274_v56, %v1620_v52  ;;  %v1038_v52 = vpack.c.b16 %v1013_v39, %v1013_v39 }
 0x175   :  { %2069 = vmatmul.msk.bf16.gmra.mxu0 %vm227_vm0, %v2609_v53  ;;  %2239 = vmatmul.msk.bf16.gmra.mxu1 %vm227_vm0, %v2633_v54  ;;  %v1468_v53 = vpack.c.b16 %v1443_v40, %v1443_v40 }
 0x176   :  { %v1757_v62 = vadd.f32 %v2867_v47, %v1704_v61  ;;  %2409 = vmatmul.msk.bf16.gmra.mxu2 %vm227_vm0, %v2657_v59  ;;  %2579 = vmatmul.msk.bf16.gmra.mxu3 %vm227_vm0, %v2681_v60 }
 0x178   :  { %v1806_v0 = vmax.f32 %v1757_v62, 0.0 }
 0x179   :  { %v1193_v1 = vpop.f32.mrf.mxu2  ;;  %v1623_v2 = vpop.f32.mrf.mxu3 }
 0x17a   :  { %v1855_v3 = vpack.c.bf16 %v1806_v0, %v1806_v0  ;;  %v1275_v4 = vmax.f32 %v845_v63, %v1193_v1  ;;  %v384_v5 = vpop.f32.mrf.mxu0  ;;  %v765_v6 = vpop.f32.mrf.mxu1 }
 0x17b   :  { %v846_v10 = vmax.f32 %v384_v5, %v765_v6 }
 0x17c   :  { %1905 = vst.msk [vmem:[%s3378_s3 + $0x6c] sm:$0xf] %vm1877_vm1, %v1855_v3  ;;  %v1705_v7 = vmax.f32 %v1275_v4, %v1623_v2 }
 0x17e   :  { %v1758_v8 = vadd.f32 %v2867_v47, %v1705_v7 }
 0x180   :  { %v1807_v9 = vmax.f32 %v1758_v8, 0.0 }
 0x181   :  { %v1195_v11 = vpop.f32.mrf.mxu2  ;;  %v1625_v12 = vpop.f32.mrf.mxu3 }
 0x182   :  { %v1856_v15 = vpack.c.bf16 %v1807_v9, %v1807_v9  ;;  %v1276_v16 = vmax.f32 %v846_v10, %v1195_v11  ;;  %v387_v17 = vpop.f32.mrf.mxu0  ;;  %v768_v18 = vpop.f32.mrf.mxu1 }
 0x183   :  { %v847_v23 = vmax.f32 %v387_v17, %v768_v18 }
 0x184   :  { %1906 = vst.msk [vmem:[%s3378_s3 + $0x70] sm:$0xf] %vm1877_vm1, %v1856_v15  ;;  %v1706_v21 = vmax.f32 %v1276_v16, %v1625_v12 }
 0x185   :  { %2070 = vmatmul.msk.bf16.gmra.mxu0 %vm227_vm0, %v2610_v13  ;;  %2240 = vmatmul.msk.bf16.gmra.mxu1 %vm227_vm0, %v2634_v14 }
 0x186   :  { %v1759_v22 = vadd.f32 %v2867_v47, %v1706_v21  ;;  %2410 = vmatmul.msk.bf16.gmra.mxu2 %vm227_vm0, %v2658_v19  ;;  %2580 = vmatmul.msk.bf16.gmra.mxu3 %vm227_vm0, %v2682_v20  ;;  %v3298_v21 = vld [vmem:[%s3377_s2] ss:$0 sm:$0xff] }
 0x188   :  { %v1808_v24 = vmax.f32 %v1759_v22, 0.0 }
 0x189   :  { %v1198_v25 = vpop.f32.mrf.mxu2  ;;  %v1628_v26 = vpop.f32.mrf.mxu3 }
 0x18a   :  { %v1857_v27 = vpack.c.bf16 %v1808_v24, %v1808_v24  ;;  %v1277_v28 = vmax.f32 %v847_v23, %v1198_v25  ;;  %v389_v29 = vpop.f32.mrf.mxu0  ;;  %v770_v30 = vpop.f32.mrf.mxu1 }
 0x18b   :  { %v848_v42 = vmax.f32 %v389_v29, %v770_v30 }
 0x18c   :  { %1907 = vst.msk [vmem:[%s3378_s3 + $0x74] sm:$0xf] %vm1877_vm1, %v1857_v27  ;;  %v1707_v35 = vmax.f32 %v1277_v28, %v1628_v26 }
 0x18e   :  { %v1760_v38 = vadd.f32 %v2867_v47, %v1707_v35 }
 0x190   :  { %v1809_v41 = vmax.f32 %v1760_v38, 0.0 }
 0x191   :  { %v1200_v43 = vpop.f32.mrf.mxu2  ;;  %v1630_v44 = vpop.f32.mrf.mxu3 }
 0x192   :  { %v1858_v48 = vpack.c.bf16 %v1809_v41, %v1809_v41  ;;  %v1278_v49 = vmax.f32 %v848_v42, %v1200_v43  ;;  %v392_v50 = vpop.f32.mrf.mxu0  ;;  %v773_v51 = vpop.f32.mrf.mxu1 }
 0x193   :  { %v849_v56 = vmax.f32 %v392_v50, %v773_v51 }
 0x194   :  { %1908 = vst.msk [vmem:[%s3378_s3 + $0x78] sm:$0xf] %vm1877_vm1, %v1858_v48  ;;  %v1708_v54 = vmax.f32 %v1278_v49, %v1630_v44 }
 0x195   :  { %2071 = vmatmul.msk.bf16.gmra.mxu0 %vm227_vm0, %v196_v45  ;;  %2241 = vmatmul.msk.bf16.gmra.mxu1 %vm227_vm0, %v608_v46 }
 0x196   :  { %v1761_v55 = vadd.f32 %v2867_v47, %v1708_v54  ;;  %2411 = vmatmul.msk.bf16.gmra.mxu2 %vm227_vm0, %v1038_v52  ;;  %2581 = vmatmul.msk.bf16.gmra.mxu3 %vm227_vm0, %v1468_v53 }
 0x198   :  { %v1810_v57 = vmax.f32 %v1761_v55, 0.0 }
 0x199   :  { %v1203_v58 = vpop.f32.mrf.mxu2  ;;  %v1633_v59 = vpop.f32.mrf.mxu3 }
 0x19a   :  { %v1859_v60 = vpack.c.bf16 %v1810_v57, %v1810_v57  ;;  %v1279_v61 = vmax.f32 %v849_v56, %v1203_v58  ;;  %v394_v62 = vpop.f32.mrf.mxu0  ;;  %v775_v63 = vpop.f32.mrf.mxu1 }
 0x19b   :  { %v850_v3 = vmax.f32 %v394_v62, %v775_v63 }
 0x19c   :  { %1909 = vst.msk [vmem:[%s3378_s3 + $0x7c] sm:$0xf] %vm1877_vm1, %v1859_v60  ;;  %v1709_v0 = vmax.f32 %v1279_v61, %v1633_v59 }
 0x19e   :  { %v1762_v1 = vadd.f32 %v2867_v47, %v1709_v0 }
 0x1a0   :  { %v1811_v2 = vmax.f32 %v1762_v1, 0.0 }
 0x1a1   :  { %v1205_v4 = vpop.f32.mrf.mxu2  ;;  %v1635_v5 = vpop.f32.mrf.mxu3 }
 0x1a2   :  { %v1860_v6 = vpack.c.bf16 %v1811_v2, %v1811_v2  ;;  %v1280_v7 = vmax.f32 %v850_v3, %v1205_v4  ;;  %v397_v8 = vpop.f32.mrf.mxu0  ;;  %v778_v9 = vpop.f32.mrf.mxu1 }
 0x1a3   :  { %v851_v12 = vmax.f32 %v397_v8, %v778_v9 }
 0x1a4   :  { %1910 = vst.msk [vmem:[%s3378_s3 + $0x80] sm:$0xf] %vm1877_vm1, %v1860_v6  ;;  %v1710_v10 = vmax.f32 %v1280_v7, %v1635_v5 }
 0x1a6   :  { %v1763_v11 = vadd.f32 %v2867_v47, %v1710_v10 }
 0x1a8   :  { %v1812_v13 = vmax.f32 %v1763_v11, 0.0 }
 0x1a9   :  { %v1208_v14 = vpop.f32.mrf.mxu2  ;;  %v1638_v15 = vpop.f32.mrf.mxu3 }
 0x1aa   :  { %v1861_v16 = vpack.c.bf16 %v1812_v13, %v1812_v13  ;;  %v1281_v17 = vmax.f32 %v851_v12, %v1208_v14  ;;  %v399_v18 = vpop.f32.mrf.mxu0  ;;  %v780_v19 = vpop.f32.mrf.mxu1 }
 0x1ab   :  { %v852_v23 = vmax.f32 %v399_v18, %v780_v19 }
 0x1ac   :  { %1911 = vst.msk [vmem:[%s3378_s3 + $0x84] sm:$0xf] %vm1877_vm1, %v1861_v16  ;;  %v1711_v20 = vmax.f32 %v1281_v17, %v1638_v15 }
 0x1ae   :  { %v1764_v47 = vadd.f32 %v3298_v21, %v1711_v20 }
 0x1b0   :  { %v1813_v22 = vmax.f32 %v1764_v47, 0.0 }
 0x1b1   :  { %v1210_v24 = vpop.f32.mrf.mxu2  ;;  %v1640_v25 = vpop.f32.mrf.mxu3 }
 0x1b2   :  { %v1862_v26 = vpack.c.bf16 %v1813_v22, %v1813_v22  ;;  %v1282_v27 = vmax.f32 %v852_v23, %v1210_v24  ;;  %v402_v28 = vpop.f32.mrf.mxu0  ;;  %v783_v29 = vpop.f32.mrf.mxu1 }
 0x1b3   :  { %v853_v32 = vmax.f32 %v402_v28, %v783_v29 }
 0x1b4   :  { %1912 = vst.msk [vmem:[%s3378_s3 + $0x88] sm:$0xf] %vm1877_vm1, %v1862_v26  ;;  %v1712_v30 = vmax.f32 %v1282_v27, %v1640_v25 }
 0x1b6   :  { %v1765_v31 = vadd.f32 %v3298_v21, %v1712_v30 }
 0x1b8   :  { %v1814_v33 = vmax.f32 %v1765_v31, 0.0 }
 0x1b9   :  { %v1213_v34 = vpop.f32.mrf.mxu2  ;;  %v1643_v35 = vpop.f32.mrf.mxu3 }
 0x1ba   :  { %v1863_v36 = vpack.c.bf16 %v1814_v33, %v1814_v33  ;;  %v1283_v37 = vmax.f32 %v853_v32, %v1213_v34  ;;  %v404_v38 = vpop.f32.mrf.mxu0  ;;  %v785_v39 = vpop.f32.mrf.mxu1 }
 0x1bb   :  { %v854_v43 = vmax.f32 %v404_v38, %v785_v39 }
 0x1bc   :  { %1913 = vst.msk [vmem:[%s3378_s3 + $0x8c] sm:$0xf] %vm1877_vm1, %v1863_v36  ;;  %v1713_v40 = vmax.f32 %v1283_v37, %v1643_v35 }
 0x1be   :  { %v1766_v41 = vadd.f32 %v3298_v21, %v1713_v40 }
 0x1c0   :  { %v1815_v42 = vmax.f32 %v1766_v41, 0.0 }
 0x1c1   :  { %v1215_v44 = vpop.f32.mrf.mxu2  ;;  %v1645_v45 = vpop.f32.mrf.mxu3 }
 0x1c2   :  { %v1864_v46 = vpack.c.bf16 %v1815_v42, %v1815_v42  ;;  %v1284_v48 = vmax.f32 %v854_v43, %v1215_v44  ;;  %v407_v49 = vpop.f32.mrf.mxu0  ;;  %v788_v50 = vpop.f32.mrf.mxu1 }
 0x1c3   :  { %v855_v53 = vmax.f32 %v407_v49, %v788_v50 }
 0x1c4   :  { %1914 = vst.msk [vmem:[%s3378_s3 + $0x90] sm:$0xf] %vm1877_vm1, %v1864_v46  ;;  %v1714_v51 = vmax.f32 %v1284_v48, %v1645_v45 }
 0x1c6   :  { %v1767_v52 = vadd.f32 %v3298_v21, %v1714_v51 }
 0x1c8   :  { %v1816_v54 = vmax.f32 %v1767_v52, 0.0 }
 0x1c9   :  { %v1218_v55 = vpop.f32.mrf.mxu2  ;;  %v1648_v56 = vpop.f32.mrf.mxu3 }
 0x1ca   :  { %v1865_v57 = vpack.c.bf16 %v1816_v54, %v1816_v54  ;;  %v1285_v58 = vmax.f32 %v855_v53, %v1218_v55  ;;  %v409_v59 = vpop.f32.mrf.mxu0  ;;  %v790_v60 = vpop.f32.mrf.mxu1 }
 0x1cb   :  { %v856_v0 = vmax.f32 %v409_v59, %v790_v60 }
 0x1cc   :  { %1915 = vst.msk [vmem:[%s3378_s3 + $0x94] sm:$0xf] %vm1877_vm1, %v1865_v57  ;;  %v1715_v61 = vmax.f32 %v1285_v58, %v1648_v56 }
 0x1ce   :  { %v1768_v62 = vadd.f32 %v3298_v21, %v1715_v61 }
 0x1d0   :  { %v1817_v63 = vmax.f32 %v1768_v62, 0.0 }
 0x1d1   :  { %v1220_v1 = vpop.f32.mrf.mxu2  ;;  %v1650_v2 = vpop.f32.mrf.mxu3 }
 0x1d2   :  { %v1866_v3 = vpack.c.bf16 %v1817_v63, %v1817_v63  ;;  %v1286_v4 = vmax.f32 %v856_v0, %v1220_v1  ;;  %v412_v5 = vpop.f32.mrf.mxu0  ;;  %v793_v6 = vpop.f32.mrf.mxu1 }
 0x1d3   :  { %v857_v9 = vmax.f32 %v412_v5, %v793_v6 }
 0x1d4   :  { %1916 = vst.msk [vmem:[%s3378_s3 + $0x98] sm:$0xf] %vm1877_vm1, %v1866_v3  ;;  %v1716_v7 = vmax.f32 %v1286_v4, %v1650_v2 }
 0x1d6   :  { %v1769_v8 = vadd.f32 %v3298_v21, %v1716_v7 }
 0x1d8   :  { %v1818_v10 = vmax.f32 %v1769_v8, 0.0 }
 0x1d9   :  { %v1223_v11 = vpop.f32.mrf.mxu2  ;;  %v1653_v12 = vpop.f32.mrf.mxu3 }
 0x1da   :  { %v1867_v13 = vpack.c.bf16 %v1818_v10, %v1818_v10  ;;  %v1287_v14 = vmax.f32 %v857_v9, %v1223_v11  ;;  %v414_v15 = vpop.f32.mrf.mxu0  ;;  %v795_v16 = vpop.f32.mrf.mxu1 }
 0x1db   :  { %v858_v20 = vmax.f32 %v414_v15, %v795_v16 }
 0x1dc   :  { %1917 = vst.msk [vmem:[%s3378_s3 + $0x9c] sm:$0xf] %vm1877_vm1, %v1867_v13  ;;  %v1717_v17 = vmax.f32 %v1287_v14, %v1653_v12 }
 0x1de   :  { %v1770_v18 = vadd.f32 %v3298_v21, %v1717_v17 }
 0x1e0   :  { %v1819_v19 = vmax.f32 %v1770_v18, 0.0 }
 0x1e1   :  { %v1225_v47 = vpop.f32.mrf.mxu2  ;;  %v1655_v22 = vpop.f32.mrf.mxu3 }
 0x1e2   :  { %v1868_v23 = vpack.c.bf16 %v1819_v19, %v1819_v19  ;;  %v1288_v24 = vmax.f32 %v858_v20, %v1225_v47  ;;  %v417_v25 = vpop.f32.mrf.mxu0  ;;  %v798_v26 = vpop.f32.mrf.mxu1 }
 0x1e3   :  { %v859_v29 = vmax.f32 %v417_v25, %v798_v26 }
 0x1e4   :  { %1918 = vst.msk [vmem:[%s3378_s3 + $0xa0] sm:$0xf] %vm1877_vm1, %v1868_v23  ;;  %v1718_v27 = vmax.f32 %v1288_v24, %v1655_v22 }
 0x1e6   :  { %v1771_v28 = vadd.f32 %v3298_v21, %v1718_v27 }
 0x1e8   :  { %v1820_v30 = vmax.f32 %v1771_v28, 0.0 }
 0x1e9   :  { %v1228_v31 = vpop.f32.mrf.mxu2  ;;  %v1658_v32 = vpop.f32.mrf.mxu3 }
 0x1ea   :  { %v1869_v33 = vpack.c.bf16 %v1820_v30, %v1820_v30  ;;  %v1289_v34 = vmax.f32 %v859_v29, %v1228_v31  ;;  %v419_v35 = vpop.f32.mrf.mxu0  ;;  %v800_v36 = vpop.f32.mrf.mxu1 }
 0x1eb   :  { %v860_v40 = vmax.f32 %v419_v35, %v800_v36 }
 0x1ec   :  { %1919 = vst.msk [vmem:[%s3378_s3 + $0xa4] sm:$0xf] %vm1877_vm1, %v1869_v33  ;;  %v1719_v37 = vmax.f32 %v1289_v34, %v1658_v32 }
 0x1ee   :  { %v1772_v38 = vadd.f32 %v3298_v21, %v1719_v37 }
 0x1f0   :  { %v1821_v39 = vmax.f32 %v1772_v38, 0.0 }
 0x1f1   :  { %v1230_v41 = vpop.f32.mrf.mxu2  ;;  %v1660_v42 = vpop.f32.mrf.mxu3 }
 0x1f2   :  { %v1870_v43 = vpack.c.bf16 %v1821_v39, %v1821_v39  ;;  %v1290_v44 = vmax.f32 %v860_v40, %v1230_v41  ;;  %v422_v45 = vpop.f32.mrf.mxu0  ;;  %v803_v46 = vpop.f32.mrf.mxu1 }
 0x1f3   :  { %v861_v50 = vmax.f32 %v422_v45, %v803_v46 }
 0x1f4   :  { %1920 = vst.msk [vmem:[%s3378_s3 + $0xa8] sm:$0xf] %vm1877_vm1, %v1870_v43  ;;  %v1720_v48 = vmax.f32 %v1290_v44, %v1660_v42 }
 0x1f6   :  { %v1773_v49 = vadd.f32 %v3298_v21, %v1720_v48 }
 0x1f8   :  { %v1822_v51 = vmax.f32 %v1773_v49, 0.0 }
 0x1f9   :  { %v1233_v52 = vpop.f32.mrf.mxu2  ;;  %v1663_v53 = vpop.f32.mrf.mxu3 }
 0x1fa   :  { %v1871_v54 = vpack.c.bf16 %v1822_v51, %v1822_v51  ;;  %v1291_v55 = vmax.f32 %v861_v50, %v1233_v52  ;;  %v424_v56 = vpop.f32.mrf.mxu0  ;;  %v805_v57 = vpop.f32.mrf.mxu1 }
 0x1fb   :  { %v862_v61 = vmax.f32 %v424_v56, %v805_v57 }
 0x1fc   :  { %1921 = vst.msk [vmem:[%s3378_s3 + $0xac] sm:$0xf] %vm1877_vm1, %v1871_v54  ;;  %v1721_v58 = vmax.f32 %v1291_v55, %v1663_v53 }
 0x1fe   :  { %v1774_v59 = vadd.f32 %v3298_v21, %v1721_v58 }
 0x200   :  { %v1823_v60 = vmax.f32 %v1774_v59, 0.0 }
 0x201   :  { %v1235_v62 = vpop.f32.mrf.mxu2  ;;  %v1665_v63 = vpop.f32.mrf.mxu3 }
 0x202   :  { %v1872_v0 = vpack.c.bf16 %v1823_v60, %v1823_v60  ;;  %v1292_v1 = vmax.f32 %v862_v61, %v1235_v62  ;;  %v427_v2 = vpop.f32.mrf.mxu0  ;;  %v808_v3 = vpop.f32.mrf.mxu1 }
 0x203   :  { %v863_v6 = vmax.f32 %v427_v2, %v808_v3 }
 0x204   :  { %1922 = vst.msk [vmem:[%s3378_s3 + $0xb0] sm:$0xf] %vm1877_vm1, %v1872_v0  ;;  %v1722_v4 = vmax.f32 %v1292_v1, %v1665_v63 }
 0x206   :  { %v1775_v5 = vadd.f32 %v3298_v21, %v1722_v4 }
 0x208   :  { %v1824_v7 = vmax.f32 %v1775_v5, 0.0 }
 0x209   :  { %v1238_v8 = vpop.f32.mrf.mxu2  ;;  %v1668_v9 = vpop.f32.mrf.mxu3 }
 0x20a   :  { %v1873_v10 = vpack.c.bf16 %v1824_v7, %v1824_v7  ;;  %v1293_v11 = vmax.f32 %v863_v6, %v1238_v8  ;;  %v429_v12 = vpop.f32.mrf.mxu0  ;;  %v810_v13 = vpop.f32.mrf.mxu1 }
 0x20b   :  { %v864_v17 = vmax.f32 %v429_v12, %v810_v13 }
 0x20c   :  { %1923 = vst.msk [vmem:[%s3378_s3 + $0xb4] sm:$0xf] %vm1877_vm1, %v1873_v10  ;;  %v1723_v14 = vmax.f32 %v1293_v11, %v1668_v9 }
 0x20e   :  { %v1776_v15 = vadd.f32 %v3298_v21, %v1723_v14 }
 0x210   :  { %v1825_v16 = vmax.f32 %v1776_v15, 0.0 }
 0x211   :  { %v1240_v18 = vpop.f32.mrf.mxu2  ;;  %v1670_v19 = vpop.f32.mrf.mxu3 }
 0x212   :  { %v1874_v20 = vpack.c.bf16 %v1825_v16, %v1825_v16  ;;  %v1294_v47 = vmax.f32 %v864_v17, %v1240_v18  ;;  %v432_v22 = vpop.f32.mrf.mxu0  ;;  %v813_v23 = vpop.f32.mrf.mxu1 }
 0x213   :  { %v865_v26 = vmax.f32 %v432_v22, %v813_v23 }
 0x214   :  { %1924 = vst.msk [vmem:[%s3378_s3 + $0xb8] sm:$0xf] %vm1877_vm1, %v1874_v20  ;;  %v1724_v24 = vmax.f32 %v1294_v47, %v1670_v19 }
 0x216   :  { %v1777_v25 = vadd.f32 %v3298_v21, %v1724_v24 }
 0x218   :  { %v1826_v27 = vmax.f32 %v1777_v25, 0.0 }
 0x219   :  { %v1243_v28 = vpop.f32.mrf.mxu2  ;;  %v1673_v29 = vpop.f32.mrf.mxu3 }
 0x21a   :  { %v1875_v30 = vpack.c.bf16 %v1826_v27, %v1826_v27  ;;  %v1295_v31 = vmax.f32 %v865_v26, %v1243_v28  ;;  %v434_v32 = vpop.f32.mrf.mxu0  ;;  %v815_v33 = vpop.f32.mrf.mxu1 }
 0x21c   :  { %1925 = vst.msk [vmem:[%s3378_s3 + $0xbc] sm:$0xf] %vm1877_vm1, %v1875_v30  ;;  %v1725_v34 = vmax.f32 %v1295_v31, %v1673_v29 }
 0x21e   :  { %v1778_v35 = vadd.f32 %v3298_v21, %v1725_v34 }
 0x220   :  { %v1827_v36 = vmax.f32 %v1778_v35, 0.0 }
 0x221   :  { %v1245_v37 = vpop.f32.mrf.mxu2  ;;  %v1675_v38 = vpop.f32.mrf.mxu3 }
 0x222   :  { %v1876_v39 = vpack.c.bf16 %v1827_v36, %v1827_v36 }
 0x224   :  { %1926 = vst.msk [vmem:[%s3378_s3 + $0xc0] sm:$0xf] %vm1877_vm1, %v1876_v39 }

// kernel: net_forward.5
= control target key start
LH: loop header
LB: loop body
LE: loop exit
PB: predicated region body
PF: predicated region fallthrough
CT: control target
= control target key end

     0   :  { %s1843_s0 = inlined_call_operand.vmem [shape: bf16[2,1280], index: 0, kind: input, shape index: {}]   ;;  %s1844_s1 = inlined_call_operand.vmem [shape: bf16[1280,120], index: 1, kind: input, shape index: {}]   ;;  %s1845_s2 = inlined_call_operand.vmem [shape: f32[1,120], index: 2, kind: input, shape index: {}]   ;;  %s1846_s3 = inlined_call_operand.vmem [shape: bf16[120,84], index: 3, kind: input, shape index: {}]   ;;  %s1847_s4 = inlined_call_operand.vmem [shape: f32[1,84], index: 4, kind: input, shape index: {}]   ;;  %s1848_s5 = inlined_call_operand.vmem [shape: bf16[84,2], index: 5, kind: input, shape index: {}]   ;;  %s1849_s6 = inlined_call_operand.vmem [shape: f32[1,2], index: 6, kind: input, shape index: {}]   ;;  %s1850_s7 = inlined_call_operand.hbm [shape: f32[2,2], index: 7, kind: output, shape index: {}]  }
   0x1   :  { %v1381_v0 = vld [vmem:[%s1844_s1 + $0x38] sm:$0xff]  ;;  %v1380_v4 = vld [vmem:[%s1844_s1 + $0x30] sm:$0xff]  ;;  %v1379_v8 = vld [vmem:[%s1844_s1 + $0x28] sm:$0xff] }
   0x2   :  { %v1389_v1 = vld [vmem:[%s1844_s1 + $0x78] sm:$0xff]  ;;  %698 = vmatpush.bf16.msra.mxu0 %v1381_v0  ;;  %v1388_v5 = vld [vmem:[%s1844_s1 + $0x70] sm:$0xff]  ;;  %v1387_v9 = vld [vmem:[%s1844_s1 + $0x68] sm:$0xff] }
   0x3   :  { %v1397_v2 = vld [vmem:[%s1844_s1 + $0xb8] sm:$0xff]  ;;  %711 = vmatpush.bf16.msra.mxu1 %v1389_v1  ;;  %v1396_v6 = vld [vmem:[%s1844_s1 + $0xb0] sm:$0xff]  ;;  %v1395_v10 = vld [vmem:[%s1844_s1 + $0xa8] sm:$0xff] }
   0x4   :  { %v1405_v3 = vld [vmem:[%s1844_s1 + $0xf8] sm:$0xff]  ;;  %724 = vmatpush.bf16.msra.mxu2 %v1397_v2  ;;  %v1404_v7 = vld [vmem:[%s1844_s1 + $0xf0] sm:$0xff]  ;;  %v1403_v11 = vld [vmem:[%s1844_s1 + $0xe8] sm:$0xff] }
   0x5   :  { %737 = vmatpush.bf16.msra.mxu3 %v1405_v3  ;;  %v1378_v12 = vld [vmem:[%s1844_s1 + $0x20] sm:$0xff]  ;;  %v1377_v16 = vld [vmem:[%s1844_s1 + $0x18] sm:$0xff]  ;;  %v1376_v21 = vld [vmem:[%s1844_s1 + $0x10] sm:$0xff] }
   0x6   :  { %699 = vmatpush.bf16.msra.mxu0 %v1380_v4  ;;  %v1386_v13 = vld [vmem:[%s1844_s1 + $0x60] sm:$0xff]  ;;  %v1385_v17 = vld [vmem:[%s1844_s1 + $0x58] sm:$0xff]  ;;  %v1384_v22 = vld [vmem:[%s1844_s1 + $0x50] sm:$0xff] }
   0x7   :  { %712 = vmatpush.bf16.msra.mxu1 %v1388_v5  ;;  %v1394_v14 = vld [vmem:[%s1844_s1 + $0xa0] sm:$0xff]  ;;  %v1393_v18 = vld [vmem:[%s1844_s1 + $0x98] sm:$0xff]  ;;  %v1392_v23 = vld [vmem:[%s1844_s1 + $0x90] sm:$0xff] }
   0x8   :  { %725 = vmatpush.bf16.msra.mxu2 %v1396_v6  ;;  %v1402_v15 = vld [vmem:[%s1844_s1 + $0xe0] sm:$0xff]  ;;  %v1401_v19 = vld [vmem:[%s1844_s1 + $0xd8] sm:$0xff]  ;;  %v1400_v24 = vld [vmem:[%s1844_s1 + $0xd0] sm:$0xff] }
   0x9   :  { %738 = vmatpush.bf16.msra.mxu3 %v1404_v7  ;;  %v28_v20 = vld [vmem:[%s1843_s0] sm:$0xff] }
   0xa   :  { %700 = vmatpush.bf16.msra.mxu0 %v1379_v8  ;;  %195 = vst [vmem:[#allocation1] ss:$9 sm:$0xff] %v28_v20 }
   0xb   :  { %713 = vmatpush.bf16.msra.mxu1 %v1387_v9 }
   0xc   :  { %726 = vmatpush.bf16.msra.mxu2 %v1395_v10 }
   0xd   :  { %739 = vmatpush.bf16.msra.mxu3 %v1403_v11 }
   0xe   :  { %701 = vmatpush.bf16.msra.mxu0 %v1378_v12 }
   0xf   :  { %714 = vmatpush.bf16.msra.mxu1 %v1386_v13 }
  0x10   :  { %727 = vmatpush.bf16.msra.mxu2 %v1394_v14 }
  0x11   :  { %740 = vmatpush.bf16.msra.mxu3 %v1402_v15 }
  0x12   :  { %702 = vmatpush.bf16.msra.mxu0 %v1377_v16 }
  0x13   :  { %715 = vmatpush.bf16.msra.mxu1 %v1385_v17 }
  0x14   :  { %728 = vmatpush.bf16.msra.mxu2 %v1393_v18 }
  0x15   :  { %741 = vmatpush.bf16.msra.mxu3 %v1401_v19 }
  0x16   :  { %12 = vsyncpa [#allocation3], 0  ;;  %703 = vmatpush.bf16.msra.mxu0 %v1376_v21  ;;  %v1375_v25 = vld [vmem:[%s1844_s1 + $0x8] sm:$0xff]  ;;  %v1374_v29 = vld [vmem:[%s1844_s1] sm:$0xff]  ;;  %vm898_vm0 = vcmask 1043456   ;;  %vm969_vm1 = vcmask 1041408  }
  0x17   :  { %716 = vmatpush.bf16.msra.mxu1 %v1384_v22  ;;  %v1383_v26 = vld [vmem:[%s1844_s1 + $0x48] sm:$0xff]  ;;  %v1382_v30 = vld [vmem:[%s1844_s1 + $0x40] sm:$0xff]  ;;  %v1413_v31 = vld [vmem:[%s1844_s1 + $0x138] sm:$0xff]  ;;  %vm894_vm2 = vcmask 982016   ;;  %vm965_vm3 = vcmask 687104   ;;  %s1496_s29 = smov [#allocation2]  }
  0x18   :  { %729 = vmatpush.bf16.msra.mxu2 %v1392_v23  ;;  %v1391_v27 = vld [vmem:[%s1844_s1 + $0x88] sm:$0xff]  ;;  %v1421_v32 = vld [vmem:[%s1844_s1 + $0x178] sm:$0xff]  ;;  %v1390_v33 = vld [vmem:[%s1844_s1 + $0x80] sm:$0xff]  ;;  %s993_s30 = sshll.u32 %s1496_s29, 4  ;;  %s995_s9 = sshll.u32 %s1850_s7, 4  ;;  %vm986_vm4 = vcmask 9216   ;;  %s994_s30 = int_to_ptr.vmem [resolvable:$true] %s993_s30  ;;  %s996_s9 = int_to_ptr.hbm [resolvable:$true] %s995_s9 }
  0x19   :  { %742 = vmatpush.bf16.msra.mxu3 %v1400_v24  ;;  %v1399_v28 = vld [vmem:[%s1844_s1 + $0xc8] sm:$0xff]  ;;  %v1398_v34 = vld [vmem:[%s1844_s1 + $0xc0] sm:$0xff]  ;;  %v1429_v35 = vld [vmem:[%s1844_s1 + $0x1b8] sm:$0xff] }
  0x1a   :  { %704 = vmatpush.bf16.msra.mxu0 %v1375_v25  ;;  %v1437_v36 = vld [vmem:[%s1844_s1 + $0x1f8] sm:$0xff]  ;;  %v1412_v37 = vld [vmem:[%s1844_s1 + $0x130] sm:$0xff]  ;;  %v196_v39 = vld [vmem:[#allocation1] sm:$0xff] }
  0x1b   :  { %717 = vmatpush.bf16.msra.mxu1 %v1383_v26  ;;  %v1420_v38 = vld [vmem:[%s1844_s1 + $0x170] sm:$0xff]  ;;  %v199_v44 = vld [vmem:[#allocation1 + $0x1b] sm:$0xff]  ;;  %v1411_v45 = vld [vmem:[%s1844_s1 + $0x128] sm:$0xff] }
  0x1c   :  { %730 = vmatpush.bf16.msra.mxu2 %v1391_v27  ;;  %v197_v40 = vld [vmem:[#allocation1 + $0x9] sm:$0xff]  ;;  %v198_v43 = vld [vmem:[#allocation1 + $0x12] sm:$0xff]  ;;  %v1668_v49 = vld [vmem:[#allocation1 + $0x3f] sm:$0xff] }
  0x1d   :  { %743 = vmatpush.bf16.msra.mxu3 %v1399_v28  ;;  %v1428_v41 = vld [vmem:[%s1844_s1 + $0x1b0] sm:$0xff]  ;;  %v1419_v46 = vld [vmem:[%s1844_s1 + $0x168] sm:$0xff]  ;;  %v1410_v54 = vld [vmem:[%s1844_s1 + $0x120] sm:$0xff] }
  0x1e   :  { %705 = vmatpush.bf16.msra.mxu0 %v1374_v29  ;;  %v1436_v42 = vld [vmem:[%s1844_s1 + $0x1f0] sm:$0xff]  ;;  %v200_v48 = vld [vmem:[#allocation1 + $0x24] sm:$0xff]  ;;  %v1409_v58 = vld [vmem:[%s1844_s1 + $0x118] sm:$0xff] }
  0x1f   :  { %718 = vmatpush.bf16.msra.mxu1 %v1382_v30  ;;  %v1666_v47 = vld [vmem:[#allocation1 + $0x36] sm:$0xff]  ;;  %v29_v50 = vld [vmem:[%s1843_s0 + $0x8] sm:$0x3]  ;;  %v201_v51 = vld [vmem:[#allocation1 + $0x2d] sm:$0xff] }
  0x20   :  { %731 = vmatpush.bf16.msra.mxu2 %v1390_v33  ;;  %v1427_v52 = vld [vmem:[%s1844_s1 + $0x1a8] sm:$0xff]  ;;  %205 = vst [vmem:[#allocation1] ss:$9 sm:$0xff] %v29_v50  ;;  %v1418_v55 = vld [vmem:[%s1844_s1 + $0x160] sm:$0xff]  ;;  %v1417_v59 = vld [vmem:[%s1844_s1 + $0x158] sm:$0xff] }
  0x21   :  { %744 = vmatpush.bf16.msra.mxu3 %v1398_v34  ;;  %706 = vmatmul.bf16.vlgmr.msra.gmra.mxu0 %v196_v39  ;;  %v1435_v53 = vld [vmem:[%s1844_s1 + $0x1e8] sm:$0xff]  ;;  %v1426_v56 = vld [vmem:[%s1844_s1 + $0x1a0] sm:$0xff]  ;;  %v1425_v60 = vld [vmem:[%s1844_s1 + $0x198] sm:$0xff] }
  0x22   :  { %750 = vmatpush.bf16.msrb.mxu0 %v1413_v31  ;;  %719 = vmatmul.bf16.vlgmr.msra.gmra.mxu1 %v197_v40  ;;  %v1434_v57 = vld [vmem:[%s1844_s1 + $0x1e0] sm:$0xff]  ;;  %v1433_v61 = vld [vmem:[%s1844_s1 + $0x1d8] sm:$0xff]  ;;  %v1408_v62 = vld [vmem:[%s1844_s1 + $0x110] sm:$0xff] }
  0x23   :  { %763 = vmatpush.bf16.msrb.mxu1 %v1421_v32  ;;  %732 = vmatmul.bf16.vlgmr.msra.gmra.mxu2 %v198_v43  ;;  %v1416_v63 = vld [vmem:[%s1844_s1 + $0x150] sm:$0xff]  ;;  %v1407_v2 = vld [vmem:[%s1844_s1 + $0x108] sm:$0xff]  ;;  %v1406_v6 = vld [vmem:[%s1844_s1 + $0x100] sm:$0xff] }
  0x24   :  { %776 = vmatpush.bf16.msrb.mxu2 %v1429_v35  ;;  %745 = vmatmul.bf16.vlgmr.msra.gmra.mxu3 %v199_v44  ;;  %v1424_v0 = vld [vmem:[%s1844_s1 + $0x190] sm:$0xff]  ;;  %v1415_v3 = vld [vmem:[%s1844_s1 + $0x148] sm:$0xff]  ;;  %v1414_v7 = vld [vmem:[%s1844_s1 + $0x140] sm:$0xff] }
  0x25   :  { %789 = vmatpush.bf16.msrb.mxu3 %v1437_v36  ;;  %v1432_v1 = vld [vmem:[%s1844_s1 + $0x1d0] sm:$0xff]  ;;  %v1423_v4 = vld [vmem:[%s1844_s1 + $0x188] sm:$0xff]  ;;  %v1445_v8 = vld [vmem:[%s1844_s1 + $0x238] sm:$0xff] }
  0x26   :  { %751 = vmatpush.bf16.msrb.mxu0 %v1412_v37  ;;  %v1431_v5 = vld [vmem:[%s1844_s1 + $0x1c8] sm:$0xff]  ;;  %v1453_v9 = vld [vmem:[%s1844_s1 + $0x278] sm:$0xff]  ;;  %v1422_v10 = vld [vmem:[%s1844_s1 + $0x180] sm:$0xff] }
  0x27   :  { %764 = vmatpush.bf16.msrb.mxu1 %v1420_v38  ;;  %v1430_v11 = vld [vmem:[%s1844_s1 + $0x1c0] sm:$0xff]  ;;  %v1444_v12 = vld [vmem:[%s1844_s1 + $0x230] sm:$0xff]  ;;  %v1443_v14 = vld [vmem:[%s1844_s1 + $0x228] sm:$0xff] }
  0x28   :  { %777 = vmatpush.bf16.msrb.mxu2 %v1428_v41  ;;  %v1452_v13 = vld [vmem:[%s1844_s1 + $0x270] sm:$0xff]  ;;  %v1451_v15 = vld [vmem:[%s1844_s1 + $0x268] sm:$0xff]  ;;  %v1442_v16 = vld [vmem:[%s1844_s1 + $0x220] sm:$0xff] }
  0x29   :  { %790 = vmatpush.bf16.msrb.mxu3 %v1436_v42  ;;  %v1450_v17 = vld [vmem:[%s1844_s1 + $0x260] sm:$0xff]  ;;  %v1441_v18 = vld [vmem:[%s1844_s1 + $0x218] sm:$0xff]  ;;  %v1440_v20 = vld [vmem:[%s1844_s1 + $0x210] sm:$0xff] }
  0x2a   :  { %752 = vmatpush.bf16.msrb.mxu0 %v1411_v45  ;;  %v1449_v19 = vld [vmem:[%s1844_s1 + $0x258] sm:$0xff]  ;;  %v1448_v21 = vld [vmem:[%s1844_s1 + $0x250] sm:$0xff]  ;;  %v1439_v22 = vld [vmem:[%s1844_s1 + $0x208] sm:$0xff] }
  0x2b   :  { %765 = vmatpush.bf16.msrb.mxu1 %v1419_v46  ;;  %v1447_v23 = vld [vmem:[%s1844_s1 + $0x248] sm:$0xff]  ;;  %v1438_v24 = vld [vmem:[%s1844_s1 + $0x200] sm:$0xff]  ;;  %v844_v28 = vld [vmem:[%s1846_s3 + $0x38] sm:$0xf] }
  0x2c   :  { %778 = vmatpush.bf16.msrb.mxu2 %v1427_v52  ;;  %v1446_v25 = vld [vmem:[%s1844_s1 + $0x240] sm:$0xff]  ;;  %v207_v27 = vld [vmem:[#allocation1 + $0x9] sm:$0xff]  ;;  %v878_v29 = vunpack.c.l.b16 %v844_v28  ;;  %v1457_v41 = vld [vmem:[%s1846_s3 + $0x18] sm:$0xff] }
  0x2d   :  { %791 = vmatpush.bf16.msrb.mxu3 %v1435_v53  ;;  %v206_v26 = vld [vmem:[#allocation1] sm:$0xff]  ;;  %v1460_v34 = vld [vmem:[%s1846_s3 + $0x30] sm:$0xff]  ;;  %v1459_v37 = vld [vmem:[%s1846_s3 + $0x28] sm:$0xff] }
  0x2e   :  { %753 = vmatpush.bf16.msrb.mxu0 %v1410_v54  ;;  %v886_v32 = vpack.c.b16 %v878_v29, %v878_v29  ;;  %v1458_v40 = vld [vmem:[%s1846_s3 + $0x20] sm:$0xff]  ;;  %v1456_v44 = vld [vmem:[%s1846_s3 + $0x10] sm:$0xff]  ;;  %v1455_v46 = vld [vmem:[%s1846_s3 + $0x8] sm:$0xff] }
  0x2f   :  { %766 = vmatpush.bf16.msrb.mxu1 %v1418_v55  ;;  %v1467_v45 = vld [vmem:[%s1845_s2] ss:$0 sm:$0xff]  ;;  %v927_v52 = vld [vmem:[%s1848_s5 + $0x28] sm:$0x3] }
  0x30   :  { %779 = vmatpush.bf16.msrb.mxu2 %v1426_v56  ;;  %v900_v33 = vsel %vm898_vm0, %v886_v32, 0  ;;  %v1454_v50 = vld [vmem:[%s1846_s3] sm:$0xff]  ;;  %v953_v53 = vunpack.c.l.b16 %v927_v52 }
  0x31   :  { %792 = vmatpush.bf16.msrb.mxu3 %v1434_v57 }
  0x32   :  { %754 = vmatpush.bf16.msrb.mxu0 %v1409_v58 }
  0x33   :  { %767 = vmatpush.bf16.msrb.mxu1 %v1417_v59  ;;  %v959_v59 = vpack.c.b16 %v953_v53, %v953_v53 }
  0x34   :  { %780 = vmatpush.bf16.msrb.mxu2 %v1425_v60 }
  0x35   :  { %793 = vmatpush.bf16.msrb.mxu3 %v1433_v61  ;;  %v971_v60 = vsel %vm969_vm1, %v959_v59, 0 }
  0x36   :  { %755 = vmatpush.bf16.msrb.mxu0 %v1408_v62  ;;  %v1465_v62 = vld [vmem:[%s1848_s5 + $0x20] sm:$0xff] }
  0x37   :  { %768 = vmatpush.bf16.msrb.mxu1 %v1416_v63 }
  0x38   :  { %781 = vmatpush.bf16.msrb.mxu2 %v1424_v0  ;;  %v1464_v0 = vld [vmem:[%s1848_s5 + $0x18] sm:$0xff] }
  0x39   :  { %794 = vmatpush.bf16.msrb.mxu3 %v1432_v1 }
  0x3a   :  { %756 = vmatpush.bf16.msrb.mxu0 %v1407_v2 }
  0x3b   :  { %769 = vmatpush.bf16.msrb.mxu1 %v1415_v3 }
  0x3c   :  { %782 = vmatpush.bf16.msrb.mxu2 %v1423_v4  ;;  %v1463_v4 = vld [vmem:[%s1848_s5 + $0x10] sm:$0xff] }
  0x3d   :  { %795 = vmatpush.bf16.msrb.mxu3 %v1431_v5 }
  0x3e   :  { %757 = vmatpush.bf16.msrb.mxu0 %v1406_v6 }
  0x3f   :  { %770 = vmatpush.bf16.msrb.mxu1 %v1414_v7 }
  0x40   :  { %783 = vmatpush.bf16.msrb.mxu2 %v1422_v10 }
  0x41   :  { %796 = vmatpush.bf16.msrb.mxu3 %v1430_v11  ;;  %758 = vmatmul.bf16.vlgmr.msrb.gmra.mxu0 %v200_v48 }
  0x42   :  { %802 = vmatpush.bf16.msra.mxu0 %v1445_v8  ;;  %771 = vmatmul.bf16.vlgmr.msrb.gmra.mxu1 %v201_v51 }
  0x43   :  { %815 = vmatpush.bf16.msra.mxu1 %v1453_v9  ;;  %784 = vmatmul.bf16.vlgmr.msrb.gmra.mxu2 %v1666_v47 }
  0x44   :  { %797 = vmatmul.bf16.vlgmr.msrb.gmra.mxu3 %v1668_v49  ;;  %902 = vmatpush.bf16.msra.mxu2 %v900_v33 }
  0x45   :  { %975 = vmatpush.bf16.msra.mxu3 %v971_v60 }
  0x46   :  { %803 = vmatpush.bf16.msra.mxu0 %v1444_v12 }
  0x47   :  { %816 = vmatpush.bf16.msra.mxu1 %v1452_v13 }
  0x48   :  { %903 = vmatpush.bf16.msra.mxu2 %v1460_v34 }
  0x49   :  { %976 = vmatpush.bf16.msra.mxu3 %v1465_v62 }
  0x4a   :  { %804 = vmatpush.bf16.msra.mxu0 %v1443_v14 }
  0x4b   :  { %817 = vmatpush.bf16.msra.mxu1 %v1451_v15  ;;  %v1462_v15 = vld [vmem:[%s1848_s5 + $0x8] sm:$0xff] }
  0x4c   :  { %904 = vmatpush.bf16.msra.mxu2 %v1459_v37 }
  0x4d   :  { %977 = vmatpush.bf16.msra.mxu3 %v1464_v0 }
  0x4e   :  { %805 = vmatpush.bf16.msra.mxu0 %v1442_v16  ;;  %v1461_v16 = vld [vmem:[%s1848_s5] sm:$0xff] }
  0x4f   :  { %818 = vmatpush.bf16.msra.mxu1 %v1450_v17  ;;  %v1468_v17 = vld [vmem:[%s1847_s4] ss:$0 sm:$0xff] }
  0x50   :  { %905 = vmatpush.bf16.msra.mxu2 %v1458_v40 }
  0x51   :  { %978 = vmatpush.bf16.msra.mxu3 %v1463_v4 }
  0x52   :  { %806 = vmatpush.bf16.msra.mxu0 %v1441_v18 }
  0x53   :  { %819 = vmatpush.bf16.msra.mxu1 %v1449_v19 }
  0x54   :  { %906 = vmatpush.bf16.msra.mxu2 %v1457_v41 }
  0x55   :  { %979 = vmatpush.bf16.msra.mxu3 %v1462_v15 }
  0x56   :  { %807 = vmatpush.bf16.msra.mxu0 %v1440_v20 }
  0x57   :  { %820 = vmatpush.bf16.msra.mxu1 %v1448_v21 }
  0x58   :  { %907 = vmatpush.bf16.msra.mxu2 %v1456_v44 }
  0x59   :  { %980 = vmatpush.bf16.msra.mxu3 %v1461_v16 }
  0x5a   :  { %808 = vmatpush.bf16.msra.mxu0 %v1439_v22 }
  0x5b   :  { %821 = vmatpush.bf16.msra.mxu1 %v1447_v23  ;;  %v1469_v23 = vld [vmem:[%s1849_s6] ss:$0 sm:$0xff] }
  0x5c   :  { %908 = vmatpush.bf16.msra.mxu2 %v1455_v46 }
  0x5e   :  { %809 = vmatpush.bf16.msra.mxu0 %v1438_v24 }
  0x5f   :  { %822 = vmatpush.bf16.msra.mxu1 %v1446_v25 }
  0x60   :  { %909 = vmatpush.bf16.msra.mxu2 %v1454_v50 }
  0x61   :  { %810 = vmatmul.bf16.vlgmr.msra.gmra.mxu0 %v206_v26 }
  0x62   :  { %823 = vmatmul.bf16.vlgmr.msra.gmra.mxu1 %v207_v27 }
  0x9e   :  { %v707_v30 = vpop.f32.mrf.mxu0 }
  0x9f   :  { %v720_v31 = vpop.f32.mrf.mxu1  ;;  %v708_v47 = vadd.f32 %v1467_v45, %v707_v30 }
  0xa1   :  { %v721_v51 = vadd.f32 %v720_v31, %v708_v47 }
  0xa6   :  { %v733_v35 = vpop.f32.mrf.mxu2  ;;  %v709_v38 = vpop.f32.mrf.mxu0 }
  0xa7   :  { %v746_v36 = vpop.f32.mrf.mxu3  ;;  %v722_v39 = vpop.f32.mrf.mxu1  ;;  %v734_v54 = vadd.f32 %v733_v35, %v721_v51 }
  0xa9   :  { %v747_v61 = vadd.f32 %v746_v36, %v734_v54 }
  0xae   :  { %v735_v42 = vpop.f32.mrf.mxu2 }
  0xaf   :  { %v748_v43 = vpop.f32.mrf.mxu3 }
  0xbe   :  { %v759_v48 = vpop.f32.mrf.mxu0 }
  0xbf   :  { %v772_v49 = vpop.f32.mrf.mxu1  ;;  %v760_v63 = vadd.f32 %v759_v48, %v747_v61 }
  0xc1   :  { %v773_v3 = vadd.f32 %v772_v49, %v760_v63 }
  0xc6   :  { %v761_v55 = vpop.f32.mrf.mxu0  ;;  %v785_v57 = vpop.f32.mrf.mxu2 }
  0xc7   :  { %v774_v56 = vpop.f32.mrf.mxu1  ;;  %v798_v58 = vpop.f32.mrf.mxu3  ;;  %v786_v5 = vadd.f32 %v785_v57, %v773_v3 }
  0xc9   :  { %v799_v6 = vadd.f32 %v798_v58, %v786_v5 }
  0xce   :  { %v787_v1 = vpop.f32.mrf.mxu2 }
  0xcf   :  { %v800_v2 = vpop.f32.mrf.mxu3 }
  0xde   :  { %v811_v7 = vpop.f32.mrf.mxu0 }
  0xdf   :  { %v824_v8 = vpop.f32.mrf.mxu1  ;;  %v812_v9 = vadd.f32 %v811_v7, %v799_v6 }
  0xe1   :  { %v825_v10 = vadd.f32 %v824_v8, %v812_v9 }
  0xe3   :  { %v828_v11 = vmax.f32 %v825_v10, 0.0 }
  0xe5   :  { %v829_v12 = vpack.c.bf16 %v828_v11, %v828_v11 }
  0xe6   :  { %v813_v13 = vpop.f32.mrf.mxu0 }
  0xe7   :  { %v826_v14 = vpop.f32.mrf.mxu1  ;;  %1352 = vmatmul.msk.bf16.vlgmr.msra.gmra.mxu2 %vm894_vm2, %v829_v12 }
 0x16a   :  { %v911_v18 = vpop.f32.mrf.mxu2 }
 0x16b   :  { %v912_v19 = vadd.f32 %v1468_v17, %v911_v18 }
 0x16d   :  { %v915_v20 = vmax.f32 %v912_v19, 0.0 }
 0x16f   :  { %v916_v21 = vpack.c.bf16 %v915_v20, %v915_v20 }
 0x171   :  { %1373 = vmatmul.msk.bf16.vlgmr.msra.gmra.mxu3 %vm965_vm3, %v916_v21 }
 0x172   :  { %v913_v22 = vpop.f32.mrf.mxu2 }
 0x1f4   :  { %v982_v24 = vpop.f32.mrf.mxu3 }
 0x1f5   :  { %v983_v25 = vadd.f32 %v1469_v23, %v982_v24 }
 0x1f7   :  { %987 = vst.msk [vmem:[#allocation2] sm:$0x3] %vm986_vm4, %v983_v25 }
 0x1f8   :  { %998 = dma.vmem_to_hbm [thread:$0]  %s994_s30, 32, %s996_s9, [#allocation3]  }
 0x1fc   :  { %v984_v26 = vpop.f32.mrf.mxu3 }
 0x1fd   :  { %1494 = dma.done.wait [#allocation3], 32  }
 0x1fe   :  { %1495 = vsyncadd [#allocation3], 4294967264 }
 0x1ff   :  { %1003 = vsyncpa [#allocation3], 1 }

// kernel: net_forward.4
= control target key start
LH: loop header
LB: loop body
LE: loop exit
PB: predicated region body
PF: predicated region fallthrough
CT: control target
= control target key end

     0   :  { %vm6047_vm4 = vcmask 650240   ;;  %s12221_s1 = inlined_call_operand.vmem [shape: bf16[2,5,896,80], index: 1, kind: input, shape index: {}]   ;;  %s12222_s0 = inlined_call_operand.vmem [shape: bf16[32,896], index: 0, kind: input, shape index: {}]   ;;  %s12223_s2 = inlined_call_operand.vmem [shape: f32[1,80], index: 2, kind: input, shape index: {}]   ;;  %s12224_s3 = inlined_call_operand.vmem [shape: bf16[32,80], index: 3, kind: output, shape index: {}]  }
   0x1   :  { %v9437_v0 = vld [vmem:[%s12221_s1 + $0x1f8] sm:$0xff]  ;;  %v9436_v4 = vld [vmem:[%s12221_s1 + $0x1f0] sm:$0xff]  ;;  %v9435_v8 = vld [vmem:[%s12221_s1 + $0x1e8] sm:$0xff] }
   0x2   :  { %v9445_v1 = vld [vmem:[%s12221_s1 + $0x238] sm:$0xff]  ;;  %663 = vmatpush.bf16.msra.mxu0 %v9437_v0  ;;  %v9444_v5 = vld [vmem:[%s12221_s1 + $0x230] sm:$0xff]  ;;  %v9443_v9 = vld [vmem:[%s12221_s1 + $0x228] sm:$0xff] }
   0x3   :  { %v9453_v2 = vld [vmem:[%s12221_s1 + $0x278] sm:$0xff]  ;;  %682 = vmatpush.bf16.msra.mxu1 %v9445_v1  ;;  %v9452_v6 = vld [vmem:[%s12221_s1 + $0x270] sm:$0xff]  ;;  %v9451_v10 = vld [vmem:[%s12221_s1 + $0x268] sm:$0xff] }
   0x4   :  { %v9461_v3 = vld [vmem:[%s12221_s1 + $0x2b8] sm:$0xff]  ;;  %701 = vmatpush.bf16.msra.mxu2 %v9453_v2  ;;  %v9460_v7 = vld [vmem:[%s12221_s1 + $0x2b0] sm:$0xff]  ;;  %v9459_v11 = vld [vmem:[%s12221_s1 + $0x2a8] sm:$0xff] }
   0x5   :  { %720 = vmatpush.bf16.msra.mxu3 %v9461_v3  ;;  %v9434_v12 = vld [vmem:[%s12221_s1 + $0x1e0] sm:$0xff]  ;;  %v9433_v16 = vld [vmem:[%s12221_s1 + $0x1d8] sm:$0xff]  ;;  %v9432_v20 = vld [vmem:[%s12221_s1 + $0x1d0] sm:$0xff] }
   0x6   :  { %664 = vmatpush.bf16.msra.mxu0 %v9436_v4  ;;  %v9442_v13 = vld [vmem:[%s12221_s1 + $0x220] sm:$0xff]  ;;  %v9441_v17 = vld [vmem:[%s12221_s1 + $0x218] sm:$0xff]  ;;  %v9440_v21 = vld [vmem:[%s12221_s1 + $0x210] sm:$0xff] }
   0x7   :  { %683 = vmatpush.bf16.msra.mxu1 %v9444_v5  ;;  %v9450_v14 = vld [vmem:[%s12221_s1 + $0x260] sm:$0xff]  ;;  %v9449_v18 = vld [vmem:[%s12221_s1 + $0x258] sm:$0xff]  ;;  %v9448_v22 = vld [vmem:[%s12221_s1 + $0x250] sm:$0xff] }
   0x8   :  { %702 = vmatpush.bf16.msra.mxu2 %v9452_v6  ;;  %v9458_v15 = vld [vmem:[%s12221_s1 + $0x2a0] sm:$0xff]  ;;  %v9457_v19 = vld [vmem:[%s12221_s1 + $0x298] sm:$0xff]  ;;  %v9456_v23 = vld [vmem:[%s12221_s1 + $0x290] sm:$0xff] }
   0x9   :  { %721 = vmatpush.bf16.msra.mxu3 %v9460_v7  ;;  %v9431_v24 = vld [vmem:[%s12221_s1 + $0x1c8] sm:$0xff]  ;;  %v9430_v28 = vld [vmem:[%s12221_s1 + $0x1c0] sm:$0xff]  ;;  %v9363_v33 = vld [vmem:[%s12222_s0 + $0x18] sm:$0xf0] }
   0xa   :  { %665 = vmatpush.bf16.msra.mxu0 %v9435_v8  ;;  %v9439_v25 = vld [vmem:[%s12221_s1 + $0x208] sm:$0xff]  ;;  %v9438_v29 = vld [vmem:[%s12221_s1 + $0x200] sm:$0xff]  ;;  %v9485_v40 = vld [vmem:[%s12221_s1 + $0x378] sm:$0xff] }
   0xb   :  { %684 = vmatpush.bf16.msra.mxu1 %v9443_v9  ;;  %v9447_v26 = vld [vmem:[%s12221_s1 + $0x248] sm:$0xff]  ;;  %v9446_v30 = vld [vmem:[%s12221_s1 + $0x240] sm:$0xff]  ;;  %v9469_v41 = vld [vmem:[%s12221_s1 + $0x2f8] sm:$0xff] }
   0xc   :  { %703 = vmatpush.bf16.msra.mxu2 %v9451_v10  ;;  %v9455_v27 = vld [vmem:[%s12221_s1 + $0x288] sm:$0xff]  ;;  %v9454_v31 = vld [vmem:[%s12221_s1 + $0x280] sm:$0xff]  ;;  %v9477_v46 = vld [vmem:[%s12221_s1 + $0x338] sm:$0xff] }
   0xd   :  { %722 = vmatpush.bf16.msra.mxu3 %v9459_v11  ;;  %v6170_v32 = vld [vmem:[%s12222_s0] sm:$0xf]  ;;  %v9360_v34 = vld [vmem:[%s12222_s0 + $0x4] sm:$0xf]  ;;  %v6178_v36 = vld [vmem:[%s12222_s0 + $0x8] sm:$0xf] }
   0xe   :  { %666 = vmatpush.bf16.msra.mxu0 %v9434_v12  ;;  %v6172_v35 = vld [vmem:[%s12222_s0 + $0x1c] sm:$0xf0]  ;;  %v9364_v37 = vld [vmem:[%s12222_s0 + $0x20] sm:$0xf0]  ;;  %v9361_v38 = vld [vmem:[%s12222_s0 + $0xc] sm:$0xf]  ;;  %v10097_v42 = vor.u32 %v9363_v33, %v6170_v32 }
   0xf   :  { %685 = vmatpush.bf16.msra.mxu1 %v9442_v13  ;;  %v6180_v39 = vld [vmem:[%s12222_s0 + $0x24] sm:$0xf0]  ;;  %v10099_v43 = vor.u32 %v9360_v34, %v6172_v35  ;;  %v10101_v44 = vor.u32 %v9364_v37, %v6178_v36  ;;  %v9381_v47 = vld [vmem:[%s12221_s1 + $0x38] sm:$0xff]  ;;  %v9484_v48 = vld [vmem:[%s12221_s1 + $0x370] sm:$0xff] }
  0x10   :  { %704 = vmatpush.bf16.msra.mxu2 %v9450_v14  ;;  %v10103_v45 = vor.u32 %v9361_v38, %v6180_v39  ;;  %v9468_v49 = vld [vmem:[%s12221_s1 + $0x2f0] sm:$0xff]  ;;  %v9483_v52 = vld [vmem:[%s12221_s1 + $0x368] sm:$0xff]  ;;  %v9482_v56 = vld [vmem:[%s12221_s1 + $0x360] sm:$0xff] }
  0x11   :  { %723 = vmatpush.bf16.msra.mxu3 %v9458_v15  ;;  %v9476_v50 = vld [vmem:[%s12221_s1 + $0x330] sm:$0xff]  ;;  %v9467_v53 = vld [vmem:[%s12221_s1 + $0x2e8] sm:$0xff]  ;;  %v9466_v57 = vld [vmem:[%s12221_s1 + $0x2e0] sm:$0xff] }
  0x12   :  { %667 = vmatpush.bf16.msra.mxu0 %v9433_v16  ;;  %v9380_v51 = vld [vmem:[%s12221_s1 + $0x30] sm:$0xff]  ;;  %v9475_v54 = vld [vmem:[%s12221_s1 + $0x328] sm:$0xff]  ;;  %v9474_v58 = vld [vmem:[%s12221_s1 + $0x320] sm:$0xff] }
  0x13   :  { %686 = vmatpush.bf16.msra.mxu1 %v9441_v17  ;;  %v9379_v55 = vld [vmem:[%s12221_s1 + $0x28] sm:$0xff]  ;;  %v9378_v59 = vld [vmem:[%s12221_s1 + $0x20] sm:$0xff]  ;;  %v6198_v60 = vld [vmem:[%s12222_s0 + $0x38] sm:$0xf] }
  0x14   :  { %705 = vmatpush.bf16.msra.mxu2 %v9449_v18  ;;  %v9370_v61 = vld [vmem:[%s12222_s0 + $0x50] sm:$0xf0]  ;;  %v9367_v62 = vld [vmem:[%s12222_s0 + $0x3c] sm:$0xf]  ;;  %v6200_v63 = vld [vmem:[%s12222_s0 + $0x54] sm:$0xf0] }
  0x15   :  { %724 = vmatpush.bf16.msra.mxu3 %v9457_v19  ;;  %v6206_v0 = vld [vmem:[%s12222_s0 + $0x40] sm:$0xf]  ;;  %v9371_v1 = vld [vmem:[%s12222_s0 + $0x58] sm:$0xf0]  ;;  %v9368_v2 = vld [vmem:[%s12222_s0 + $0x44] sm:$0xf]  ;;  %v10181_v6 = vor.u32 %v9370_v61, %v6198_v60  ;;  %v10183_v7 = vor.u32 %v9367_v62, %v6200_v63 }
  0x16   :  { %668 = vmatpush.bf16.msra.mxu0 %v9432_v20  ;;  %v6208_v3 = vld [vmem:[%s12222_s0 + $0x5c] sm:$0xf0]  ;;  %v9481_v4 = vld [vmem:[%s12221_s1 + $0x358] sm:$0xff]  ;;  %v10185_v8 = vor.u32 %v9371_v1, %v6206_v0  ;;  %v9480_v12 = vld [vmem:[%s12221_s1 + $0x350] sm:$0xff] }
  0x17   :  { %687 = vmatpush.bf16.msra.mxu1 %v9440_v21  ;;  %v9465_v5 = vld [vmem:[%s12221_s1 + $0x2d8] sm:$0xff]  ;;  %v10187_v9 = vor.u32 %v9368_v2, %v6208_v3  ;;  %v9464_v13 = vld [vmem:[%s12221_s1 + $0x2d0] sm:$0xff]  ;;  %v9479_v16 = vld [vmem:[%s12221_s1 + $0x348] sm:$0xff] }
  0x18   :  { %706 = vmatpush.bf16.msra.mxu2 %v9448_v22  ;;  %v9473_v10 = vld [vmem:[%s12221_s1 + $0x318] sm:$0xff]  ;;  %v9472_v14 = vld [vmem:[%s12221_s1 + $0x310] sm:$0xff]  ;;  %v9463_v17 = vld [vmem:[%s12221_s1 + $0x2c8] sm:$0xff] }
  0x19   :  { %725 = vmatpush.bf16.msra.mxu3 %v9456_v23  ;;  %v9377_v11 = vld [vmem:[%s12221_s1 + $0x18] sm:$0xff]  ;;  %v9376_v15 = vld [vmem:[%s12221_s1 + $0x10] sm:$0xff]  ;;  %v9471_v18 = vld [vmem:[%s12221_s1 + $0x308] sm:$0xff] }
  0x1a   :  { %669 = vmatpush.bf16.msra.mxu0 %v9431_v24  ;;  %v9375_v19 = vld [vmem:[%s12221_s1 + $0x8] sm:$0xff]  ;;  %v9478_v20 = vld [vmem:[%s12221_s1 + $0x340] sm:$0xff]  ;;  %v9405_v24 = vld [vmem:[%s12221_s1 + $0xf8] sm:$0xff] }
  0x1b   :  { %688 = vmatpush.bf16.msra.mxu1 %v9439_v25  ;;  %v9462_v21 = vld [vmem:[%s12221_s1 + $0x2c0] sm:$0xff]  ;;  %v9389_v25 = vld [vmem:[%s12221_s1 + $0x78] sm:$0xff]  ;;  %v9404_v35 = vld [vmem:[%s12221_s1 + $0xf0] sm:$0xff] }
  0x1c   :  { %707 = vmatpush.bf16.msra.mxu2 %v9447_v26  ;;  %v9470_v22 = vld [vmem:[%s12221_s1 + $0x300] sm:$0xff]  ;;  %v6186_v26 = vld [vmem:[%s12222_s0 + $0x10] sm:$0xf]  ;;  %v9397_v32 = vld [vmem:[%s12221_s1 + $0xb8] sm:$0xff] }
  0x1d   :  { %726 = vmatpush.bf16.msra.mxu3 %v9455_v27  ;;  %v9374_v23 = vld [vmem:[%s12221_s1] sm:$0xff]  ;;  %v9365_v27 = vld [vmem:[%s12222_s0 + $0x28] sm:$0xf0]  ;;  %v9413_v33 = vld [vmem:[%s12221_s1 + $0x138] sm:$0xff] }
  0x1e   :  { %670 = vmatpush.bf16.msra.mxu0 %v9430_v28  ;;  %v9362_v28 = vld [vmem:[%s12222_s0 + $0x14] sm:$0xf]  ;;  %v10265_v34 = vor.u32 %v9365_v27, %v6186_v26  ;;  %v9385_v60 = vld [vmem:[%s12221_s1 + $0x58] sm:$0xff]  ;;  %v9491_v26 = vld [vmem:[%s12221_s1 + $0x3a8] sm:$0xff] }
  0x1f   :  { %689 = vmatpush.bf16.msra.mxu1 %v9438_v29  ;;  %v6188_v29 = vld [vmem:[%s12222_s0 + $0x2c] sm:$0xf0]  ;;  %v9393_v61 = vld [vmem:[%s12221_s1 + $0x98] sm:$0xff]  ;;  %v9427_v27 = vld [vmem:[%s12221_s1 + $0x1a8] sm:$0xff] }
  0x20   :  { %708 = vmatpush.bf16.msra.mxu2 %v9446_v30  ;;  %v6194_v30 = vld [vmem:[%s12222_s0 + $0x18] sm:$0xf]  ;;  %v10270_v36 = vor.u32 %v9362_v28, %v6188_v29  ;;  %v9388_v38 = vld [vmem:[%s12221_s1 + $0x70] sm:$0xff]  ;;  %v9419_v28 = vld [vmem:[%s12221_s1 + $0x168] sm:$0xff] }
  0x21   :  { %727 = vmatpush.bf16.msra.mxu3 %v9454_v31  ;;  %671 = vmatmul.bf16.vlgmr.msra.gmra.mxu0 %v10097_v42  ;;  %v9366_v31 = vld [vmem:[%s12222_s0 + $0x30] sm:$0xf0]  ;;  %v9409_v62 = vld [vmem:[%s12221_s1 + $0x118] sm:$0xff]  ;;  %v9499_v29 = vld [vmem:[%s12221_s1 + $0x3e8] sm:$0xff] }
  0x22   :  { %739 = vmatpush.bf16.msrb.mxu0 %v9469_v41  ;;  %690 = vmatmul.bf16.vlgmr.msra.gmra.mxu1 %v10099_v43  ;;  %v10272_v37 = vor.u32 %v9366_v31, %v6194_v30  ;;  %v9396_v39 = vld [vmem:[%s12221_s1 + $0xb0] sm:$0xff]  ;;  %v9403_v41 = vld [vmem:[%s12221_s1 + $0xe8] sm:$0xff]  ;;  %v9490_v30 = vld [vmem:[%s12221_s1 + $0x3a0] sm:$0xff] }
  0x23   :  { %709 = vmatmul.bf16.vlgmr.msra.gmra.mxu2 %v10101_v44  ;;  %758 = vmatpush.bf16.msrb.mxu1 %v9477_v46  ;;  %v9387_v46 = vld [vmem:[%s12221_s1 + $0x68] sm:$0xff]  ;;  %v9400_v0 = vld [vmem:[%s12221_s1 + $0xd0] sm:$0xff]  ;;  %v9426_v31 = vld [vmem:[%s12221_s1 + $0x1a0] sm:$0xff] }
  0x24   :  { %777 = vmatpush.bf16.msrb.mxu2 %v9485_v40  ;;  %728 = vmatmul.bf16.vlgmr.msra.gmra.mxu3 %v10103_v45  ;;  %v9412_v40 = vld [vmem:[%s12221_s1 + $0x130] sm:$0xff] }
  0x25   :  { %1143 = vmatpush.bf16.msrb.mxu3 %v9381_v47  ;;  %v9395_v47 = vld [vmem:[%s12221_s1 + $0xa8] sm:$0xff]  ;;  %v9384_v3 = vld [vmem:[%s12221_s1 + $0x50] sm:$0xff] }
  0x26   :  { %740 = vmatpush.bf16.msrb.mxu0 %v9468_v49  ;;  %v9402_v49 = vld [vmem:[%s12221_s1 + $0xe0] sm:$0xff] }
  0x27   :  { %759 = vmatpush.bf16.msrb.mxu1 %v9476_v50  ;;  %v9386_v50 = vld [vmem:[%s12221_s1 + $0x60] sm:$0xff] }
  0x28   :  { %778 = vmatpush.bf16.msrb.mxu2 %v9484_v48  ;;  %v9411_v48 = vld [vmem:[%s12221_s1 + $0x128] sm:$0xff] }
  0x29   :  { %1144 = vmatpush.bf16.msrb.mxu3 %v9380_v51  ;;  %v9394_v51 = vld [vmem:[%s12221_s1 + $0xa0] sm:$0xff] }
  0x2a   :  { %741 = vmatpush.bf16.msrb.mxu0 %v9467_v53  ;;  %v6214_v53 = vld [vmem:[%s12222_s0 + $0x48] sm:$0xf] }
  0x2b   :  { %760 = vmatpush.bf16.msrb.mxu1 %v9475_v54  ;;  %v9401_v54 = vld [vmem:[%s12221_s1 + $0xd8] sm:$0xff] }
  0x2c   :  { %779 = vmatpush.bf16.msrb.mxu2 %v9483_v52  ;;  %v9410_v52 = vld [vmem:[%s12221_s1 + $0x120] sm:$0xff] }
  0x2d   :  { %1145 = vmatpush.bf16.msrb.mxu3 %v9379_v55  ;;  %v9372_v55 = vld [vmem:[%s12222_s0 + $0x60] sm:$0xf0] }
  0x2e   :  { %742 = vmatpush.bf16.msrb.mxu0 %v9466_v57  ;;  %v6216_v57 = vld [vmem:[%s12222_s0 + $0x64] sm:$0xf0]  ;;  %v10341_v63 = vor.u32 %v9372_v55, %v6214_v53  ;;  %v9486_v53 = vld [vmem:[%s12221_s1 + $0x380] sm:$0xff]  ;;  %v9525_v55 = vld [vmem:[%s12221_s1 + $0x4b8] sm:$0xff] }
  0x2f   :  { %761 = vmatpush.bf16.msrb.mxu1 %v9474_v58  ;;  %v6222_v58 = vld [vmem:[%s12222_s0 + $0x50] sm:$0xf] }
  0x30   :  { %780 = vmatpush.bf16.msrb.mxu2 %v9482_v56  ;;  %v9369_v56 = vld [vmem:[%s12222_s0 + $0x4c] sm:$0xf] }
  0x31   :  { %1146 = vmatpush.bf16.msrb.mxu3 %v9378_v59  ;;  %676 = vmatmul.bf16.gmra.mxu0 %v10181_v6  ;;  %v9373_v59 = vld [vmem:[%s12222_s0 + $0x68] sm:$0xf0]  ;;  %v10346_v1 = vor.u32 %v9369_v56, %v6216_v57  ;;  %v9517_v56 = vld [vmem:[%s12221_s1 + $0x478] sm:$0xff]  ;;  %v9414_v57 = vld [vmem:[%s12221_s1 + $0x140] sm:$0xff] }
  0x32   :  { %743 = vmatpush.bf16.msrb.mxu0 %v9465_v5  ;;  %695 = vmatmul.bf16.gmra.mxu1 %v10183_v7  ;;  %v10348_v2 = vor.u32 %v9373_v59, %v6222_v58  ;;  %v9408_v5 = vld [vmem:[%s12221_s1 + $0x110] sm:$0xff]  ;;  %v9494_v58 = vld [vmem:[%s12221_s1 + $0x3c0] sm:$0xff]  ;;  %v9509_v59 = vld [vmem:[%s12221_s1 + $0x438] sm:$0xff] }
  0x33   :  { %714 = vmatmul.bf16.gmra.mxu2 %v10185_v8  ;;  %762 = vmatpush.bf16.msrb.mxu1 %v9473_v10  ;;  %v9399_v10 = vld [vmem:[%s12221_s1 + $0xc8] sm:$0xff] }
  0x34   :  { %781 = vmatpush.bf16.msrb.mxu2 %v9481_v4  ;;  %733 = vmatmul.bf16.gmra.mxu3 %v10187_v9  ;;  %v9392_v4 = vld [vmem:[%s12221_s1 + $0x90] sm:$0xff] }
  0x35   :  { %1147 = vmatpush.bf16.msrb.mxu3 %v9377_v11  ;;  %v9383_v11 = vld [vmem:[%s12221_s1 + $0x48] sm:$0xff] }
  0x36   :  { %744 = vmatpush.bf16.msrb.mxu0 %v9464_v13  ;;  %v9407_v13 = vld [vmem:[%s12221_s1 + $0x108] sm:$0xff] }
  0x37   :  { %763 = vmatpush.bf16.msrb.mxu1 %v9472_v14  ;;  %v9398_v14 = vld [vmem:[%s12221_s1 + $0xc0] sm:$0xff] }
  0x38   :  { %782 = vmatpush.bf16.msrb.mxu2 %v9480_v12  ;;  %v9391_v12 = vld [vmem:[%s12221_s1 + $0x88] sm:$0xff] }
  0x39   :  { %1148 = vmatpush.bf16.msrb.mxu3 %v9376_v15  ;;  %v9493_v15 = vld [vmem:[%s12221_s1 + $0x3b8] sm:$0xff] }
  0x3a   :  { %745 = vmatpush.bf16.msrb.mxu0 %v9463_v17  ;;  %v9390_v17 = vld [vmem:[%s12221_s1 + $0x80] sm:$0xff] }
  0x3b   :  { %764 = vmatpush.bf16.msrb.mxu1 %v9471_v18  ;;  %v9406_v18 = vld [vmem:[%s12221_s1 + $0x100] sm:$0xff] }
  0x3c   :  { %783 = vmatpush.bf16.msrb.mxu2 %v9479_v16  ;;  %v9382_v16 = vld [vmem:[%s12221_s1 + $0x40] sm:$0xff] }
  0x3d   :  { %1149 = vmatpush.bf16.msrb.mxu3 %v9375_v19  ;;  %v9421_v19 = vld [vmem:[%s12221_s1 + $0x178] sm:$0xff] }
  0x3e   :  { %746 = vmatpush.bf16.msrb.mxu0 %v9462_v21  ;;  %v9501_v21 = vld [vmem:[%s12221_s1 + $0x3f8] sm:$0xff] }
  0x3f   :  { %765 = vmatpush.bf16.msrb.mxu1 %v9470_v22  ;;  %v9492_v22 = vld [vmem:[%s12221_s1 + $0x3b0] sm:$0xff] }
  0x40   :  { %784 = vmatpush.bf16.msrb.mxu2 %v9478_v20  ;;  %v9429_v20 = vld [vmem:[%s12221_s1 + $0x1b8] sm:$0xff] }
  0x41   :  { %1150 = vmatpush.bf16.msrb.mxu3 %v9374_v23  ;;  %747 = vmatmul.bf16.vlgmr.msrb.gmra.mxu0 %v10265_v34  ;;  %v9428_v23 = vld [vmem:[%s12221_s1 + $0x1b0] sm:$0xff] }
  0x42   :  { %1162 = vmatpush.bf16.msra.mxu0 %v9389_v25  ;;  %766 = vmatmul.bf16.vlgmr.msrb.gmra.mxu1 %v10270_v36  ;;  %v9500_v25 = vld [vmem:[%s12221_s1 + $0x3f0] sm:$0xff] }
  0x43   :  { %1181 = vmatpush.bf16.msra.mxu1 %v9397_v32  ;;  %785 = vmatmul.bf16.vlgmr.msrb.gmra.mxu2 %v10272_v37  ;;  %v9418_v32 = vld [vmem:[%s12221_s1 + $0x160] sm:$0xff] }
  0x44   :  { %1200 = vmatpush.bf16.msra.mxu2 %v9405_v24  ;;  %1151 = vmatmul.bf16.vlgmr.msrb.gmra.mxu3 %v10097_v42  ;;  %v9420_v24 = vld [vmem:[%s12221_s1 + $0x170] sm:$0xff] }
  0x45   :  { %1219 = vmatpush.bf16.msra.mxu3 %v9413_v33  ;;  %v9498_v33 = vld [vmem:[%s12221_s1 + $0x3e0] sm:$0xff] }
  0x46   :  { %1163 = vmatpush.bf16.msra.mxu0 %v9388_v38  ;;  %v9425_v38 = vld [vmem:[%s12221_s1 + $0x198] sm:$0xff] }
  0x47   :  { %1182 = vmatpush.bf16.msra.mxu1 %v9396_v39  ;;  %v9417_v39 = vld [vmem:[%s12221_s1 + $0x158] sm:$0xff] }
  0x48   :  { %1201 = vmatpush.bf16.msra.mxu2 %v9404_v35  ;;  %v9489_v35 = vld [vmem:[%s12221_s1 + $0x398] sm:$0xff] }
  0x49   :  { %1220 = vmatpush.bf16.msra.mxu3 %v9412_v40  ;;  %v9497_v40 = vld [vmem:[%s12221_s1 + $0x3d8] sm:$0xff] }
  0x4a   :  { %1164 = vmatpush.bf16.msra.mxu0 %v9387_v46  ;;  %v9424_v46 = vld [vmem:[%s12221_s1 + $0x190] sm:$0xff] }
  0x4b   :  { %1183 = vmatpush.bf16.msra.mxu1 %v9395_v47  ;;  %v9416_v47 = vld [vmem:[%s12221_s1 + $0x150] sm:$0xff] }
  0x4c   :  { %1202 = vmatpush.bf16.msra.mxu2 %v9403_v41  ;;  %v9488_v41 = vld [vmem:[%s12221_s1 + $0x390] sm:$0xff] }
  0x4d   :  { %1221 = vmatpush.bf16.msra.mxu3 %v9411_v48  ;;  %v9496_v48 = vld [vmem:[%s12221_s1 + $0x3d0] sm:$0xff] }
  0x4e   :  { %1165 = vmatpush.bf16.msra.mxu0 %v9386_v50  ;;  %v9423_v50 = vld [vmem:[%s12221_s1 + $0x188] sm:$0xff] }
  0x4f   :  { %1184 = vmatpush.bf16.msra.mxu1 %v9394_v51  ;;  %v9415_v51 = vld [vmem:[%s12221_s1 + $0x148] sm:$0xff] }
  0x50   :  { %1203 = vmatpush.bf16.msra.mxu2 %v9402_v49  ;;  %v9487_v49 = vld [vmem:[%s12221_s1 + $0x388] sm:$0xff] }
  0x51   :  { %1222 = vmatpush.bf16.msra.mxu3 %v9410_v52  ;;  %752 = vmatmul.bf16.gmra.mxu0 %v10341_v63  ;;  %v9495_v52 = vld [vmem:[%s12221_s1 + $0x3c8] sm:$0xff] }
  0x52   :  { %1166 = vmatpush.bf16.msra.mxu0 %v9385_v60  ;;  %771 = vmatmul.bf16.gmra.mxu1 %v10346_v1  ;;  %v9533_v60 = vld [vmem:[%s12221_s1 + $0x4f8] sm:$0xff] }
  0x53   :  { %1185 = vmatpush.bf16.msra.mxu1 %v9393_v61  ;;  %790 = vmatmul.bf16.gmra.mxu2 %v10348_v2  ;;  %v9524_v61 = vld [vmem:[%s12221_s1 + $0x4b0] sm:$0xff] }
  0x54   :  { %1204 = vmatpush.bf16.msra.mxu2 %v9401_v54  ;;  %1156 = vmatmul.bf16.gmra.mxu3 %v10181_v6  ;;  %v9422_v54 = vld [vmem:[%s12221_s1 + $0x180] sm:$0xff] }
  0x55   :  { %1223 = vmatpush.bf16.msra.mxu3 %v9409_v62  ;;  %v9516_v62 = vld [vmem:[%s12221_s1 + $0x470] sm:$0xff] }
  0x56   :  { %1167 = vmatpush.bf16.msra.mxu0 %v9384_v3  ;;  %v9532_v3 = vld [vmem:[%s12221_s1 + $0x4f0] sm:$0xff] }
  0x57   :  { %1186 = vmatpush.bf16.msra.mxu1 %v9392_v4  ;;  %v9523_v4 = vld [vmem:[%s12221_s1 + $0x4a8] sm:$0xff] }
  0x58   :  { %1205 = vmatpush.bf16.msra.mxu2 %v9400_v0  ;;  %v9508_v0 = vld [vmem:[%s12221_s1 + $0x430] sm:$0xff] }
  0x59   :  { %1224 = vmatpush.bf16.msra.mxu3 %v9408_v5  ;;  %v9507_v5 = vld [vmem:[%s12221_s1 + $0x428] sm:$0xff] }
  0x5a   :  { %1168 = vmatpush.bf16.msra.mxu0 %v9383_v11  ;;  %v9531_v11 = vld [vmem:[%s12221_s1 + $0x4e8] sm:$0xff] }
  0x5b   :  { %1187 = vmatpush.bf16.msra.mxu1 %v9391_v12  ;;  %v9522_v12 = vld [vmem:[%s12221_s1 + $0x4a0] sm:$0xff] }
  0x5c   :  { %1206 = vmatpush.bf16.msra.mxu2 %v9399_v10  ;;  %v9515_v10 = vld [vmem:[%s12221_s1 + $0x468] sm:$0xff] }
  0x5d   :  { %1225 = vmatpush.bf16.msra.mxu3 %v9407_v13  ;;  %v9506_v13 = vld [vmem:[%s12221_s1 + $0x420] sm:$0xff] }
  0x5e   :  { %1169 = vmatpush.bf16.msra.mxu0 %v9382_v16  ;;  %v9521_v16 = vld [vmem:[%s12221_s1 + $0x498] sm:$0xff] }
  0x5f   :  { %1188 = vmatpush.bf16.msra.mxu1 %v9390_v17  ;;  %v9505_v17 = vld [vmem:[%s12221_s1 + $0x418] sm:$0xff] }
  0x60   :  { %1207 = vmatpush.bf16.msra.mxu2 %v9398_v14  ;;  %v9514_v14 = vld [vmem:[%s12221_s1 + $0x460] sm:$0xff] }
  0x61   :  { %1226 = vmatpush.bf16.msra.mxu3 %v9406_v18  ;;  %1170 = vmatmul.bf16.vlgmr.msra.gmra.mxu0 %v10099_v43  ;;  %v9513_v18 = vld [vmem:[%s12221_s1 + $0x458] sm:$0xff] }
  0x62   :  { %1238 = vmatpush.bf16.msrb.mxu0 %v9421_v19  ;;  %1189 = vmatmul.bf16.vlgmr.msra.gmra.mxu1 %v10101_v44  ;;  %v9529_v19 = vld [vmem:[%s12221_s1 + $0x4d8] sm:$0xff] }
  0x63   :  { %1257 = vmatpush.bf16.msrb.mxu1 %v9429_v20  ;;  %1208 = vmatmul.bf16.vlgmr.msra.gmra.mxu2 %v10103_v45  ;;  %v9520_v20 = vld [vmem:[%s12221_s1 + $0x490] sm:$0xff] }
  0x64   :  { %1725 = vmatpush.bf16.msrb.mxu2 %v9493_v15  ;;  %1227 = vmatmul.bf16.vlgmr.msra.gmra.mxu3 %v10265_v34  ;;  %v9530_v15 = vld [vmem:[%s12221_s1 + $0x4e0] sm:$0xff] }
  0x65   :  { %1744 = vmatpush.bf16.msrb.mxu3 %v9501_v21  ;;  %v9504_v21 = vld [vmem:[%s12221_s1 + $0x410] sm:$0xff] }
  0x66   :  { %1239 = vmatpush.bf16.msrb.mxu0 %v9420_v24  ;;  %v9519_v24 = vld [vmem:[%s12221_s1 + $0x488] sm:$0xff] }
  0x67   :  { %1258 = vmatpush.bf16.msrb.mxu1 %v9428_v23  ;;  %v9528_v23 = vld [vmem:[%s12221_s1 + $0x4d0] sm:$0xff] }
  0x68   :  { %1726 = vmatpush.bf16.msrb.mxu2 %v9492_v22  ;;  %v9512_v22 = vld [vmem:[%s12221_s1 + $0x450] sm:$0xff] }
  0x69   :  { %1745 = vmatpush.bf16.msrb.mxu3 %v9500_v25  ;;  %v9503_v25 = vld [vmem:[%s12221_s1 + $0x408] sm:$0xff] }
  0x6a   :  { %1240 = vmatpush.bf16.msrb.mxu0 %v9419_v28  ;;  %v9518_v28 = vld [vmem:[%s12221_s1 + $0x480] sm:$0xff] }
  0x6b   :  { %1259 = vmatpush.bf16.msrb.mxu1 %v9427_v27  ;;  %v9527_v27 = vld [vmem:[%s12221_s1 + $0x4c8] sm:$0xff] }
  0x6c   :  { %1727 = vmatpush.bf16.msrb.mxu2 %v9491_v26  ;;  %v9511_v26 = vld [vmem:[%s12221_s1 + $0x448] sm:$0xff] }
  0x6d   :  { %1746 = vmatpush.bf16.msrb.mxu3 %v9499_v29  ;;  %v9502_v29 = vld [vmem:[%s12221_s1 + $0x400] sm:$0xff] }
  0x6e   :  { %1241 = vmatpush.bf16.msrb.mxu0 %v9418_v32  ;;  %v9557_v32 = vld [vmem:[%s12221_s1 + $0x5b8] sm:$0xff] }
  0x6f   :  { %1260 = vmatpush.bf16.msrb.mxu1 %v9426_v31  ;;  %v9526_v31 = vld [vmem:[%s12221_s1 + $0x4c0] sm:$0xff] }
  0x70   :  { %1728 = vmatpush.bf16.msrb.mxu2 %v9490_v30  ;;  %v9510_v30 = vld [vmem:[%s12221_s1 + $0x440] sm:$0xff] }
  0x71   :  { %1747 = vmatpush.bf16.msrb.mxu3 %v9498_v33  ;;  %1175 = vmatmul.bf16.gmra.mxu0 %v10183_v7  ;;  %v9541_v33 = vld [vmem:[%s12221_s1 + $0x538] sm:$0xff] }
  0x72   :  { %1242 = vmatpush.bf16.msrb.mxu0 %v9417_v39  ;;  %1194 = vmatmul.bf16.gmra.mxu1 %v10185_v8  ;;  %v9556_v39 = vld [vmem:[%s12221_s1 + $0x5b0] sm:$0xff] }
  0x73   :  { %1261 = vmatpush.bf16.msrb.mxu1 %v9425_v38  ;;  %1213 = vmatmul.bf16.gmra.mxu2 %v10187_v9  ;;  %v9565_v38 = vld [vmem:[%s12221_s1 + $0x5f8] sm:$0xff] }
  0x74   :  { %1729 = vmatpush.bf16.msrb.mxu2 %v9489_v35  ;;  %1232 = vmatmul.bf16.gmra.mxu3 %v10341_v63  ;;  %v9549_v35 = vld [vmem:[%s12221_s1 + $0x578] sm:$0xff] }
  0x75   :  { %1748 = vmatpush.bf16.msrb.mxu3 %v9497_v40  ;;  %v9540_v40 = vld [vmem:[%s12221_s1 + $0x530] sm:$0xff] }
  0x76   :  { %1243 = vmatpush.bf16.msrb.mxu0 %v9416_v47  ;;  %v9555_v47 = vld [vmem:[%s12221_s1 + $0x5a8] sm:$0xff] }
  0x77   :  { %1262 = vmatpush.bf16.msrb.mxu1 %v9424_v46  ;;  %v9564_v46 = vld [vmem:[%s12221_s1 + $0x5f0] sm:$0xff] }
  0x78   :  { %1730 = vmatpush.bf16.msrb.mxu2 %v9488_v41  ;;  %v9548_v41 = vld [vmem:[%s12221_s1 + $0x570] sm:$0xff] }
  0x79   :  { %1749 = vmatpush.bf16.msrb.mxu3 %v9496_v48 }
  0x7a   :  { %1244 = vmatpush.bf16.msrb.mxu0 %v9415_v51  ;;  %v9539_v51 = vld [vmem:[%s12221_s1 + $0x528] sm:$0xff] }
  0x7b   :  { %1263 = vmatpush.bf16.msrb.mxu1 %v9423_v50 }
  0x7c   :  { %1731 = vmatpush.bf16.msrb.mxu2 %v9487_v49 }
  0x7d   :  { %1750 = vmatpush.bf16.msrb.mxu3 %v9495_v52  ;;  %v9547_v52 = vld [vmem:[%s12221_s1 + $0x568] sm:$0xff] }
  0x7e   :  { %1245 = vmatpush.bf16.msrb.mxu0 %v9414_v57  ;;  %v9562_v57 = vld [vmem:[%s12221_s1 + $0x5e0] sm:$0xff] }
  0x7f   :  { %1264 = vmatpush.bf16.msrb.mxu1 %v9422_v54  ;;  %v9554_v54 = vld [vmem:[%s12221_s1 + $0x5a0] sm:$0xff] }
  0x80   :  { %1732 = vmatpush.bf16.msrb.mxu2 %v9486_v53  ;;  %v9563_v53 = vld [vmem:[%s12221_s1 + $0x5e8] sm:$0xff] }
  0x81   :  { %1751 = vmatpush.bf16.msrb.mxu3 %v9494_v58  ;;  %1246 = vmatmul.bf16.vlgmr.msrb.gmra.mxu0 %v10270_v36 }
  0x82   :  { %1763 = vmatpush.bf16.msra.mxu0 %v9509_v59  ;;  %1265 = vmatmul.bf16.vlgmr.msrb.gmra.mxu1 %v10272_v37 }
  0x83   :  { %1782 = vmatpush.bf16.msra.mxu1 %v9517_v56  ;;  %1733 = vmatmul.bf16.vlgmr.msrb.gmra.mxu2 %v10097_v42  ;;  %v9546_v56 = vld [vmem:[%s12221_s1 + $0x560] sm:$0xff] }
  0x84   :  { %1801 = vmatpush.bf16.msra.mxu2 %v9525_v55  ;;  %1752 = vmatmul.bf16.vlgmr.msrb.gmra.mxu3 %v10099_v43  ;;  %v9538_v55 = vld [vmem:[%s12221_s1 + $0x520] sm:$0xff] }
  0x85   :  { %1820 = vmatpush.bf16.msra.mxu3 %v9533_v60  ;;  %v9553_v60 = vld [vmem:[%s12221_s1 + $0x598] sm:$0xff] }
  0x86   :  { %1764 = vmatpush.bf16.msra.mxu0 %v9508_v0 }
  0x87   :  { %1783 = vmatpush.bf16.msra.mxu1 %v9516_v62 }
  0x88   :  { %1802 = vmatpush.bf16.msra.mxu2 %v9524_v61 }
  0x89   :  { %1821 = vmatpush.bf16.msra.mxu3 %v9532_v3 }
  0x8a   :  { %1765 = vmatpush.bf16.msra.mxu0 %v9507_v5 }
  0x8b   :  { %1784 = vmatpush.bf16.msra.mxu1 %v9515_v10  ;;  %v9545_v10 = vld [vmem:[%s12221_s1 + $0x558] sm:$0xff] }
  0x8c   :  { %1803 = vmatpush.bf16.msra.mxu2 %v9523_v4  ;;  %v9537_v4 = vld [vmem:[%s12221_s1 + $0x518] sm:$0xff] }
  0x8d   :  { %1822 = vmatpush.bf16.msra.mxu3 %v9531_v11  ;;  %v9561_v11 = vld [vmem:[%s12221_s1 + $0x5d8] sm:$0xff] }
  0x8e   :  { %1766 = vmatpush.bf16.msra.mxu0 %v9506_v13  ;;  %v9536_v13 = vld [vmem:[%s12221_s1 + $0x510] sm:$0xff] }
  0x8f   :  { %1785 = vmatpush.bf16.msra.mxu1 %v9514_v14  ;;  %v9544_v14 = vld [vmem:[%s12221_s1 + $0x550] sm:$0xff] }
  0x90   :  { %1804 = vmatpush.bf16.msra.mxu2 %v9522_v12  ;;  %v9552_v12 = vld [vmem:[%s12221_s1 + $0x590] sm:$0xff] }
  0x91   :  { %1823 = vmatpush.bf16.msra.mxu3 %v9530_v15  ;;  %1251 = vmatmul.bf16.gmra.mxu0 %v10346_v1  ;;  %v9560_v15 = vld [vmem:[%s12221_s1 + $0x5d0] sm:$0xff] }
  0x92   :  { %1767 = vmatpush.bf16.msra.mxu0 %v9505_v17  ;;  %1270 = vmatmul.bf16.gmra.mxu1 %v10348_v2 }
  0x93   :  { %1786 = vmatpush.bf16.msra.mxu1 %v9513_v18  ;;  %1738 = vmatmul.bf16.gmra.mxu2 %v10181_v6  ;;  %v9551_v18 = vld [vmem:[%s12221_s1 + $0x588] sm:$0xff] }
  0x94   :  { %1805 = vmatpush.bf16.msra.mxu2 %v9521_v16  ;;  %1757 = vmatmul.bf16.gmra.mxu3 %v10183_v7 }
  0x95   :  { %1824 = vmatpush.bf16.msra.mxu3 %v9529_v19 }
  0x96   :  { %1768 = vmatpush.bf16.msra.mxu0 %v9504_v21 }
  0x97   :  { %1787 = vmatpush.bf16.msra.mxu1 %v9512_v22 }
  0x98   :  { %1806 = vmatpush.bf16.msra.mxu2 %v9520_v20 }
  0x99   :  { %1825 = vmatpush.bf16.msra.mxu3 %v9528_v23  ;;  %v9535_v23 = vld [vmem:[%s12221_s1 + $0x508] sm:$0xff] }
  0x9a   :  { %1769 = vmatpush.bf16.msra.mxu0 %v9503_v25  ;;  %v9543_v25 = vld [vmem:[%s12221_s1 + $0x548] sm:$0xff] }
  0x9b   :  { %1788 = vmatpush.bf16.msra.mxu1 %v9511_v26  ;;  %v9559_v26 = vld [vmem:[%s12221_s1 + $0x5c8] sm:$0xff] }
  0x9c   :  { %1807 = vmatpush.bf16.msra.mxu2 %v9519_v24 }
  0x9d   :  { %1826 = vmatpush.bf16.msra.mxu3 %v9527_v27  ;;  %v9550_v27 = vld [vmem:[%s12221_s1 + $0x580] sm:$0xff] }
  0x9e   :  { %1770 = vmatpush.bf16.msra.mxu0 %v9502_v29  ;;  %v672_v48 = vpop.f32.mrf.mxu0  ;;  %v9534_v29 = vld [vmem:[%s12221_s1 + $0x500] sm:$0xff] }
  0x9f   :  { %1789 = vmatpush.bf16.msra.mxu1 %v9510_v30  ;;  %v691_v49 = vpop.f32.mrf.mxu1  ;;  %v9542_v30 = vld [vmem:[%s12221_s1 + $0x540] sm:$0xff] }
  0xa0   :  { %1808 = vmatpush.bf16.msra.mxu2 %v9518_v28  ;;  %v692_v50 = vadd.f32 %v691_v49, %v672_v48  ;;  %v9589_v28 = vld [vmem:[%s12221_s1 + $0x6b8] sm:$0xff] }
  0xa1   :  { %1827 = vmatpush.bf16.msra.mxu3 %v9526_v31  ;;  %1771 = vmatmul.bf16.vlgmr.msra.gmra.mxu0 %v10101_v44  ;;  %v9558_v31 = vld [vmem:[%s12221_s1 + $0x5c0] sm:$0xff] }
  0xa2   :  { %1839 = vmatpush.bf16.msrb.mxu0 %v9541_v33  ;;  %1790 = vmatmul.bf16.vlgmr.msra.gmra.mxu1 %v10103_v45 }
  0xa3   :  { %2320 = vmatpush.bf16.msrb.mxu1 %v9549_v35  ;;  %1809 = vmatmul.bf16.vlgmr.msra.gmra.mxu2 %v10265_v34  ;;  %v9573_v35 = vld [vmem:[%s12221_s1 + $0x638] sm:$0xff] }
  0xa4   :  { %2339 = vmatpush.bf16.msrb.mxu2 %v9557_v32  ;;  %1828 = vmatmul.bf16.vlgmr.msra.gmra.mxu3 %v10270_v36 }
  0xa5   :  { %2358 = vmatpush.bf16.msrb.mxu3 %v9565_v38  ;;  %v9581_v38 = vld [vmem:[%s12221_s1 + $0x678] sm:$0xff] }
  0xa6   :  { %1840 = vmatpush.bf16.msrb.mxu0 %v9540_v40  ;;  %v710_v58 = vpop.f32.mrf.mxu2  ;;  %v674_v62 = vpop.f32.mrf.mxu0 }
  0xa7   :  { %2321 = vmatpush.bf16.msrb.mxu1 %v9548_v41  ;;  %v729_v59 = vpop.f32.mrf.mxu3  ;;  %v711_v61 = vadd.f32 %v710_v58, %v692_v50  ;;  %v693_v0 = vpop.f32.mrf.mxu1  ;;  %v9572_v50 = vld [vmem:[%s12221_s1 + $0x630] sm:$0xff] }
  0xa8   :  { %2340 = vmatpush.bf16.msrb.mxu2 %v9556_v39  ;;  %v694_v3 = vadd.f32 %v693_v0, %v674_v62  ;;  %v9595_v0 = vld [vmem:[%s12221_s1 + $0x6e8] sm:$0xff] }
  0xa9   :  { %2359 = vmatpush.bf16.msrb.mxu3 %v9564_v46  ;;  %v10653_v5 = vadd.f32 %v729_v59, %v711_v61  ;;  %v9597_v46 = vld [vmem:[%s12221_s1 + $0x6f8] sm:$0xff]  ;;  %v9571_v61 = vld [vmem:[%s12221_s1 + $0x628] sm:$0xff] }
  0xaa   :  { %1841 = vmatpush.bf16.msrb.mxu0 %v9539_v51  ;;  %v9580_v51 = vld [vmem:[%s12221_s1 + $0x670] sm:$0xff] }
  0xab   :  { %2322 = vmatpush.bf16.msrb.mxu1 %v9547_v52  ;;  %v9596_v52 = vld [vmem:[%s12221_s1 + $0x6f0] sm:$0xff] }
  0xac   :  { %2341 = vmatpush.bf16.msrb.mxu2 %v9555_v47  ;;  %v9588_v47 = vld [vmem:[%s12221_s1 + $0x6b0] sm:$0xff] }
  0xad   :  { %2360 = vmatpush.bf16.msrb.mxu3 %v9563_v53  ;;  %v9587_v53 = vld [vmem:[%s12221_s1 + $0x6a8] sm:$0xff] }
  0xae   :  { %1842 = vmatpush.bf16.msrb.mxu0 %v9538_v55  ;;  %v712_v16 = vpop.f32.mrf.mxu2  ;;  %v677_v20 = vpop.f32.mrf.mxu0 }
  0xaf   :  { %2323 = vmatpush.bf16.msrb.mxu1 %v9546_v56  ;;  %v731_v17 = vpop.f32.mrf.mxu3  ;;  %v713_v19 = vadd.f32 %v712_v16, %v694_v3  ;;  %v696_v21 = vpop.f32.mrf.mxu1  ;;  %v9579_v56 = vld [vmem:[%s12221_s1 + $0x668] sm:$0xff]  ;;  %v9586_v3 = vld [vmem:[%s12221_s1 + $0x6a0] sm:$0xff] }
  0xb0   :  { %2342 = vmatpush.bf16.msrb.mxu2 %v9554_v54  ;;  %v697_v22 = vadd.f32 %v696_v21, %v677_v20  ;;  %v9569_v20 = vld [vmem:[%s12221_s1 + $0x618] sm:$0xff]  ;;  %v800_v21 = vlaneseq }
  0xb1   :  { %2361 = vmatpush.bf16.msrb.mxu3 %v9562_v57  ;;  %v10679_v24 = vadd.f32 %v731_v17, %v713_v19  ;;  %1776 = vmatmul.bf16.gmra.mxu0 %v10185_v8 }
  0xb2   :  { %1843 = vmatpush.bf16.msrb.mxu0 %v9537_v4  ;;  %1795 = vmatmul.bf16.gmra.mxu1 %v10187_v9 }
  0xb3   :  { %2324 = vmatpush.bf16.msrb.mxu1 %v9545_v10  ;;  %1814 = vmatmul.bf16.gmra.mxu2 %v10341_v63  ;;  %v9570_v10 = vld [vmem:[%s12221_s1 + $0x620] sm:$0xff] }
  0xb4   :  { %2343 = vmatpush.bf16.msrb.mxu2 %v9553_v60  ;;  %1833 = vmatmul.bf16.gmra.mxu3 %v10346_v1 }
  0xb5   :  { %2362 = vmatpush.bf16.msrb.mxu3 %v9561_v11  ;;  %v9594_v11 = vld [vmem:[%s12221_s1 + $0x6e0] sm:$0xff] }
  0xb6   :  { %1844 = vmatpush.bf16.msrb.mxu0 %v9536_v13  ;;  %v715_v32 = vpop.f32.mrf.mxu2  ;;  %v679_v40 = vpop.f32.mrf.mxu0 }
  0xb7   :  { %2325 = vmatpush.bf16.msrb.mxu1 %v9544_v14  ;;  %v734_v33 = vpop.f32.mrf.mxu3  ;;  %v716_v39 = vadd.f32 %v715_v32, %v697_v22  ;;  %v698_v41 = vpop.f32.mrf.mxu1  ;;  %v9577_v14 = vld [vmem:[%s12221_s1 + $0x658] sm:$0xff] }
  0xb8   :  { %2344 = vmatpush.bf16.msrb.mxu2 %v9552_v12  ;;  %v699_v48 = vadd.f32 %v698_v41, %v679_v40  ;;  %v9585_v12 = vld [vmem:[%s12221_s1 + $0x698] sm:$0xff]  ;;  %v9567_v40 = vld [vmem:[%s12221_s1 + $0x608] sm:$0xff] }
  0xb9   :  { %2363 = vmatpush.bf16.msrb.mxu3 %v9560_v15  ;;  %v10718_v49 = vadd.f32 %v734_v33, %v716_v39  ;;  %v9593_v22 = vld [vmem:[%s12221_s1 + $0x6d8] sm:$0xff] }
  0xba   :  { %1845 = vmatpush.bf16.msrb.mxu0 %v9535_v23  ;;  %v9584_v23 = vld [vmem:[%s12221_s1 + $0x690] sm:$0xff] }
  0xbb   :  { %2326 = vmatpush.bf16.msrb.mxu1 %v9543_v25 }
  0xbc   :  { %2345 = vmatpush.bf16.msrb.mxu2 %v9551_v18 }
  0xbd   :  { %2364 = vmatpush.bf16.msrb.mxu3 %v9559_v26  ;;  %v9568_v26 = vld [vmem:[%s12221_s1 + $0x610] sm:$0xff] }
  0xbe   :  { %1846 = vmatpush.bf16.msrb.mxu0 %v9534_v29  ;;  %v717_v54 = vpop.f32.mrf.mxu2  ;;  %v748_v58 = vpop.f32.mrf.mxu0  ;;  %v9583_v29 = vld [vmem:[%s12221_s1 + $0x688] sm:$0xff] }
  0xbf   :  { %2327 = vmatpush.bf16.msrb.mxu1 %v9542_v30  ;;  %v736_v55 = vpop.f32.mrf.mxu3  ;;  %v718_v57 = vadd.f32 %v717_v54, %v699_v48  ;;  %v749_v59 = vadd.f32 %v748_v58, %v10653_v5  ;;  %v767_v60 = vpop.f32.mrf.mxu1  ;;  %v9578_v5 = vld [vmem:[%s12221_s1 + $0x660] sm:$0xff] }
  0xc0   :  { %2346 = vmatpush.bf16.msrb.mxu2 %v9550_v27  ;;  %v10784_v27 = vshrl.u32 %v800_v21, 7  ;;  %v9582_v48 = vld [vmem:[%s12221_s1 + $0x680] sm:$0xff]  ;;  %v9627_v21 = vld [vmem:[%s12221_s1 + $0x7e8] sm:$0xff] }
  0xc1   :  { %2365 = vmatpush.bf16.msrb.mxu3 %v9558_v31  ;;  %v10739_v62 = vadd.f32 %v736_v55, %v718_v57  ;;  %v768_v4 = vadd.f32 %v767_v60, %v749_v59  ;;  %1847 = vmatmul.bf16.vlgmr.msrb.gmra.mxu0 %v10272_v37  ;;  %v9575_v31 = vld [vmem:[%s12221_s1 + $0x648] sm:$0xff]  ;;  %v9566_v55 = vld [vmem:[%s12221_s1 + $0x600] sm:$0xff]  ;;  %v9605_v57 = vld [vmem:[%s12221_s1 + $0x738] sm:$0xff] }
  0xc2   :  { %2377 = vmatpush.bf16.msra.mxu0 %v9573_v35  ;;  %2328 = vmatmul.bf16.vlgmr.msrb.gmra.mxu1 %v10097_v42  ;;  %vm802_vm0 = vcmp.lt.s32.totalorder %v10784_v27, 7  ;;  %v9629_v59 = vld [vmem:[%s12221_s1 + $0x7f8] sm:$0xff]  ;;  %v9620_v60 = vld [vmem:[%s12221_s1 + $0x7b0] sm:$0xff]  ;;  %vm1862_vm1 = vcmp.lt.s32.totalorder %v10784_v27, 6  ;;  %vm2457_vm2 = vcmp.lt.s32.totalorder %v10784_v27, 5  ;;  %vm3052_vm3 = vcmp.lt.s32.totalorder %v10784_v27, 4 }
  0xc3   :  { %2396 = vmatpush.bf16.msra.mxu1 %v9581_v38  ;;  %2347 = vmatmul.bf16.vlgmr.msrb.gmra.mxu2 %v10099_v43 }
  0xc4   :  { %2415 = vmatpush.bf16.msra.mxu2 %v9589_v28  ;;  %2366 = vmatmul.bf16.vlgmr.msrb.gmra.mxu3 %v10101_v44  ;;  %v9592_v28 = vld [vmem:[%s12221_s1 + $0x6d0] sm:$0xff] }
  0xc5   :  { %2434 = vmatpush.bf16.msra.mxu3 %v9597_v46 }
  0xc6   :  { %2378 = vmatpush.bf16.msra.mxu0 %v9572_v50  ;;  %v786_v13 = vpop.f32.mrf.mxu2  ;;  %v750_v17 = vpop.f32.mrf.mxu0  ;;  %v9574_v50 = vld [vmem:[%s12221_s1 + $0x640] sm:$0xff] }
  0xc7   :  { %2397 = vmatpush.bf16.msra.mxu1 %v9580_v51  ;;  %v10766_v15 = vadd.f32 %v786_v13, %v768_v4  ;;  %v1152_v16 = vpop.f32.mrf.mxu3  ;;  %v751_v18 = vadd.f32 %v750_v17, %v10679_v24  ;;  %v769_v19 = vpop.f32.mrf.mxu1  ;;  %v9576_v24 = vld [vmem:[%s12221_s1 + $0x650] sm:$0xff]  ;;  %v9621_v51 = vld [vmem:[%s12221_s1 + $0x7b8] sm:$0xff]  ;;  %v9611_v17 = vld [vmem:[%s12221_s1 + $0x768] sm:$0xff] }
  0xc8   :  { %2416 = vmatpush.bf16.msra.mxu2 %v9588_v47  ;;  %v9591_v47 = vld [vmem:[%s12221_s1 + $0x6c8] sm:$0xff]  ;;  %v9612_v4 = vld [vmem:[%s12221_s1 + $0x770] sm:$0xff] }
  0xc9   :  { %2435 = vmatpush.bf16.msra.mxu3 %v9596_v52  ;;  %v770_v25 = vadd.f32 %v769_v19, %v751_v18  ;;  %v796_v41 = vrot.slane %v10766_v15, 1  ;;  %v9603_v19 = vld [vmem:[%s12221_s1 + $0x728] sm:$0xff]  ;;  %v9617_v15 = vld [vmem:[%s12221_s1 + $0x798] sm:$0xff] }
  0xca   :  { %2379 = vmatpush.bf16.msra.mxu0 %v9571_v61 }
  0xcb   :  { %2398 = vmatpush.bf16.msra.mxu1 %v9579_v56  ;;  %v9590_v56 = vld [vmem:[%s12221_s1 + $0x6c0] sm:$0xff] }
  0xcc   :  { %2417 = vmatpush.bf16.msra.mxu2 %v9587_v53  ;;  %v9613_v53 = vld [vmem:[%s12221_s1 + $0x778] sm:$0xff] }
  0xcd   :  { %2436 = vmatpush.bf16.msra.mxu3 %v9595_v0 }
  0xce   :  { %2380 = vmatpush.bf16.msra.mxu0 %v9570_v10  ;;  %v788_v30 = vpop.f32.mrf.mxu2  ;;  %v753_v35 = vpop.f32.mrf.mxu0 }
  0xcf   :  { %2399 = vmatpush.bf16.msra.mxu1 %v9578_v5  ;;  %v789_v32 = vadd.f32 %v788_v30, %v770_v25  ;;  %v1154_v33 = vpop.f32.mrf.mxu3  ;;  %v754_v38 = vadd.f32 %v753_v35, %v10718_v49  ;;  %v772_v39 = vpop.f32.mrf.mxu1  ;;  %v9602_v30 = vld [vmem:[%s12221_s1 + $0x720] sm:$0xff] }
  0xd0   :  { %2418 = vmatpush.bf16.msra.mxu2 %v9586_v3 }
  0xd1   :  { %2437 = vmatpush.bf16.msra.mxu3 %v9594_v11  ;;  %v797_v46 = vrot.slane %v789_v32, 1  ;;  %v773_v49 = vadd.f32 %v772_v39, %v754_v38  ;;  %1852 = vmatmul.bf16.gmra.mxu0 %v10348_v2 }
  0xd2   :  { %2381 = vmatpush.bf16.msra.mxu0 %v9569_v20  ;;  %2333 = vmatmul.bf16.gmra.mxu1 %v10181_v6 }
  0xd3   :  { %2400 = vmatpush.bf16.msra.mxu1 %v9577_v14  ;;  %2352 = vmatmul.bf16.gmra.mxu2 %v10183_v7  ;;  %v805_v52 = vsel %vm802_vm0, %v796_v41, %v797_v46  ;;  %v9628_v14 = vld [vmem:[%s12221_s1 + $0x7f0] sm:$0xff] }
  0xd4   :  { %2419 = vmatpush.bf16.msra.mxu2 %v9585_v12  ;;  %2371 = vmatmul.bf16.gmra.mxu3 %v10185_v8  ;;  %v1153_v54 = vadd.f32 %v1152_v16, %v805_v52  ;;  %v9604_v12 = vld [vmem:[%s12221_s1 + $0x730] sm:$0xff] }
  0xd5   :  { %2438 = vmatpush.bf16.msra.mxu3 %v9593_v22 }
  0xd6   :  { %2382 = vmatpush.bf16.msra.mxu0 %v9568_v26  ;;  %v791_v58 = vpop.f32.mrf.mxu2  ;;  %v755_v3 = vpop.f32.mrf.mxu0 }
  0xd7   :  { %2401 = vmatpush.bf16.msra.mxu1 %v9576_v24  ;;  %v792_v61 = vadd.f32 %v791_v58, %v773_v49  ;;  %v1157_v0 = vpop.f32.mrf.mxu3  ;;  %v756_v5 = vadd.f32 %v755_v3, %v10739_v62  ;;  %v774_v10 = vpop.f32.mrf.mxu1  ;;  %v9619_v62 = vld [vmem:[%s12221_s1 + $0x7a8] sm:$0xff] }
  0xd8   :  { %2420 = vmatpush.bf16.msra.mxu2 %v9584_v23 }
  0xd9   :  { %2439 = vmatpush.bf16.msra.mxu3 %v9592_v28  ;;  %v798_v11 = vrot.slane %v792_v61, 1  ;;  %v775_v13 = vadd.f32 %v774_v10, %v756_v5  ;;  %v9618_v28 = vld [vmem:[%s12221_s1 + $0x7a0] sm:$0xff]  ;;  %v9599_v61 = vld [vmem:[%s12221_s1 + $0x708] sm:$0xff] }
  0xda   :  { %2383 = vmatpush.bf16.msra.mxu0 %v9567_v40 }
  0xdb   :  { %2402 = vmatpush.bf16.msra.mxu1 %v9575_v31  ;;  %v804_v16 = vsel %vm802_vm0, %v797_v46, %v798_v11  ;;  %v9610_v31 = vld [vmem:[%s12221_s1 + $0x760] sm:$0xff]  ;;  %v9609_v46 = vld [vmem:[%s12221_s1 + $0x758] sm:$0xff] }
  0xdc   :  { %2421 = vmatpush.bf16.msra.mxu2 %v9583_v29  ;;  %v1155_v18 = vadd.f32 %v1154_v33, %v804_v16  ;;  %v9626_v33 = vld [vmem:[%s12221_s1 + $0x7e0] sm:$0xff] }
  0xdd   :  { %2440 = vmatpush.bf16.msra.mxu3 %v9591_v47  ;;  %v9598_v16 = vld [vmem:[%s12221_s1 + $0x700] sm:$0xff] }
  0xde   :  { %2384 = vmatpush.bf16.msra.mxu0 %v9566_v55  ;;  %v793_v20 = vpop.f32.mrf.mxu2  ;;  %v1171_v25 = vpop.f32.mrf.mxu0 }
  0xdf   :  { %2403 = vmatpush.bf16.msra.mxu1 %v9574_v50  ;;  %v794_v22 = vadd.f32 %v793_v20, %v775_v13  ;;  %v1159_v23 = vpop.f32.mrf.mxu3  ;;  %v1172_v24 = vadd.f32 %v1171_v25, %v1153_v54  ;;  %v1190_v26 = vpop.f32.mrf.mxu1  ;;  %v9616_v54 = vld [vmem:[%s12221_s1 + $0x790] sm:$0xff]  ;;  %v9653_v20 = vld [vmem:[%s12221_s1 + $0x8b8] sm:$0xff] }
  0xe0   :  { %2422 = vmatpush.bf16.msra.mxu2 %v9582_v48  ;;  %v9625_v48 = vld [vmem:[%s12221_s1 + $0x7d8] sm:$0xff] }
  0xe1   :  { %2441 = vmatpush.bf16.msra.mxu3 %v9590_v56  ;;  %v799_v29 = vrot.slane %v794_v22, 1  ;;  %v1191_v32 = vadd.f32 %v1190_v26, %v1172_v24  ;;  %2385 = vmatmul.bf16.vlgmr.msra.gmra.mxu0 %v10103_v45  ;;  %v9600_v56 = vld [vmem:[%s12221_s1 + $0x710] sm:$0xff]  ;;  %v9645_v22 = vld [vmem:[%s12221_s1 + $0x878] sm:$0xff] }
  0xe2   :  { %2915 = vmatpush.bf16.msrb.mxu0 %v9605_v57  ;;  %2404 = vmatmul.bf16.vlgmr.msra.gmra.mxu1 %v10265_v34  ;;  %v9608_v57 = vld [vmem:[%s12221_s1 + $0x750] sm:$0xff] }
  0xe3   :  { %2934 = vmatpush.bf16.msrb.mxu1 %v9613_v53  ;;  %v806_v35 = vsel %vm802_vm0, %v799_v29, %v796_v41  ;;  %2423 = vmatmul.bf16.vlgmr.msra.gmra.mxu2 %v10270_v36  ;;  %v803_v38 = vsel %vm802_vm0, %v798_v11, %v799_v29  ;;  %v9601_v41 = vld [vmem:[%s12221_s1 + $0x718] sm:$0xff]  ;;  %v9652_v24 = vld [vmem:[%s12221_s1 + $0x8b0] sm:$0xff] }
  0xe4   :  { %2953 = vmatpush.bf16.msrb.mxu2 %v9621_v51  ;;  %v10884_v39 = vadd.f32 %v1159_v23, %v806_v35  ;;  %2442 = vmatmul.bf16.vlgmr.msra.gmra.mxu3 %v10272_v37  ;;  %v1158_v40 = vadd.f32 %v1157_v0, %v803_v38  ;;  %v9607_v0 = vld [vmem:[%s12221_s1 + $0x748] sm:$0xff]  ;;  %v9717_v23 = vld [vmem:[%s12221_s1 + $0xab8] sm:$0xff]  ;;  %v9716_v35 = vld [vmem:[%s12221_s1 + $0xab0] sm:$0xff] }
  0xe5   :  { %2972 = vmatpush.bf16.msrb.mxu3 %v9629_v59  ;;  %v9624_v59 = vld [vmem:[%s12221_s1 + $0x7d0] sm:$0xff] }
  0xe6   :  { %2916 = vmatpush.bf16.msrb.mxu0 %v9604_v12  ;;  %v1209_v47 = vpop.f32.mrf.mxu2  ;;  %v1173_v51 = vpop.f32.mrf.mxu0 }
  0xe7   :  { %2935 = vmatpush.bf16.msrb.mxu1 %v9612_v4  ;;  %v1210_v49 = vadd.f32 %v1209_v47, %v1191_v32  ;;  %v1228_v50 = vpop.f32.mrf.mxu3  ;;  %v1174_v52 = vadd.f32 %v1173_v51, %v1155_v18  ;;  %v1192_v53 = vpop.f32.mrf.mxu1  ;;  %v9623_v4 = vld [vmem:[%s12221_s1 + $0x7c8] sm:$0xff] }
  0xe8   :  { %2954 = vmatpush.bf16.msrb.mxu2 %v9620_v60  ;;  %v9615_v60 = vld [vmem:[%s12221_s1 + $0x788] sm:$0xff] }
  0xe9   :  { %2973 = vmatpush.bf16.msrb.mxu3 %v9628_v14  ;;  %v10902_v55 = vadd.f32 %v1228_v50, %v1210_v49  ;;  %v1193_v58 = vadd.f32 %v1192_v53, %v1174_v52  ;;  %v9614_v14 = vld [vmem:[%s12221_s1 + $0x780] sm:$0xff] }
  0xea   :  { %2917 = vmatpush.bf16.msrb.mxu0 %v9603_v19  ;;  %v9622_v19 = vld [vmem:[%s12221_s1 + $0x7c0] sm:$0xff] }
  0xeb   :  { %2936 = vmatpush.bf16.msrb.mxu1 %v9611_v17  ;;  %v9606_v17 = vld [vmem:[%s12221_s1 + $0x740] sm:$0xff] }
  0xec   :  { %2955 = vmatpush.bf16.msrb.mxu2 %v9619_v62 }
  0xed   :  { %2974 = vmatpush.bf16.msrb.mxu3 %v9627_v21  ;;  %v9637_v21 = vld [vmem:[%s12221_s1 + $0x838] sm:$0xff] }
  0xee   :  { %2918 = vmatpush.bf16.msrb.mxu0 %v9602_v30  ;;  %v1211_v3 = vpop.f32.mrf.mxu2  ;;  %v1176_v11 = vpop.f32.mrf.mxu0  ;;  %v9636_v30 = vld [vmem:[%s12221_s1 + $0x830] sm:$0xff] }
  0xef   :  { %2937 = vmatpush.bf16.msrb.mxu1 %v9610_v31  ;;  %v1212_v5 = vadd.f32 %v1211_v3, %v1193_v58  ;;  %v1230_v10 = vpop.f32.mrf.mxu3  ;;  %v1177_v12 = vadd.f32 %v1176_v11, %v1158_v40  ;;  %v1195_v13 = vpop.f32.mrf.mxu1  ;;  %v9644_v31 = vld [vmem:[%s12221_s1 + $0x870] sm:$0xff]  ;;  %v9714_v58 = vld [vmem:[%s12221_s1 + $0xaa0] sm:$0xff] }
  0xf0   :  { %2956 = vmatpush.bf16.msrb.mxu2 %v9618_v28 }
  0xf1   :  { %2975 = vmatpush.bf16.msrb.mxu3 %v9626_v33  ;;  %v10928_v62 = vadd.f32 %v1230_v10, %v1212_v5  ;;  %v1196_v18 = vadd.f32 %v1195_v13, %v1177_v12  ;;  %2390 = vmatmul.bf16.gmra.mxu0 %v10187_v9 }
  0xf2   :  { %2919 = vmatpush.bf16.msrb.mxu0 %v9601_v41  ;;  %2409 = vmatmul.bf16.gmra.mxu1 %v10341_v63  ;;  %v9643_v41 = vld [vmem:[%s12221_s1 + $0x868] sm:$0xff] }
  0xf3   :  { %2938 = vmatpush.bf16.msrb.mxu1 %v9609_v46  ;;  %2428 = vmatmul.bf16.gmra.mxu2 %v10346_v1  ;;  %v9715_v46 = vld [vmem:[%s12221_s1 + $0xaa8] sm:$0xff] }
  0xf4   :  { %2957 = vmatpush.bf16.msrb.mxu2 %v9617_v15  ;;  %2447 = vmatmul.bf16.gmra.mxu3 %v10348_v2  ;;  %v9651_v15 = vld [vmem:[%s12221_s1 + $0x8a8] sm:$0xff] }
  0xf5   :  { %2976 = vmatpush.bf16.msrb.mxu3 %v9625_v48  ;;  %v9650_v48 = vld [vmem:[%s12221_s1 + $0x8a0] sm:$0xff] }
  0xf6   :  { %2920 = vmatpush.bf16.msrb.mxu0 %v9600_v56  ;;  %v1214_v25 = vpop.f32.mrf.mxu2  ;;  %v1178_v29 = vpop.f32.mrf.mxu0 }
  0xf7   :  { %2939 = vmatpush.bf16.msrb.mxu1 %v9608_v57  ;;  %v1215_v26 = vadd.f32 %v1214_v25, %v1196_v18  ;;  %v1233_v28 = vpop.f32.mrf.mxu3  ;;  %v1179_v32 = vadd.f32 %v1178_v29, %v10884_v39  ;;  %v1197_v33 = vpop.f32.mrf.mxu1  ;;  %v9635_v39 = vld [vmem:[%s12221_s1 + $0x828] sm:$0xff]  ;;  %v9642_v57 = vld [vmem:[%s12221_s1 + $0x860] sm:$0xff] }
  0xf8   :  { %2958 = vmatpush.bf16.msrb.mxu2 %v9616_v54  ;;  %v9634_v54 = vld [vmem:[%s12221_s1 + $0x820] sm:$0xff] }
  0xf9   :  { %2977 = vmatpush.bf16.msrb.mxu3 %v9624_v59  ;;  %v10968_v38 = vadd.f32 %v1233_v28, %v1215_v26  ;;  %v1198_v40 = vadd.f32 %v1197_v33, %v1179_v32  ;;  %v9710_v32 = vld [vmem:[%s12221_s1 + $0xa80] sm:$0xff] }
  0xfa   :  { %2921 = vmatpush.bf16.msrb.mxu0 %v9599_v61  ;;  %v9641_v61 = vld [vmem:[%s12221_s1 + $0x858] sm:$0xff] }
  0xfb   :  { %2940 = vmatpush.bf16.msrb.mxu1 %v9607_v0  ;;  %v9713_v0 = vld [vmem:[%s12221_s1 + $0xa98] sm:$0xff] }
  0xfc   :  { %2959 = vmatpush.bf16.msrb.mxu2 %v9615_v60  ;;  %v9633_v60 = vld [vmem:[%s12221_s1 + $0x818] sm:$0xff] }
  0xfd   :  { %2978 = vmatpush.bf16.msrb.mxu3 %v9623_v4  ;;  %v9648_v4 = vld [vmem:[%s12221_s1 + $0x890] sm:$0xff] }
  0xfe   :  { %2922 = vmatpush.bf16.msrb.mxu0 %v9598_v16  ;;  %v1216_v47 = vpop.f32.mrf.mxu2  ;;  %v1247_v51 = vpop.f32.mrf.mxu0  ;;  %v9640_v16 = vld [vmem:[%s12221_s1 + $0x850] sm:$0xff] }
  0xff   :  { %2941 = vmatpush.bf16.msrb.mxu1 %v9606_v17  ;;  %v1217_v49 = vadd.f32 %v1216_v47, %v1198_v40  ;;  %v1235_v50 = vpop.f32.mrf.mxu3  ;;  %v1248_v52 = vadd.f32 %v1247_v51, %v10902_v55  ;;  %v1266_v53 = vpop.f32.mrf.mxu1  ;;  %v9649_v55 = vld [vmem:[%s12221_s1 + $0x898] sm:$0xff]  ;;  %v9712_v17 = vld [vmem:[%s12221_s1 + $0xa90] sm:$0xff] }
 0x100   :  { %2960 = vmatpush.bf16.msrb.mxu2 %v9614_v14  ;;  %v9632_v14 = vld [vmem:[%s12221_s1 + $0x810] sm:$0xff]  ;;  %v9733_v40 = vld [vmem:[%s12221_s1 + $0xb38] sm:$0xff] }
 0x101   :  { %2979 = vmatpush.bf16.msrb.mxu3 %v9622_v19  ;;  %v10989_v56 = vadd.f32 %v1235_v50, %v1217_v49  ;;  %v10997_v59 = vadd.f32 %v1266_v53, %v1248_v52  ;;  %2923 = vmatmul.bf16.vlgmr.msrb.gmra.mxu0 %v10097_v42  ;;  %v9631_v19 = vld [vmem:[%s12221_s1 + $0x808] sm:$0xff]  ;;  %v9732_v49 = vld [vmem:[%s12221_s1 + $0xb30] sm:$0xff] }
 0x102   :  { %2991 = vmatpush.bf16.msra.mxu0 %v9637_v21  ;;  %2942 = vmatmul.bf16.vlgmr.msrb.gmra.mxu1 %v10099_v43  ;;  %v9711_v21 = vld [vmem:[%s12221_s1 + $0xa88] sm:$0xff]  ;;  %v9748_v50 = vld [vmem:[%s12221_s1 + $0xbb0] sm:$0xff] }
 0x103   :  { %3010 = vmatpush.bf16.msra.mxu1 %v9645_v22  ;;  %2961 = vmatmul.bf16.vlgmr.msrb.gmra.mxu2 %v10101_v44 }
 0x104   :  { %3029 = vmatpush.bf16.msra.mxu2 %v9653_v20  ;;  %2980 = vmatmul.bf16.vlgmr.msrb.gmra.mxu3 %v10103_v45  ;;  %v9639_v20 = vld [vmem:[%s12221_s1 + $0x848] sm:$0xff] }
 0x105   :  { %3623 = vmatpush.bf16.msra.mxu3 %v9717_v23  ;;  %v9646_v23 = vld [vmem:[%s12221_s1 + $0x880] sm:$0xff] }
 0x106   :  { %2992 = vmatpush.bf16.msra.mxu0 %v9636_v30  ;;  %v1734_v3 = vpop.f32.mrf.mxu2  ;;  %v1249_v10 = vpop.f32.mrf.mxu0  ;;  %v9630_v30 = vld [vmem:[%s12221_s1 + $0x800] sm:$0xff] }
 0x107   :  { %3011 = vmatpush.bf16.msra.mxu1 %v9644_v31  ;;  %v1753_v5 = vpop.f32.mrf.mxu3  ;;  %v1250_v12 = vadd.f32 %v1249_v10, %v10928_v62  ;;  %v1268_v13 = vpop.f32.mrf.mxu1  ;;  %v9647_v62 = vld [vmem:[%s12221_s1 + $0x888] sm:$0xff]  ;;  %v9638_v31 = vld [vmem:[%s12221_s1 + $0x840] sm:$0xff] }
 0x108   :  { %3030 = vmatpush.bf16.msra.mxu2 %v9652_v24  ;;  %v11018_v11 = vadd.f32 %v1753_v5, %v1734_v3 }
 0x109   :  { %3624 = vmatpush.bf16.msra.mxu3 %v9716_v35  ;;  %v11030_v18 = vadd.f32 %v1268_v13, %v1250_v12  ;;  %v9741_v35 = vld [vmem:[%s12221_s1 + $0xb78] sm:$0xff]  ;;  %v9722_v12 = vld [vmem:[%s12221_s1 + $0xae0] sm:$0xff] }
 0x10a   :  { %2993 = vmatpush.bf16.msra.mxu0 %v9635_v39  ;;  %v9730_v13 = vld [vmem:[%s12221_s1 + $0xb20] sm:$0xff] }
 0x10b   :  { %3012 = vmatpush.bf16.msra.mxu1 %v9643_v41  ;;  %v9740_v41 = vld [vmem:[%s12221_s1 + $0xb70] sm:$0xff] }
 0x10c   :  { %3031 = vmatpush.bf16.msra.mxu2 %v9651_v15  ;;  %v9749_v15 = vld [vmem:[%s12221_s1 + $0xbb8] sm:$0xff] }
 0x10d   :  { %3625 = vmatpush.bf16.msra.mxu3 %v9715_v46  ;;  %v9724_v46 = vld [vmem:[%s12221_s1 + $0xaf0] sm:$0xff] }
 0x10e   :  { %2994 = vmatpush.bf16.msra.mxu0 %v9634_v54  ;;  %v1736_v22 = vpop.f32.mrf.mxu2  ;;  %v1252_v24 = vpop.f32.mrf.mxu0 }
 0x10f   :  { %3013 = vmatpush.bf16.msra.mxu1 %v9642_v57  ;;  %v1755_v25 = vpop.f32.mrf.mxu3  ;;  %v1253_v28 = vadd.f32 %v1252_v24, %v10968_v38  ;;  %v1271_v29 = vpop.f32.mrf.mxu1  ;;  %v9725_v38 = vld [vmem:[%s12221_s1 + $0xaf8] sm:$0xff]  ;;  %v9739_v57 = vld [vmem:[%s12221_s1 + $0xb68] sm:$0xff] }
 0x110   :  { %3032 = vmatpush.bf16.msra.mxu2 %v9650_v48  ;;  %v11047_v26 = vadd.f32 %v1755_v25, %v1736_v22 }
 0x111   :  { %3626 = vmatpush.bf16.msra.mxu3 %v9714_v58  ;;  %v11059_v33 = vadd.f32 %v1271_v29, %v1253_v28  ;;  %2928 = vmatmul.bf16.gmra.mxu0 %v10181_v6  ;;  %v9723_v58 = vld [vmem:[%s12221_s1 + $0xae8] sm:$0xff]  ;;  %v9720_v29 = vld [vmem:[%s12221_s1 + $0xad0] sm:$0xff] }
 0x112   :  { %2995 = vmatpush.bf16.msra.mxu0 %v9633_v60  ;;  %2947 = vmatmul.bf16.gmra.mxu1 %v10183_v7 }
 0x113   :  { %3014 = vmatpush.bf16.msra.mxu1 %v9641_v61  ;;  %2966 = vmatmul.bf16.gmra.mxu2 %v10185_v8  ;;  %v9738_v61 = vld [vmem:[%s12221_s1 + $0xb60] sm:$0xff] }
 0x114   :  { %3033 = vmatpush.bf16.msra.mxu2 %v9649_v55  ;;  %2985 = vmatmul.bf16.gmra.mxu3 %v10187_v9  ;;  %v9731_v55 = vld [vmem:[%s12221_s1 + $0xb28] sm:$0xff] }
 0x115   :  { %3627 = vmatpush.bf16.msra.mxu3 %v9713_v0 }
 0x116   :  { %2996 = vmatpush.bf16.msra.mxu0 %v9632_v14  ;;  %v1739_v39 = vpop.f32.mrf.mxu2  ;;  %v1254_v48 = vpop.f32.mrf.mxu0  ;;  %v9746_v14 = vld [vmem:[%s12221_s1 + $0xba0] sm:$0xff] }
 0x117   :  { %3015 = vmatpush.bf16.msra.mxu1 %v9640_v16  ;;  %v1758_v47 = vpop.f32.mrf.mxu3  ;;  %v1255_v52 = vadd.f32 %v1254_v48, %v10989_v56  ;;  %v1273_v53 = vpop.f32.mrf.mxu1  ;;  %v9747_v56 = vld [vmem:[%s12221_s1 + $0xba8] sm:$0xff] }
 0x118   :  { %3034 = vmatpush.bf16.msra.mxu2 %v9648_v4  ;;  %v11089_v51 = vadd.f32 %v1758_v47, %v1739_v39 }
 0x119   :  { %3628 = vmatpush.bf16.msra.mxu3 %v9712_v17  ;;  %v11092_v54 = vadd.f32 %v1273_v53, %v1255_v52  ;;  %v9721_v17 = vld [vmem:[%s12221_s1 + $0xad8] sm:$0xff]  ;;  %v9718_v52 = vld [vmem:[%s12221_s1 + $0xac0] sm:$0xff] }
 0x11a   :  { %2997 = vmatpush.bf16.msra.mxu0 %v9631_v19  ;;  %v9745_v19 = vld [vmem:[%s12221_s1 + $0xb98] sm:$0xff] }
 0x11b   :  { %3016 = vmatpush.bf16.msra.mxu1 %v9639_v20 }
 0x11c   :  { %3035 = vmatpush.bf16.msra.mxu2 %v9647_v62  ;;  %v9729_v62 = vld [vmem:[%s12221_s1 + $0xb18] sm:$0xff] }
 0x11d   :  { %3629 = vmatpush.bf16.msra.mxu3 %v9711_v21  ;;  %v9736_v21 = vld [vmem:[%s12221_s1 + $0xb50] sm:$0xff] }
 0x11e   :  { %2998 = vmatpush.bf16.msra.mxu0 %v9630_v30  ;;  %v1741_v60 = vpop.f32.mrf.mxu2  ;;  %v1772_v3 = vpop.f32.mrf.mxu0 }
 0x11f   :  { %3017 = vmatpush.bf16.msra.mxu1 %v9638_v31  ;;  %v1760_v0 = vpop.f32.mrf.mxu3  ;;  %v1773_v5 = vadd.f32 %v1772_v3, %v11018_v11  ;;  %v1791_v10 = vpop.f32.mrf.mxu1  ;;  %v9737_v11 = vld [vmem:[%s12221_s1 + $0xb58] sm:$0xff]  ;;  %v9728_v31 = vld [vmem:[%s12221_s1 + $0xb10] sm:$0xff] }
 0x120   :  { %3036 = vmatpush.bf16.msra.mxu2 %v9646_v23  ;;  %v11109_v4 = vadd.f32 %v1760_v0, %v1741_v60  ;;  %v9765_v60 = vld [vmem:[%s12221_s1 + $0xc38] sm:$0xff]  ;;  %v9660_v3 = vld [vmem:[%s12221_s1 + $0x8f0] sm:$0xff] }
 0x121   :  { %3630 = vmatpush.bf16.msra.mxu3 %v9710_v32  ;;  %v1792_v16 = vadd.f32 %v1791_v10, %v1773_v5  ;;  %2999 = vmatmul.bf16.vlgmr.msra.gmra.mxu0 %v10265_v34  ;;  %v9744_v32 = vld [vmem:[%s12221_s1 + $0xb90] sm:$0xff] }
 0x122   :  { %3642 = vmatpush.bf16.msrb.mxu0 %v9725_v38  ;;  %3018 = vmatmul.bf16.vlgmr.msra.gmra.mxu1 %v10270_v36  ;;  %v9719_v38 = vld [vmem:[%s12221_s1 + $0xac8] sm:$0xff]  ;;  %v9756_v5 = vld [vmem:[%s12221_s1 + $0xbf0] sm:$0xff] }
 0x123   :  { %3661 = vmatpush.bf16.msrb.mxu1 %v9733_v40  ;;  %3037 = vmatmul.bf16.vlgmr.msra.gmra.mxu2 %v10272_v37  ;;  %v9727_v40 = vld [vmem:[%s12221_s1 + $0xb08] sm:$0xff] }
 0x124   :  { %3680 = vmatpush.bf16.msrb.mxu2 %v9741_v35  ;;  %3631 = vmatmul.bf16.vlgmr.msra.gmra.mxu3 %v10097_v42 }
 0x125   :  { %3699 = vmatpush.bf16.msrb.mxu3 %v9749_v15  ;;  %v9743_v15 = vld [vmem:[%s12221_s1 + $0xb88] sm:$0xff] }
 0x126   :  { %3643 = vmatpush.bf16.msrb.mxu0 %v9724_v46  ;;  %v1810_v20 = vpop.f32.mrf.mxu2  ;;  %v1774_v25 = vpop.f32.mrf.mxu0 }
 0x127   :  { %3662 = vmatpush.bf16.msrb.mxu1 %v9732_v49  ;;  %v1811_v22 = vadd.f32 %v1810_v20, %v1792_v16  ;;  %v1829_v23 = vpop.f32.mrf.mxu3  ;;  %v1775_v24 = vadd.f32 %v1774_v25, %v11047_v26  ;;  %v1793_v28 = vpop.f32.mrf.mxu1  ;;  %v9735_v26 = vld [vmem:[%s12221_s1 + $0xb48] sm:$0xff]  ;;  %v9668_v16 = vld [vmem:[%s12221_s1 + $0x930] sm:$0xff]  ;;  %v9658_v25 = vld [vmem:[%s12221_s1 + $0x8e0] sm:$0xff] }
 0x128   :  { %3681 = vmatpush.bf16.msrb.mxu2 %v9740_v41  ;;  %v9734_v41 = vld [vmem:[%s12221_s1 + $0xb40] sm:$0xff]  ;;  %v9659_v20 = vld [vmem:[%s12221_s1 + $0x8e8] sm:$0xff] }
 0x129   :  { %3700 = vmatpush.bf16.msrb.mxu3 %v9748_v50  ;;  %v11144_v30 = vadd.f32 %v1829_v23, %v1811_v22  ;;  %v1794_v35 = vadd.f32 %v1793_v28, %v1775_v24  ;;  %v9667_v22 = vld [vmem:[%s12221_s1 + $0x928] sm:$0xff] }
 0x12a   :  { %3644 = vmatpush.bf16.msrb.mxu0 %v9723_v58  ;;  %v9742_v58 = vld [vmem:[%s12221_s1 + $0xb80] sm:$0xff] }
 0x12b   :  { %3663 = vmatpush.bf16.msrb.mxu1 %v9731_v55 }
 0x12c   :  { %3682 = vmatpush.bf16.msrb.mxu2 %v9739_v57  ;;  %v9726_v57 = vld [vmem:[%s12221_s1 + $0xb00] sm:$0xff] }
 0x12d   :  { %3701 = vmatpush.bf16.msrb.mxu3 %v9747_v56  ;;  %v9757_v56 = vld [vmem:[%s12221_s1 + $0xbf8] sm:$0xff] }
 0x12e   :  { %3645 = vmatpush.bf16.msrb.mxu0 %v9722_v12  ;;  %v1812_v39 = vpop.f32.mrf.mxu2  ;;  %v1777_v48 = vpop.f32.mrf.mxu0 }
 0x12f   :  { %3664 = vmatpush.bf16.msrb.mxu1 %v9730_v13  ;;  %v1813_v46 = vadd.f32 %v1812_v39, %v1794_v35  ;;  %v1831_v47 = vpop.f32.mrf.mxu3  ;;  %v1778_v49 = vadd.f32 %v1777_v48, %v11089_v51  ;;  %v1796_v50 = vpop.f32.mrf.mxu1  ;;  %v9661_v51 = vld [vmem:[%s12221_s1 + $0x8f8] sm:$0xff]  ;;  %v9754_v35 = vld [vmem:[%s12221_s1 + $0xbe0] sm:$0xff] }
 0x130   :  { %3683 = vmatpush.bf16.msrb.mxu2 %v9738_v61  ;;  %v9669_v61 = vld [vmem:[%s12221_s1 + $0x938] sm:$0xff] }
 0x131   :  { %3702 = vmatpush.bf16.msrb.mxu3 %v9746_v14  ;;  %v11171_v53 = vadd.f32 %v1831_v47, %v1813_v46  ;;  %v1797_v55 = vadd.f32 %v1796_v50, %v1778_v49  ;;  %3004 = vmatmul.bf16.gmra.mxu0 %v10341_v63  ;;  %v9764_v14 = vld [vmem:[%s12221_s1 + $0xc30] sm:$0xff]  ;;  %v9761_v39 = vld [vmem:[%s12221_s1 + $0xc18] sm:$0xff] }
 0x132   :  { %3646 = vmatpush.bf16.msrb.mxu0 %v9721_v17  ;;  %3023 = vmatmul.bf16.gmra.mxu1 %v10346_v1  ;;  %v9656_v47 = vld [vmem:[%s12221_s1 + $0x8d0] sm:$0xff] }
 0x133   :  { %3665 = vmatpush.bf16.msrb.mxu1 %v9729_v62  ;;  %3042 = vmatmul.bf16.gmra.mxu2 %v10348_v2 }
 0x134   :  { %3684 = vmatpush.bf16.msrb.mxu2 %v9737_v11  ;;  %3636 = vmatmul.bf16.gmra.mxu3 %v10181_v6 }
 0x135   :  { %3703 = vmatpush.bf16.msrb.mxu3 %v9745_v19 }
 0x136   :  { %3647 = vmatpush.bf16.msrb.mxu0 %v9720_v29  ;;  %v1815_v0 = vpop.f32.mrf.mxu2  ;;  %v1779_v13 = vpop.f32.mrf.mxu0 }
 0x137   :  { %3666 = vmatpush.bf16.msrb.mxu1 %v9728_v31  ;;  %v1816_v10 = vadd.f32 %v1815_v0, %v1797_v55  ;;  %v1834_v12 = vpop.f32.mrf.mxu3  ;;  %v1780_v11 = vadd.f32 %v1779_v13, %v11109_v4  ;;  %v1798_v17 = vpop.f32.mrf.mxu1  ;;  %v9763_v4 = vld [vmem:[%s12221_s1 + $0xc28] sm:$0xff] }
 0x138   :  { %3685 = vmatpush.bf16.msrb.mxu2 %v9736_v21  ;;  %v9755_v21 = vld [vmem:[%s12221_s1 + $0xbe8] sm:$0xff] }
 0x139   :  { %3704 = vmatpush.bf16.msrb.mxu3 %v9744_v32  ;;  %v11208_v62 = vadd.f32 %v1834_v12, %v1816_v10  ;;  %v1799_v19 = vadd.f32 %v1798_v17, %v1780_v11  ;;  %v9759_v10 = vld [vmem:[%s12221_s1 + $0xc08] sm:$0xff] }
 0x13a   :  { %3648 = vmatpush.bf16.msrb.mxu0 %v9719_v38  ;;  %v9762_v38 = vld [vmem:[%s12221_s1 + $0xc20] sm:$0xff]  ;;  %v9663_v12 = vld [vmem:[%s12221_s1 + $0x908] sm:$0xff] }
 0x13b   :  { %3667 = vmatpush.bf16.msrb.mxu1 %v9727_v40  ;;  %v9666_v40 = vld [vmem:[%s12221_s1 + $0x920] sm:$0xff] }
 0x13c   :  { %3686 = vmatpush.bf16.msrb.mxu2 %v9735_v26 }
 0x13d   :  { %3705 = vmatpush.bf16.msrb.mxu3 %v9743_v15  ;;  %v9753_v15 = vld [vmem:[%s12221_s1 + $0xbd8] sm:$0xff] }
 0x13e   :  { %3649 = vmatpush.bf16.msrb.mxu0 %v9718_v52  ;;  %v1817_v23 = vpop.f32.mrf.mxu2  ;;  %v1848_v29 = vpop.f32.mrf.mxu0 }
 0x13f   :  { %3668 = vmatpush.bf16.msrb.mxu1 %v9726_v57  ;;  %v1818_v24 = vadd.f32 %v1817_v23, %v1799_v19  ;;  %v1836_v28 = vpop.f32.mrf.mxu3  ;;  %v11226_v31 = vadd.f32 %v1848_v29, %v11144_v30  ;;  %v2329_v32 = vpop.f32.mrf.mxu1  ;;  %v9657_v30 = vld [vmem:[%s12221_s1 + $0x8d8] sm:$0xff] }
 0x140   :  { %3687 = vmatpush.bf16.msrb.mxu2 %v9734_v41  ;;  %v9665_v41 = vld [vmem:[%s12221_s1 + $0x918] sm:$0xff] }
 0x141   :  { %3706 = vmatpush.bf16.msrb.mxu3 %v9742_v58  ;;  %v11231_v26 = vadd.f32 %v1836_v28, %v1818_v24  ;;  %3650 = vmatmul.bf16.vlgmr.msrb.gmra.mxu0 %v10099_v43  ;;  %v9752_v58 = vld [vmem:[%s12221_s1 + $0xbd0] sm:$0xff]  ;;  %v9685_v24 = vld [vmem:[%s12221_s1 + $0x9b8] sm:$0xff] }
 0x142   :  { %3718 = vmatpush.bf16.msra.mxu0 %v9757_v56  ;;  %3669 = vmatmul.bf16.vlgmr.msrb.gmra.mxu1 %v10101_v44  ;;  %v1858_v56 = vrot.slane %v11226_v31, 2  ;;  %v9701_v28 = vld [vmem:[%s12221_s1 + $0xa38] sm:$0xff] }
 0x143   :  { %3737 = vmatpush.bf16.msra.mxu1 %v9765_v60  ;;  %3688 = vmatmul.bf16.vlgmr.msrb.gmra.mxu2 %v10103_v45 }
 0x144   :  { %4100 = vmatpush.bf16.msra.mxu2 %v9661_v51  ;;  %3707 = vmatmul.bf16.vlgmr.msrb.gmra.mxu3 %v10265_v34  ;;  %v9760_v51 = vld [vmem:[%s12221_s1 + $0xc10] sm:$0xff] }
 0x145   :  { %4119 = vmatpush.bf16.msra.mxu3 %v9669_v61  ;;  %v9655_v61 = vld [vmem:[%s12221_s1 + $0x8c8] sm:$0xff] }
 0x146   :  { %3719 = vmatpush.bf16.msra.mxu0 %v9756_v5  ;;  %v2348_v46 = vpop.f32.mrf.mxu2  ;;  %v1850_v50 = vpop.f32.mrf.mxu0 }
 0x147   :  { %3738 = vmatpush.bf16.msra.mxu1 %v9764_v14  ;;  %v2349_v48 = vadd.f32 %v2348_v46, %v2329_v32  ;;  %v2367_v49 = vpop.f32.mrf.mxu3  ;;  %v1851_v52 = vadd.f32 %v1850_v50, %v11171_v53  ;;  %v2331_v57 = vpop.f32.mrf.mxu1  ;;  %v9664_v53 = vld [vmem:[%s12221_s1 + $0x910] sm:$0xff]  ;;  %v9654_v14 = vld [vmem:[%s12221_s1 + $0x8c0] sm:$0xff]  ;;  %v9691_v50 = vld [vmem:[%s12221_s1 + $0x9e8] sm:$0xff] }
 0x148   :  { %4101 = vmatpush.bf16.msra.mxu2 %v9660_v3  ;;  %v9751_v3 = vld [vmem:[%s12221_s1 + $0xbc8] sm:$0xff] }
 0x149   :  { %4120 = vmatpush.bf16.msra.mxu3 %v9668_v16  ;;  %v11262_v55 = vadd.f32 %v2367_v49, %v2349_v48  ;;  %v1859_v60 = vrot.slane %v1851_v52, 2  ;;  %v9675_v52 = vld [vmem:[%s12221_s1 + $0x968] sm:$0xff] }
 0x14a   :  { %3720 = vmatpush.bf16.msra.mxu0 %v9755_v21 }
 0x14b   :  { %3739 = vmatpush.bf16.msra.mxu1 %v9763_v4  ;;  %v1865_v0 = vsel %vm1862_vm1, %v1858_v56, %v1859_v60  ;;  %v9758_v4 = vld [vmem:[%s12221_s1 + $0xc00] sm:$0xff] }
 0x14c   :  { %4102 = vmatpush.bf16.msra.mxu2 %v9659_v20  ;;  %v11283_v5 = vadd.f32 %v1865_v0, %v10997_v59  ;;  %v9750_v20 = vld [vmem:[%s12221_s1 + $0xbc0] sm:$0xff] }
 0x14d   :  { %4121 = vmatpush.bf16.msra.mxu3 %v9667_v22  ;;  %v9662_v22 = vld [vmem:[%s12221_s1 + $0x900] sm:$0xff] }
 0x14e   :  { %3721 = vmatpush.bf16.msra.mxu0 %v9754_v35  ;;  %v2350_v13 = vpop.f32.mrf.mxu2  ;;  %v1853_v59 = vpop.f32.mrf.mxu0  ;;  %v9690_v0 = vld [vmem:[%s12221_s1 + $0x9e0] sm:$0xff] }
 0x14f   :  { %3740 = vmatpush.bf16.msra.mxu1 %v9762_v38  ;;  %v2351_v16 = vadd.f32 %v2350_v13, %v2331_v57  ;;  %v2369_v11 = vpop.f32.mrf.mxu3  ;;  %v1854_v17 = vadd.f32 %v1853_v59, %v11208_v62  ;;  %v2334_v19 = vpop.f32.mrf.mxu1  ;;  %v9693_v62 = vld [vmem:[%s12221_s1 + $0x9f8] sm:$0xff]  ;;  %v9692_v38 = vld [vmem:[%s12221_s1 + $0x9f0] sm:$0xff]  ;;  %v9699_v57 = vld [vmem:[%s12221_s1 + $0xa28] sm:$0xff] }
 0x150   :  { %4103 = vmatpush.bf16.msra.mxu2 %v9658_v25  ;;  %v9677_v25 = vld [vmem:[%s12221_s1 + $0x978] sm:$0xff]  ;;  %v9682_v13 = vld [vmem:[%s12221_s1 + $0x9a0] sm:$0xff] }
 0x151   :  { %4122 = vmatpush.bf16.msra.mxu3 %v9666_v40  ;;  %v11298_v21 = vadd.f32 %v2369_v11, %v2351_v16  ;;  %v1860_v23 = vrot.slane %v1854_v17, 2  ;;  %3655 = vmatmul.bf16.gmra.mxu0 %v10183_v7  ;;  %v9676_v40 = vld [vmem:[%s12221_s1 + $0x970] sm:$0xff]  ;;  %v9673_v11 = vld [vmem:[%s12221_s1 + $0x958] sm:$0xff] }
 0x152   :  { %3722 = vmatpush.bf16.msra.mxu0 %v9753_v15  ;;  %3674 = vmatmul.bf16.gmra.mxu1 %v10185_v8  ;;  %v9681_v59 = vld [vmem:[%s12221_s1 + $0x998] sm:$0xff] }
 0x153   :  { %3741 = vmatpush.bf16.msra.mxu1 %v9761_v39  ;;  %3693 = vmatmul.bf16.gmra.mxu2 %v10187_v9  ;;  %v1864_v29 = vsel %vm1862_vm1, %v1859_v60, %v1860_v23  ;;  %v9697_v17 = vld [vmem:[%s12221_s1 + $0xa18] sm:$0xff] }
 0x154   :  { %4104 = vmatpush.bf16.msra.mxu2 %v9657_v30  ;;  %3712 = vmatmul.bf16.gmra.mxu3 %v10341_v63  ;;  %v11325_v32 = vadd.f32 %v1864_v29, %v11030_v18  ;;  %v9684_v18 = vld [vmem:[%s12221_s1 + $0x9b0] sm:$0xff] }
 0x155   :  { %4123 = vmatpush.bf16.msra.mxu3 %v9665_v41  ;;  %v9700_v41 = vld [vmem:[%s12221_s1 + $0xa30] sm:$0xff] }
 0x156   :  { %3723 = vmatpush.bf16.msra.mxu0 %v9752_v58  ;;  %v2353_v35 = vpop.f32.mrf.mxu2  ;;  %v1855_v39 = vpop.f32.mrf.mxu0  ;;  %v9680_v29 = vld [vmem:[%s12221_s1 + $0x990] sm:$0xff] }
 0x157   :  { %3742 = vmatpush.bf16.msra.mxu1 %v9760_v51  ;;  %v2354_v30 = vadd.f32 %v2353_v35, %v2334_v19  ;;  %v2372_v15 = vpop.f32.mrf.mxu3  ;;  %v1856_v46 = vadd.f32 %v1855_v39, %v11231_v26  ;;  %v9683_v26 = vld [vmem:[%s12221_s1 + $0x9a8] sm:$0xff]  ;;  %v9696_v35 = vld [vmem:[%s12221_s1 + $0xa10] sm:$0xff] }
 0x158   :  { %4105 = vmatpush.bf16.msra.mxu2 %v9656_v47  ;;  %v2336_v47 = vpop.f32.mrf.mxu1 }
 0x159   :  { %4124 = vmatpush.bf16.msra.mxu3 %v9664_v53  ;;  %v11340_v48 = vadd.f32 %v2372_v15, %v2354_v30  ;;  %v1861_v49 = vrot.slane %v1856_v46, 2  ;;  %v9679_v30 = vld [vmem:[%s12221_s1 + $0x988] sm:$0xff] }
 0x15a   :  { %3724 = vmatpush.bf16.msra.mxu0 %v9751_v3  ;;  %v9695_v15 = vld [vmem:[%s12221_s1 + $0xa08] sm:$0xff] }
 0x15b   :  { %3743 = vmatpush.bf16.msra.mxu1 %v9759_v10  ;;  %v1863_v58 = vsel %vm1862_vm1, %v1860_v23, %v1861_v49  ;;  %v1866_v51 = vsel %vm1862_vm1, %v1861_v49, %v1858_v56 }
 0x15c   :  { %4106 = vmatpush.bf16.msra.mxu2 %v9655_v61  ;;  %v11361_v53 = vadd.f32 %v1863_v58, %v11059_v33  ;;  %v11364_v60 = vadd.f32 %v1866_v51, %v11092_v54  ;;  %v9674_v33 = vld [vmem:[%s12221_s1 + $0x960] sm:$0xff]  ;;  %v9781_v51 = vld [vmem:[%s12221_s1 + $0xcb8] sm:$0xff] }
 0x15d   :  { %4125 = vmatpush.bf16.msra.mxu3 %v9663_v12  ;;  %v9694_v58 = vld [vmem:[%s12221_s1 + $0xa00] sm:$0xff] }
 0x15e   :  { %3725 = vmatpush.bf16.msra.mxu0 %v9750_v20  ;;  %v2355_v61 = vpop.f32.mrf.mxu2  ;;  %v2386_v12 = vpop.f32.mrf.mxu0  ;;  %v9688_v20 = vld [vmem:[%s12221_s1 + $0x9d0] sm:$0xff] }
 0x15f   :  { %3744 = vmatpush.bf16.msra.mxu1 %v9758_v4  ;;  %v2356_v3 = vadd.f32 %v2355_v61, %v2336_v47  ;;  %v2374_v10 = vpop.f32.mrf.mxu3  ;;  %v2387_v31 = vadd.f32 %v2386_v12, %v11262_v55  ;;  %v9689_v55 = vld [vmem:[%s12221_s1 + $0x9d8] sm:$0xff] }
 0x160   :  { %4107 = vmatpush.bf16.msra.mxu2 %v9654_v14  ;;  %v2405_v56 = vpop.f32.mrf.mxu1  ;;  %v9698_v14 = vld [vmem:[%s12221_s1 + $0xa20] sm:$0xff]  ;;  %v9709_v61 = vld [vmem:[%s12221_s1 + $0xa78] sm:$0xff] }
 0x161   :  { %4126 = vmatpush.bf16.msra.mxu3 %v9662_v22  ;;  %v11373_v54 = vadd.f32 %v2374_v10, %v2356_v3  ;;  %v2406_v16 = vadd.f32 %v2405_v56, %v2387_v31  ;;  %3726 = vmatmul.bf16.vlgmr.msra.gmra.mxu0 %v10270_v36  ;;  %v9773_v10 = vld [vmem:[%s12221_s1 + $0xc78] sm:$0xff] }
 0x162   :  { %4138 = vmatpush.bf16.msrb.mxu0 %v9677_v25  ;;  %3745 = vmatmul.bf16.vlgmr.msra.gmra.mxu1 %v10272_v37  ;;  %v9789_v12 = vld [vmem:[%s12221_s1 + $0xcf8] sm:$0xff] }
 0x163   :  { %4157 = vmatpush.bf16.msrb.mxu1 %v9685_v24  ;;  %4108 = vmatmul.bf16.vlgmr.msra.gmra.mxu2 %v10097_v42  ;;  %v9672_v24 = vld [vmem:[%s12221_s1 + $0x950] sm:$0xff] }
 0x164   :  { %4176 = vmatpush.bf16.msrb.mxu2 %v9693_v62  ;;  %4127 = vmatmul.bf16.vlgmr.msra.gmra.mxu3 %v10099_v43 }
 0x165   :  { %4195 = vmatpush.bf16.msrb.mxu3 %v9701_v28 }
 0x166   :  { %4139 = vmatpush.bf16.msrb.mxu0 %v9676_v40  ;;  %v2424_v19 = vpop.f32.mrf.mxu2  ;;  %v2388_v23 = vpop.f32.mrf.mxu0  ;;  %v9671_v40 = vld [vmem:[%s12221_s1 + $0x948] sm:$0xff] }
 0x167   :  { %4158 = vmatpush.bf16.msrb.mxu1 %v9684_v18  ;;  %v2425_v4 = vadd.f32 %v2424_v19, %v2406_v16  ;;  %v2443_v22 = vpop.f32.mrf.mxu3  ;;  %v2389_v62 = vadd.f32 %v2388_v23, %v11298_v21  ;;  %v9687_v21 = vld [vmem:[%s12221_s1 + $0x9c8] sm:$0xff]  ;;  %v9686_v18 = vld [vmem:[%s12221_s1 + $0x9c0] sm:$0xff] }
 0x168   :  { %4177 = vmatpush.bf16.msrb.mxu2 %v9692_v38  ;;  %v2407_v25 = vpop.f32.mrf.mxu1  ;;  %v9707_v23 = vld [vmem:[%s12221_s1 + $0xa68] sm:$0xff] }
 0x169   :  { %4196 = vmatpush.bf16.msrb.mxu3 %v9700_v41  ;;  %v11404_v28 = vadd.f32 %v2443_v22, %v2425_v4  ;;  %v2408_v38 = vadd.f32 %v2407_v25, %v2389_v62  ;;  %v9779_v22 = vld [vmem:[%s12221_s1 + $0xca8] sm:$0xff] }
 0x16a   :  { %4140 = vmatpush.bf16.msrb.mxu0 %v9675_v52  ;;  %v9670_v52 = vld [vmem:[%s12221_s1 + $0x940] sm:$0xff]  ;;  %v9787_v25 = vld [vmem:[%s12221_s1 + $0xce8] sm:$0xff] }
 0x16b   :  { %4159 = vmatpush.bf16.msrb.mxu1 %v9683_v26 }
 0x16c   :  { %4178 = vmatpush.bf16.msrb.mxu2 %v9691_v50 }
 0x16d   :  { %4197 = vmatpush.bf16.msrb.mxu3 %v9699_v57  ;;  %v9678_v57 = vld [vmem:[%s12221_s1 + $0x980] sm:$0xff] }
 0x16e   :  { %4141 = vmatpush.bf16.msrb.mxu0 %v9674_v33  ;;  %v2426_v39 = vpop.f32.mrf.mxu2  ;;  %v2391_v47 = vpop.f32.mrf.mxu0 }
 0x16f   :  { %4160 = vmatpush.bf16.msrb.mxu1 %v9682_v13  ;;  %v2427_v41 = vadd.f32 %v2426_v39, %v2408_v38  ;;  %v2445_v46 = vpop.f32.mrf.mxu3  ;;  %v2392_v49 = vadd.f32 %v2391_v47, %v11340_v48  ;;  %v9780_v13 = vld [vmem:[%s12221_s1 + $0xcb0] sm:$0xff]  ;;  %v9778_v38 = vld [vmem:[%s12221_s1 + $0xca0] sm:$0xff]  ;;  %v9777_v47 = vld [vmem:[%s12221_s1 + $0xc98] sm:$0xff] }
 0x170   :  { %4179 = vmatpush.bf16.msrb.mxu2 %v9690_v0  ;;  %v2410_v50 = vpop.f32.mrf.mxu1  ;;  %v2453_v0 = vrot.slane %v11404_v28, 3  ;;  %v9706_v39 = vld [vmem:[%s12221_s1 + $0xa60] sm:$0xff] }
 0x171   :  { %4198 = vmatpush.bf16.msrb.mxu3 %v9698_v14  ;;  %v2446_v26 = vadd.f32 %v2445_v46, %v2427_v41  ;;  %v2411_v48 = vadd.f32 %v2410_v50, %v2392_v49  ;;  %3731 = vmatmul.bf16.gmra.mxu0 %v10346_v1  ;;  %v9708_v14 = vld [vmem:[%s12221_s1 + $0xa70] sm:$0xff]  ;;  %v9770_v41 = vld [vmem:[%s12221_s1 + $0xc60] sm:$0xff]  ;;  %v9705_v50 = vld [vmem:[%s12221_s1 + $0xa58] sm:$0xff] }
 0x172   :  { %4142 = vmatpush.bf16.msrb.mxu0 %v9673_v11  ;;  %3750 = vmatmul.bf16.gmra.mxu1 %v10348_v2  ;;  %v9786_v46 = vld [vmem:[%s12221_s1 + $0xce0] sm:$0xff] }
 0x173   :  { %4161 = vmatpush.bf16.msrb.mxu1 %v9681_v59  ;;  %v2454_v3 = vrot.slane %v2446_v26, 3  ;;  %4113 = vmatmul.bf16.gmra.mxu2 %v10181_v6  ;;  %v9788_v59 = vld [vmem:[%s12221_s1 + $0xcf0] sm:$0xff] }
 0x174   :  { %4180 = vmatpush.bf16.msrb.mxu2 %v9689_v55  ;;  %4132 = vmatmul.bf16.gmra.mxu3 %v10183_v7 }
 0x175   :  { %4199 = vmatpush.bf16.msrb.mxu3 %v9697_v17  ;;  %v2460_v31 = vsel %vm2457_vm2, %v2453_v0, %v2454_v3 }
 0x176   :  { %4143 = vmatpush.bf16.msrb.mxu0 %v9672_v24  ;;  %v11460_v56 = vadd.f32 %v2460_v31, %v11283_v5  ;;  %v2429_v33 = vpop.f32.mrf.mxu2  ;;  %v2393_v11 = vpop.f32.mrf.mxu0  ;;  %v9772_v5 = vld [vmem:[%s12221_s1 + $0xc70] sm:$0xff] }
 0x177   :  { %4162 = vmatpush.bf16.msrb.mxu1 %v9680_v29  ;;  %v2430_v16 = vadd.f32 %v2429_v33, %v2411_v48  ;;  %v2448_v55 = vpop.f32.mrf.mxu3  ;;  %v2394_v17 = vadd.f32 %v2393_v11, %v11373_v54  ;;  %v9771_v54 = vld [vmem:[%s12221_s1 + $0xc68] sm:$0xff]  ;;  %v9704_v31 = vld [vmem:[%s12221_s1 + $0xa50] sm:$0xff] }
 0x178   :  { %4181 = vmatpush.bf16.msrb.mxu2 %v9688_v20  ;;  %v2412_v19 = vpop.f32.mrf.mxu1  ;;  %v9783_v11 = vld [vmem:[%s12221_s1 + $0xcc8] sm:$0xff] }
 0x179   :  { %4200 = vmatpush.bf16.msrb.mxu3 %v9696_v35  ;;  %v2449_v20 = vadd.f32 %v2448_v55, %v2430_v16  ;;  %v2413_v4 = vadd.f32 %v2412_v19, %v2394_v17  ;;  %v9703_v16 = vld [vmem:[%s12221_s1 + $0xa48] sm:$0xff] }
 0x17a   :  { %4144 = vmatpush.bf16.msrb.mxu0 %v9671_v40  ;;  %v9767_v55 = vld [vmem:[%s12221_s1 + $0xc48] sm:$0xff] }
 0x17b   :  { %4163 = vmatpush.bf16.msrb.mxu1 %v9679_v30  ;;  %v2455_v62 = vrot.slane %v2449_v20, 3 }
 0x17c   :  { %4182 = vmatpush.bf16.msrb.mxu2 %v9687_v21 }
 0x17d   :  { %4201 = vmatpush.bf16.msrb.mxu3 %v9695_v15  ;;  %v2459_v24 = vsel %vm2457_vm2, %v2454_v3, %v2455_v62 }
 0x17e   :  { %4145 = vmatpush.bf16.msrb.mxu0 %v9670_v52  ;;  %v11490_v29 = vadd.f32 %v2459_v24, %v11325_v32  ;;  %v2431_v35 = vpop.f32.mrf.mxu2  ;;  %v2924_v30 = vpop.f32.mrf.mxu0  ;;  %v9813_v24 = vld [vmem:[%s12221_s1 + $0xdb8] sm:$0xff] }
 0x17f   :  { %4164 = vmatpush.bf16.msrb.mxu1 %v9678_v57  ;;  %v2432_v21 = vadd.f32 %v2431_v35, %v2413_v4  ;;  %v2450_v40 = vpop.f32.mrf.mxu3  ;;  %v9769_v57 = vld [vmem:[%s12221_s1 + $0xc58] sm:$0xff] }
 0x180   :  { %4183 = vmatpush.bf16.msrb.mxu2 %v9686_v18  ;;  %v2943_v15 = vpop.f32.mrf.mxu1  ;;  %v9797_v35 = vld [vmem:[%s12221_s1 + $0xd38] sm:$0xff] }
 0x181   :  { %4202 = vmatpush.bf16.msrb.mxu3 %v9694_v58  ;;  %v2451_v18 = vadd.f32 %v2450_v40, %v2432_v21  ;;  %v2944_v32 = vadd.f32 %v2943_v15, %v2924_v30  ;;  %4146 = vmatmul.bf16.vlgmr.msrb.gmra.mxu0 %v10101_v44  ;;  %v9785_v58 = vld [vmem:[%s12221_s1 + $0xcd8] sm:$0xff]  ;;  %v9812_v30 = vld [vmem:[%s12221_s1 + $0xdb0] sm:$0xff] }
 0x182   :  { %4214 = vmatpush.bf16.msra.mxu0 %v9709_v61  ;;  %4165 = vmatmul.bf16.vlgmr.msrb.gmra.mxu1 %v10103_v45  ;;  %v9776_v61 = vld [vmem:[%s12221_s1 + $0xc90] sm:$0xff]  ;;  %v9821_v21 = vld [vmem:[%s12221_s1 + $0xdf8] sm:$0xff] }
 0x183   :  { %4682 = vmatpush.bf16.msra.mxu1 %v9773_v10  ;;  %v2456_v49 = vrot.slane %v2451_v18, 3  ;;  %4184 = vmatmul.bf16.vlgmr.msrb.gmra.mxu2 %v10265_v34  ;;  %v9796_v15 = vld [vmem:[%s12221_s1 + $0xd30] sm:$0xff] }
 0x184   :  { %4701 = vmatpush.bf16.msra.mxu2 %v9781_v51  ;;  %4203 = vmatmul.bf16.vlgmr.msrb.gmra.mxu3 %v10270_v36 }
 0x185   :  { %4720 = vmatpush.bf16.msra.mxu3 %v9789_v12  ;;  %v2458_v52 = vsel %vm2457_vm2, %v2455_v62, %v2456_v49  ;;  %v2461_v26 = vsel %vm2457_vm2, %v2456_v49, %v2453_v0 }
 0x186   :  { %4215 = vmatpush.bf16.msra.mxu0 %v9708_v14  ;;  %v11527_v48 = vadd.f32 %v2458_v52, %v11361_v53  ;;  %v11530_v51 = vadd.f32 %v2461_v26, %v11364_v60  ;;  %v2962_v28 = vpop.f32.mrf.mxu2  ;;  %v2926_v10 = vpop.f32.mrf.mxu0  ;;  %v9768_v60 = vld [vmem:[%s12221_s1 + $0xc50] sm:$0xff]  ;;  %v9775_v14 = vld [vmem:[%s12221_s1 + $0xc88] sm:$0xff] }
 0x187   :  { %4683 = vmatpush.bf16.msra.mxu1 %v9772_v5  ;;  %v2963_v0 = vadd.f32 %v2962_v28, %v2944_v32  ;;  %v2981_v3 = vpop.f32.mrf.mxu3  ;;  %v9811_v52 = vld [vmem:[%s12221_s1 + $0xda8] sm:$0xff] }
 0x188   :  { %4702 = vmatpush.bf16.msra.mxu2 %v9780_v13  ;;  %v2945_v12 = vpop.f32.mrf.mxu1  ;;  %v9784_v13 = vld [vmem:[%s12221_s1 + $0xcd0] sm:$0xff]  ;;  %v9795_v26 = vld [vmem:[%s12221_s1 + $0xd28] sm:$0xff] }
 0x189   :  { %4721 = vmatpush.bf16.msra.mxu3 %v9788_v59  ;;  %v11538_v53 = vadd.f32 %v2981_v3, %v2963_v0  ;;  %v2946_v33 = vadd.f32 %v2945_v12, %v2926_v10  ;;  %v9774_v59 = vld [vmem:[%s12221_s1 + $0xc80] sm:$0xff] }
 0x18a   :  { %4216 = vmatpush.bf16.msra.mxu0 %v9707_v23 }
 0x18b   :  { %4684 = vmatpush.bf16.msra.mxu1 %v9771_v54  ;;  %v9766_v54 = vld [vmem:[%s12221_s1 + $0xc40] sm:$0xff] }
 0x18c   :  { %4703 = vmatpush.bf16.msra.mxu2 %v9779_v22  ;;  %v9702_v22 = vld [vmem:[%s12221_s1 + $0xa40] sm:$0xff] }
 0x18d   :  { %4722 = vmatpush.bf16.msra.mxu3 %v9787_v25  ;;  %v9782_v25 = vld [vmem:[%s12221_s1 + $0xcc0] sm:$0xff] }
 0x18e   :  { %4217 = vmatpush.bf16.msra.mxu0 %v9706_v39  ;;  %v2964_v5 = vpop.f32.mrf.mxu2  ;;  %v2929_v20 = vpop.f32.mrf.mxu0 }
 0x18f   :  { %4685 = vmatpush.bf16.msra.mxu1 %v9770_v41  ;;  %v2965_v17 = vadd.f32 %v2964_v5, %v2946_v33  ;;  %v2983_v19 = vpop.f32.mrf.mxu3  ;;  %v9804_v41 = vld [vmem:[%s12221_s1 + $0xd70] sm:$0xff]  ;;  %v9794_v33 = vld [vmem:[%s12221_s1 + $0xd20] sm:$0xff]  ;;  %v9817_v5 = vld [vmem:[%s12221_s1 + $0xdd8] sm:$0xff] }
 0x190   :  { %4704 = vmatpush.bf16.msra.mxu2 %v9778_v38  ;;  %v2948_v4 = vpop.f32.mrf.mxu1  ;;  %v9805_v38 = vld [vmem:[%s12221_s1 + $0xd78] sm:$0xff] }
 0x191   :  { %4723 = vmatpush.bf16.msra.mxu3 %v9786_v46  ;;  %v11564_v23 = vadd.f32 %v2983_v19, %v2965_v17  ;;  %v2949_v62 = vadd.f32 %v2948_v4, %v2929_v20  ;;  %4151 = vmatmul.bf16.gmra.mxu0 %v10185_v8  ;;  %v9820_v46 = vld [vmem:[%s12221_s1 + $0xdf0] sm:$0xff] }
 0x192   :  { %4218 = vmatpush.bf16.msra.mxu0 %v9705_v50  ;;  %4170 = vmatmul.bf16.gmra.mxu1 %v10187_v9  ;;  %v9808_v17 = vld [vmem:[%s12221_s1 + $0xd90] sm:$0xff] }
 0x193   :  { %4686 = vmatpush.bf16.msra.mxu1 %v9769_v57  ;;  %4189 = vmatmul.bf16.gmra.mxu2 %v10341_v63  ;;  %v9803_v57 = vld [vmem:[%s12221_s1 + $0xd68] sm:$0xff] }
 0x194   :  { %4705 = vmatpush.bf16.msra.mxu2 %v9777_v47  ;;  %4208 = vmatmul.bf16.gmra.mxu3 %v10346_v1 }
 0x195   :  { %4724 = vmatpush.bf16.msra.mxu3 %v9785_v58  ;;  %v9819_v58 = vld [vmem:[%s12221_s1 + $0xde8] sm:$0xff] }
 0x196   :  { %4219 = vmatpush.bf16.msra.mxu0 %v9704_v31  ;;  %v2967_v40 = vpop.f32.mrf.mxu2  ;;  %v2931_v32 = vpop.f32.mrf.mxu0 }
 0x197   :  { %4687 = vmatpush.bf16.msra.mxu1 %v9768_v60  ;;  %v2968_v39 = vadd.f32 %v2967_v40, %v2949_v62  ;;  %v2986_v18 = vpop.f32.mrf.mxu3  ;;  %v9815_v40 = vld [vmem:[%s12221_s1 + $0xdc8] sm:$0xff] }
 0x198   :  { %4706 = vmatpush.bf16.msra.mxu2 %v9776_v61  ;;  %v2950_v47 = vpop.f32.mrf.mxu1  ;;  %v9810_v61 = vld [vmem:[%s12221_s1 + $0xda0] sm:$0xff] }
 0x199   :  { %4725 = vmatpush.bf16.msra.mxu3 %v9784_v13  ;;  %v11600_v49 = vadd.f32 %v2986_v18, %v2968_v39  ;;  %v2951_v50 = vadd.f32 %v2950_v47, %v2931_v32  ;;  %v9802_v13 = vld [vmem:[%s12221_s1 + $0xd60] sm:$0xff] }
 0x19a   :  { %4220 = vmatpush.bf16.msra.mxu0 %v9703_v16  ;;  %v9790_v47 = vld [vmem:[%s12221_s1 + $0xd00] sm:$0xff] }
 0x19b   :  { %4688 = vmatpush.bf16.msra.mxu1 %v9767_v55  ;;  %v9793_v55 = vld [vmem:[%s12221_s1 + $0xd18] sm:$0xff] }
 0x19c   :  { %4707 = vmatpush.bf16.msra.mxu2 %v9775_v14  ;;  %v9818_v14 = vld [vmem:[%s12221_s1 + $0xde0] sm:$0xff] }
 0x19d   :  { %4726 = vmatpush.bf16.msra.mxu3 %v9783_v11  ;;  %v9801_v11 = vld [vmem:[%s12221_s1 + $0xd58] sm:$0xff] }
 0x19e   :  { %4221 = vmatpush.bf16.msra.mxu0 %v9702_v22  ;;  %v2969_v28 = vpop.f32.mrf.mxu2  ;;  %v3000_v10 = vpop.f32.mrf.mxu0 }
 0x19f   :  { %4689 = vmatpush.bf16.msra.mxu1 %v9766_v54  ;;  %v2970_v0 = vadd.f32 %v2969_v28, %v2951_v50  ;;  %v2988_v3 = vpop.f32.mrf.mxu3  ;;  %v3001_v12 = vadd.f32 %v3000_v10, %v11538_v53  ;;  %v9809_v53 = vld [vmem:[%s12221_s1 + $0xd98] sm:$0xff]  ;;  %v9792_v54 = vld [vmem:[%s12221_s1 + $0xd10] sm:$0xff] }
 0x1a0   :  { %4708 = vmatpush.bf16.msra.mxu2 %v9774_v59  ;;  %v3019_v31 = vpop.f32.mrf.mxu1  ;;  %v9829_v28 = vld [vmem:[%s12221_s1 + $0xe38] sm:$0xff] }
 0x1a1   :  { %4727 = vmatpush.bf16.msra.mxu3 %v9782_v25  ;;  %v11621_v60 = vadd.f32 %v2988_v3, %v2970_v0  ;;  %v3020_v16 = vadd.f32 %v3019_v31, %v3001_v12  ;;  %4222 = vmatmul.bf16.vlgmr.msra.gmra.mxu0 %v10272_v37  ;;  %v9800_v25 = vld [vmem:[%s12221_s1 + $0xd50] sm:$0xff]  ;;  %v9837_v0 = vld [vmem:[%s12221_s1 + $0xe78] sm:$0xff] }
 0x1a2   :  { %4739 = vmatpush.bf16.msrb.mxu0 %v9797_v35  ;;  %4690 = vmatmul.bf16.vlgmr.msra.gmra.mxu1 %v10097_v42  ;;  %v9853_v3 = vld [vmem:[%s12221_s1 + $0xef8] sm:$0xff]  ;;  %v9844_v31 = vld [vmem:[%s12221_s1 + $0xeb0] sm:$0xff] }
 0x1a3   :  { %4758 = vmatpush.bf16.msrb.mxu1 %v9805_v38  ;;  %4709 = vmatmul.bf16.vlgmr.msra.gmra.mxu2 %v10099_v43  ;;  %v9791_v38 = vld [vmem:[%s12221_s1 + $0xd08] sm:$0xff] }
 0x1a4   :  { %4777 = vmatpush.bf16.msrb.mxu2 %v9813_v24  ;;  %4728 = vmatmul.bf16.vlgmr.msra.gmra.mxu3 %v10101_v44  ;;  %v9816_v24 = vld [vmem:[%s12221_s1 + $0xdd0] sm:$0xff] }
 0x1a5   :  { %4796 = vmatpush.bf16.msrb.mxu3 %v9821_v21  ;;  %v9799_v21 = vld [vmem:[%s12221_s1 + $0xd48] sm:$0xff] }
 0x1a6   :  { %4740 = vmatpush.bf16.msrb.mxu0 %v9796_v15  ;;  %v3038_v59 = vpop.f32.mrf.mxu2  ;;  %v3002_v4 = vpop.f32.mrf.mxu0  ;;  %v9806_v15 = vld [vmem:[%s12221_s1 + $0xd80] sm:$0xff] }
 0x1a7   :  { %4759 = vmatpush.bf16.msrb.mxu1 %v9804_v41  ;;  %v11648_v19 = vadd.f32 %v3038_v59, %v3020_v16  ;;  %v11650_v20 = vpop.f32.mrf.mxu3  ;;  %v3003_v22 = vadd.f32 %v3002_v4, %v11564_v23  ;;  %v9807_v23 = vld [vmem:[%s12221_s1 + $0xd88] sm:$0xff]  ;;  %v9836_v16 = vld [vmem:[%s12221_s1 + $0xe70] sm:$0xff] }
 0x1a8   :  { %4778 = vmatpush.bf16.msrb.mxu2 %v9812_v30  ;;  %v3021_v62 = vpop.f32.mrf.mxu1  ;;  %v9827_v4 = vld [vmem:[%s12221_s1 + $0xe28] sm:$0xff] }
 0x1a9   :  { %4797 = vmatpush.bf16.msrb.mxu3 %v9820_v46  ;;  %v3022_v35 = vadd.f32 %v3021_v62, %v3003_v22  ;;  %v3048_v50 = vrot.slane %v11648_v19, 4  ;;  %v9851_v62 = vld [vmem:[%s12221_s1 + $0xee8] sm:$0xff]  ;;  %v9825_v19 = vld [vmem:[%s12221_s1 + $0xe18] sm:$0xff] }
 0x1aa   :  { %4741 = vmatpush.bf16.msrb.mxu0 %v9795_v26  ;;  %v9798_v26 = vld [vmem:[%s12221_s1 + $0xd40] sm:$0xff] }
 0x1ab   :  { %4760 = vmatpush.bf16.msrb.mxu1 %v9803_v57  ;;  %v9814_v57 = vld [vmem:[%s12221_s1 + $0xdc0] sm:$0xff] }
 0x1ac   :  { %4779 = vmatpush.bf16.msrb.mxu2 %v9811_v52 }
 0x1ad   :  { %4798 = vmatpush.bf16.msrb.mxu3 %v9819_v58  ;;  %v9845_v58 = vld [vmem:[%s12221_s1 + $0xeb8] sm:$0xff] }
 0x1ae   :  { %4742 = vmatpush.bf16.msrb.mxu0 %v9794_v33  ;;  %v3040_v30 = vpop.f32.mrf.mxu2  ;;  %v3005_v32 = vpop.f32.mrf.mxu0  ;;  %v9828_v33 = vld [vmem:[%s12221_s1 + $0xe30] sm:$0xff] }
 0x1af   :  { %4761 = vmatpush.bf16.msrb.mxu1 %v9802_v13  ;;  %v3041_v39 = vadd.f32 %v3040_v30, %v3022_v35  ;;  %v11677_v18 = vpop.f32.mrf.mxu3  ;;  %v3006_v41 = vadd.f32 %v3005_v32, %v11600_v49 }
 0x1b0   :  { %4780 = vmatpush.bf16.msrb.mxu2 %v9810_v61  ;;  %v3024_v46 = vpop.f32.mrf.mxu1 }
 0x1b1   :  { %4799 = vmatpush.bf16.msrb.mxu3 %v9818_v14  ;;  %v3049_v52 = vrot.slane %v3041_v39, 4  ;;  %v3025_v49 = vadd.f32 %v3024_v46, %v3006_v41  ;;  %4227 = vmatmul.bf16.gmra.mxu0 %v10348_v2  ;;  %v9850_v39 = vld [vmem:[%s12221_s1 + $0xee0] sm:$0xff] }
 0x1b2   :  { %4743 = vmatpush.bf16.msrb.mxu0 %v9793_v55  ;;  %4695 = vmatmul.bf16.gmra.mxu1 %v10181_v6 }
 0x1b3   :  { %4762 = vmatpush.bf16.msrb.mxu1 %v9801_v11  ;;  %v3055_v61 = vsel %vm3052_vm3, %v3048_v50, %v3049_v52  ;;  %4714 = vmatmul.bf16.gmra.mxu2 %v10183_v7 }
 0x1b4   :  { %4781 = vmatpush.bf16.msrb.mxu2 %v9809_v53  ;;  %v11711_v10 = vadd.f32 %v3055_v61, %v11460_v56  ;;  %4733 = vmatmul.bf16.gmra.mxu3 %v10185_v8  ;;  %v9852_v53 = vld [vmem:[%s12221_s1 + $0xef0] sm:$0xff] }
 0x1b5   :  { %4800 = vmatpush.bf16.msrb.mxu3 %v9817_v5 }
 0x1b6   :  { %4744 = vmatpush.bf16.msrb.mxu0 %v9792_v54  ;;  %v3043_v12 = vpop.f32.mrf.mxu2  ;;  %v3007_v56 = vpop.f32.mrf.mxu0 }
 0x1b7   :  { %4763 = vmatpush.bf16.msrb.mxu1 %v9800_v25  ;;  %v3044_v13 = vadd.f32 %v3043_v12, %v3025_v49  ;;  %v11720_v14 = vpop.f32.mrf.mxu3  ;;  %v3008_v55 = vadd.f32 %v3007_v56, %v11621_v60  ;;  %v9835_v60 = vld [vmem:[%s12221_s1 + $0xe68] sm:$0xff]  ;;  %v9832_v12 = vld [vmem:[%s12221_s1 + $0xe50] sm:$0xff] }
 0x1b8   :  { %4782 = vmatpush.bf16.msrb.mxu2 %v9808_v17  ;;  %v3026_v11 = vpop.f32.mrf.mxu1  ;;  %v9843_v17 = vld [vmem:[%s12221_s1 + $0xea8] sm:$0xff] }
 0x1b9   :  { %4801 = vmatpush.bf16.msrb.mxu3 %v9816_v24  ;;  %v3050_v5 = vrot.slane %v3044_v13, 4  ;;  %v3027_v59 = vadd.f32 %v3026_v11, %v3008_v55  ;;  %v9842_v24 = vld [vmem:[%s12221_s1 + $0xea0] sm:$0xff]  ;;  %v9823_v13 = vld [vmem:[%s12221_s1 + $0xe08] sm:$0xff] }
 0x1ba   :  { %4745 = vmatpush.bf16.msrb.mxu0 %v9791_v38  ;;  %v9831_v56 = vld [vmem:[%s12221_s1 + $0xe48] sm:$0xff]  ;;  %v9838_v55 = vld [vmem:[%s12221_s1 + $0xe80] sm:$0xff] }
 0x1bb   :  { %4764 = vmatpush.bf16.msrb.mxu1 %v9799_v21  ;;  %v3054_v22 = vsel %vm3052_vm3, %v3049_v52, %v3050_v5 }
 0x1bc   :  { %4783 = vmatpush.bf16.msrb.mxu2 %v9807_v23  ;;  %v11744_v54 = vadd.f32 %v3054_v22, %v11490_v29  ;;  %v9826_v29 = vld [vmem:[%s12221_s1 + $0xe20] sm:$0xff] }
 0x1bd   :  { %4802 = vmatpush.bf16.msrb.mxu3 %v9815_v40  ;;  %v9822_v22 = vld [vmem:[%s12221_s1 + $0xe00] sm:$0xff] }
 0x1be   :  { %4746 = vmatpush.bf16.msrb.mxu0 %v9790_v47  ;;  %v3045_v25 = vpop.f32.mrf.mxu2  ;;  %v3651_v38 = vpop.f32.mrf.mxu0 }
 0x1bf   :  { %4765 = vmatpush.bf16.msrb.mxu1 %v9798_v26  ;;  %v3046_v35 = vadd.f32 %v3045_v25, %v3027_v59  ;;  %v11749_v23 = vpop.f32.mrf.mxu3  ;;  %v3652_v21 = vadd.f32 %v3651_v38, %v11650_v20  ;;  %v9841_v20 = vld [vmem:[%s12221_s1 + $0xe98] sm:$0xff]  ;;  %v9846_v25 = vld [vmem:[%s12221_s1 + $0xec0] sm:$0xff] }
 0x1c0   :  { %4784 = vmatpush.bf16.msrb.mxu2 %v9806_v15  ;;  %v3670_v40 = vpop.f32.mrf.mxu1  ;;  %v9834_v15 = vld [vmem:[%s12221_s1 + $0xe60] sm:$0xff]  ;;  %v9869_v38 = vld [vmem:[%s12221_s1 + $0xf78] sm:$0xff] }
 0x1c1   :  { %4803 = vmatpush.bf16.msrb.mxu3 %v9814_v57  ;;  %v3051_v30 = vrot.slane %v3046_v35, 4  ;;  %v3671_v32 = vadd.f32 %v3670_v40, %v3652_v21  ;;  %4747 = vmatmul.bf16.vlgmr.msrb.gmra.mxu0 %v10103_v45  ;;  %v9861_v35 = vld [vmem:[%s12221_s1 + $0xf38] sm:$0xff] }
 0x1c2   :  { %5276 = vmatpush.bf16.msra.mxu0 %v9829_v28  ;;  %4766 = vmatmul.bf16.vlgmr.msrb.gmra.mxu1 %v10265_v34  ;;  %v9885_v21 = vld [vmem:[%s12221_s1 + $0xff8] sm:$0xff] }
 0x1c3   :  { %5295 = vmatpush.bf16.msra.mxu1 %v9837_v0  ;;  %v3053_v41 = vsel %vm3052_vm3, %v3050_v5, %v3051_v30  ;;  %v3056_v46 = vsel %vm3052_vm3, %v3051_v30, %v3048_v50  ;;  %4785 = vmatmul.bf16.vlgmr.msrb.gmra.mxu2 %v10270_v36  ;;  %v9833_v50 = vld [vmem:[%s12221_s1 + $0xe58] sm:$0xff]  ;;  %v9824_v0 = vld [vmem:[%s12221_s1 + $0xe10] sm:$0xff] }
 0x1c4   :  { %5314 = vmatpush.bf16.msra.mxu2 %v9845_v58  ;;  %v11774_v47 = vadd.f32 %v3053_v41, %v11527_v48  ;;  %v11777_v52 = vadd.f32 %v3056_v46, %v11530_v51  ;;  %4804 = vmatmul.bf16.vlgmr.msrb.gmra.mxu3 %v10272_v37  ;;  %v9849_v48 = vld [vmem:[%s12221_s1 + $0xed8] sm:$0xff]  ;;  %v9840_v51 = vld [vmem:[%s12221_s1 + $0xe90] sm:$0xff] }
 0x1c5   :  { %5333 = vmatpush.bf16.msra.mxu3 %v9853_v3  ;;  %v9860_v30 = vld [vmem:[%s12221_s1 + $0xf30] sm:$0xff] }
 0x1c6   :  { %5277 = vmatpush.bf16.msra.mxu0 %v9828_v33  ;;  %v3689_v26 = vpop.f32.mrf.mxu2  ;;  %v3653_v58 = vpop.f32.mrf.mxu0  ;;  %v9884_v41 = vld [vmem:[%s12221_s1 + $0xff0] sm:$0xff] }
 0x1c7   :  { %5296 = vmatpush.bf16.msra.mxu1 %v9836_v16  ;;  %v3690_v57 = vadd.f32 %v3689_v26, %v3671_v32  ;;  %v3708_v49 = vpop.f32.mrf.mxu3  ;;  %v3654_v28 = vadd.f32 %v3653_v58, %v11677_v18  ;;  %v9839_v18 = vld [vmem:[%s12221_s1 + $0xe88] sm:$0xff]  ;;  %v9874_v58 = vld [vmem:[%s12221_s1 + $0xfa0] sm:$0xff] }
 0x1c8   :  { %5315 = vmatpush.bf16.msra.mxu2 %v9844_v31  ;;  %v3672_v61 = vpop.f32.mrf.mxu1  ;;  %v9848_v31 = vld [vmem:[%s12221_s1 + $0xed0] sm:$0xff]  ;;  %v9847_v16 = vld [vmem:[%s12221_s1 + $0xec8] sm:$0xff] }
 0x1c9   :  { %5334 = vmatpush.bf16.msra.mxu3 %v9852_v53  ;;  %v11796_v3 = vadd.f32 %v3708_v49, %v3690_v57  ;;  %v3673_v33 = vadd.f32 %v3672_v61, %v3654_v28  ;;  %v9875_v26 = vld [vmem:[%s12221_s1 + $0xfa8] sm:$0xff] }
 0x1ca   :  { %5278 = vmatpush.bf16.msra.mxu0 %v9827_v4  ;;  %v9883_v57 = vld [vmem:[%s12221_s1 + $0xfe8] sm:$0xff] }
 0x1cb   :  { %5297 = vmatpush.bf16.msra.mxu1 %v9835_v60 }
 0x1cc   :  { %5316 = vmatpush.bf16.msra.mxu2 %v9843_v17 }
 0x1cd   :  { %5335 = vmatpush.bf16.msra.mxu3 %v9851_v62  ;;  %v9830_v62 = vld [vmem:[%s12221_s1 + $0xe40] sm:$0xff] }
 0x1ce   :  { %5279 = vmatpush.bf16.msra.mxu0 %v9826_v29  ;;  %v3691_v53 = vpop.f32.mrf.mxu2  ;;  %v3656_v59 = vpop.f32.mrf.mxu0  ;;  %v9876_v29 = vld [vmem:[%s12221_s1 + $0xfb0] sm:$0xff] }
 0x1cf   :  { %5298 = vmatpush.bf16.msra.mxu1 %v9834_v15  ;;  %v3692_v11 = vadd.f32 %v3691_v53, %v3673_v33  ;;  %v3710_v5 = vpop.f32.mrf.mxu3  ;;  %v3657_v17 = vadd.f32 %v3656_v59, %v11720_v14  ;;  %v9877_v14 = vld [vmem:[%s12221_s1 + $0xfb8] sm:$0xff]  ;;  %v9858_v33 = vld [vmem:[%s12221_s1 + $0xf20] sm:$0xff]  ;;  %v9872_v59 = vld [vmem:[%s12221_s1 + $0xf90] sm:$0xff] }
 0x1d0   :  { %5317 = vmatpush.bf16.msra.mxu2 %v9842_v24  ;;  %v3675_v4 = vpop.f32.mrf.mxu1  ;;  %v9857_v53 = vld [vmem:[%s12221_s1 + $0xf18] sm:$0xff] }
 0x1d1   :  { %5336 = vmatpush.bf16.msra.mxu3 %v9850_v39  ;;  %v11823_v60 = vadd.f32 %v3710_v5, %v3692_v11  ;;  %v3676_v24 = vadd.f32 %v3675_v4, %v3657_v17  ;;  %4752 = vmatmul.bf16.gmra.mxu0 %v10187_v9  ;;  %v9881_v11 = vld [vmem:[%s12221_s1 + $0xfd8] sm:$0xff] }
 0x1d2   :  { %5280 = vmatpush.bf16.msra.mxu0 %v9825_v19  ;;  %4771 = vmatmul.bf16.gmra.mxu1 %v10341_v63 }
 0x1d3   :  { %5299 = vmatpush.bf16.msra.mxu1 %v9833_v50  ;;  %4790 = vmatmul.bf16.gmra.mxu2 %v10346_v1 }
 0x1d4   :  { %5318 = vmatpush.bf16.msra.mxu2 %v9841_v20  ;;  %4809 = vmatmul.bf16.gmra.mxu3 %v10348_v2  ;;  %v9868_v20 = vld [vmem:[%s12221_s1 + $0xf70] sm:$0xff] }
 0x1d5   :  { %5337 = vmatpush.bf16.msra.mxu3 %v9849_v48 }
 0x1d6   :  { %5281 = vmatpush.bf16.msra.mxu0 %v9824_v0  ;;  %v3694_v40 = vpop.f32.mrf.mxu2  ;;  %v3658_v32 = vpop.f32.mrf.mxu0 }
 0x1d7   :  { %5300 = vmatpush.bf16.msra.mxu1 %v9832_v12  ;;  %v3695_v15 = vadd.f32 %v3694_v40, %v3676_v24  ;;  %v3713_v39 = vpop.f32.mrf.mxu3  ;;  %v3659_v46 = vadd.f32 %v3658_v32, %v11749_v23  ;;  %v9867_v23 = vld [vmem:[%s12221_s1 + $0xf68] sm:$0xff]  ;;  %v9864_v24 = vld [vmem:[%s12221_s1 + $0xf50] sm:$0xff] }
 0x1d8   :  { %5319 = vmatpush.bf16.msra.mxu2 %v9840_v51  ;;  %v3677_v19 = vpop.f32.mrf.mxu1  ;;  %v9859_v51 = vld [vmem:[%s12221_s1 + $0xf28] sm:$0xff] }
 0x1d9   :  { %5338 = vmatpush.bf16.msra.mxu3 %v9848_v31  ;;  %v11860_v50 = vadd.f32 %v3713_v39, %v3695_v15  ;;  %v3678_v48 = vadd.f32 %v3677_v19, %v3659_v46  ;;  %v9855_v40 = vld [vmem:[%s12221_s1 + $0xf08] sm:$0xff]  ;;  %v9870_v39 = vld [vmem:[%s12221_s1 + $0xf80] sm:$0xff] }
 0x1da   :  { %5282 = vmatpush.bf16.msra.mxu0 %v9823_v13  ;;  %v9866_v13 = vld [vmem:[%s12221_s1 + $0xf60] sm:$0xff] }
 0x1db   :  { %5301 = vmatpush.bf16.msra.mxu1 %v9831_v56  ;;  %v9882_v56 = vld [vmem:[%s12221_s1 + $0xfe0] sm:$0xff] }
 0x1dc   :  { %5320 = vmatpush.bf16.msra.mxu2 %v9839_v18 }
 0x1dd   :  { %5339 = vmatpush.bf16.msra.mxu3 %v9847_v16 }
 0x1de   :  { %5283 = vmatpush.bf16.msra.mxu0 %v9822_v22  ;;  %v3696_v49 = vpop.f32.mrf.mxu2  ;;  %v3727_v0 = vpop.f32.mrf.mxu0 }
 0x1df   :  { %5302 = vmatpush.bf16.msra.mxu1 %v9830_v62  ;;  %v3697_v28 = vadd.f32 %v3696_v49, %v3678_v48  ;;  %v3715_v61 = vpop.f32.mrf.mxu3  ;;  %v3728_v12 = vadd.f32 %v3727_v0, %v11796_v3  ;;  %v9873_v3 = vld [vmem:[%s12221_s1 + $0xf98] sm:$0xff] }
 0x1e0   :  { %5321 = vmatpush.bf16.msra.mxu2 %v9838_v55  ;;  %v3746_v31 = vpop.f32.mrf.mxu1  ;;  %v9865_v55 = vld [vmem:[%s12221_s1 + $0xf58] sm:$0xff] }
 0x1e1   :  { %5340 = vmatpush.bf16.msra.mxu3 %v9846_v25  ;;  %v11881_v18 = vadd.f32 %v3715_v61, %v3697_v28  ;;  %v11889_v16 = vadd.f32 %v3746_v31, %v3728_v12  ;;  %5284 = vmatmul.bf16.vlgmr.msra.gmra.mxu0 %v10097_v42  ;;  %v9856_v25 = vld [vmem:[%s12221_s1 + $0xf10] sm:$0xff]  ;;  %v9901_v28 = vld [vmem:[%s12221_s1 + $0x1078] sm:$0xff] }
 0x1e2   :  { %5352 = vmatpush.bf16.msrb.mxu0 %v9861_v35  ;;  %5303 = vmatmul.bf16.vlgmr.msra.gmra.mxu1 %v10099_v43  ;;  %v9917_v61 = vld [vmem:[%s12221_s1 + $0x10f8] sm:$0xff] }
 0x1e3   :  { %5371 = vmatpush.bf16.msrb.mxu1 %v9869_v38  ;;  %5322 = vmatmul.bf16.vlgmr.msra.gmra.mxu2 %v10101_v44  ;;  %v3756_v38 = vrot.slane %v11889_v16, 1 }
 0x1e4   :  { %5390 = vmatpush.bf16.msrb.mxu2 %v9877_v14  ;;  %5341 = vmatmul.bf16.vlgmr.msra.gmra.mxu3 %v10103_v45  ;;  %v9880_v14 = vld [vmem:[%s12221_s1 + $0xfd0] sm:$0xff] }
 0x1e5   :  { %5870 = vmatpush.bf16.msrb.mxu3 %v9885_v21 }
 0x1e6   :  { %5353 = vmatpush.bf16.msrb.mxu0 %v9860_v30  ;;  %v4109_v5 = vpop.f32.mrf.mxu2  ;;  %v3729_v4 = vpop.f32.mrf.mxu0  ;;  %v9879_v30 = vld [vmem:[%s12221_s1 + $0xfc8] sm:$0xff] }
 0x1e7   :  { %5372 = vmatpush.bf16.msrb.mxu1 %v9868_v20  ;;  %v4128_v17 = vpop.f32.mrf.mxu3  ;;  %v3730_v22 = vadd.f32 %v3729_v4, %v11823_v60  ;;  %v9871_v60 = vld [vmem:[%s12221_s1 + $0xf88] sm:$0xff] }
 0x1e8   :  { %5391 = vmatpush.bf16.msrb.mxu2 %v9876_v29  ;;  %v3748_v62 = vpop.f32.mrf.mxu1  ;;  %v9863_v29 = vld [vmem:[%s12221_s1 + $0xf48] sm:$0xff] }
 0x1e9   :  { %5871 = vmatpush.bf16.msrb.mxu3 %v9884_v41  ;;  %v3749_v35 = vadd.f32 %v3748_v62, %v3730_v22  ;;  %v9907_v22 = vld [vmem:[%s12221_s1 + $0x10a8] sm:$0xff] }
 0x1ea   :  { %5354 = vmatpush.bf16.msrb.mxu0 %v9859_v51  ;;  %v9891_v62 = vld [vmem:[%s12221_s1 + $0x1028] sm:$0xff] }
 0x1eb   :  { %5373 = vmatpush.bf16.msrb.mxu1 %v9867_v23  ;;  %v3757_v21 = vrot.slane %v3749_v35, 1  ;;  %v9862_v23 = vld [vmem:[%s12221_s1 + $0xf40] sm:$0xff] }
 0x1ec   :  { %5392 = vmatpush.bf16.msrb.mxu2 %v9875_v26  ;;  %v9854_v26 = vld [vmem:[%s12221_s1 + $0xf00] sm:$0xff] }
 0x1ed   :  { %5872 = vmatpush.bf16.msrb.mxu3 %v9883_v57  ;;  %v3762_v32 = vsel %vm802_vm0, %v3756_v38, %v3757_v21  ;;  %v9878_v57 = vld [vmem:[%s12221_s1 + $0xfc0] sm:$0xff] }
 0x1ee   :  { %5355 = vmatpush.bf16.msrb.mxu0 %v9858_v33  ;;  %v4111_v15 = vpop.f32.mrf.mxu2  ;;  %v3732_v41 = vpop.f32.mrf.mxu0  ;;  %v4110_v46 = vadd.f32 %v4109_v5, %v3762_v32  ;;  %v9908_v33 = vld [vmem:[%s12221_s1 + $0x10b0] sm:$0xff] }
 0x1ef   :  { %5374 = vmatpush.bf16.msrb.mxu1 %v9866_v13  ;;  %v4130_v20 = vpop.f32.mrf.mxu3  ;;  %v3733_v19 = vadd.f32 %v3732_v41, %v11860_v50  ;;  %v9909_v50 = vld [vmem:[%s12221_s1 + $0x10b8] sm:$0xff]  ;;  %v9892_v13 = vld [vmem:[%s12221_s1 + $0x1030] sm:$0xff]  ;;  %v9898_v41 = vld [vmem:[%s12221_s1 + $0x1060] sm:$0xff] }
 0x1f0   :  { %5393 = vmatpush.bf16.msrb.mxu2 %v9874_v58  ;;  %v3751_v48 = vpop.f32.mrf.mxu1  ;;  %v4129_v51 = vadd.f32 %v4128_v17, %v4110_v46  ;;  %v9893_v58 = vld [vmem:[%s12221_s1 + $0x1038] sm:$0xff]  ;;  %v9914_v46 = vld [vmem:[%s12221_s1 + $0x10e0] sm:$0xff] }
 0x1f1   :  { %5873 = vmatpush.bf16.msrb.mxu3 %v9882_v56  ;;  %v3752_v49 = vadd.f32 %v3751_v48, %v3733_v19  ;;  %5289 = vmatmul.bf16.gmra.mxu0 %v10181_v6  ;;  %v9905_v48 = vld [vmem:[%s12221_s1 + $0x1098] sm:$0xff] }
 0x1f2   :  { %5356 = vmatpush.bf16.msrb.mxu0 %v9857_v53  ;;  %5308 = vmatmul.bf16.gmra.mxu1 %v10183_v7 }
 0x1f3   :  { %5375 = vmatpush.bf16.msrb.mxu1 %v9865_v55  ;;  %5327 = vmatmul.bf16.gmra.mxu2 %v10185_v8  ;;  %v3758_v0 = vrot.slane %v3752_v49, 1  ;;  %v9900_v55 = vld [vmem:[%s12221_s1 + $0x1070] sm:$0xff] }
 0x1f4   :  { %5394 = vmatpush.bf16.msrb.mxu2 %v9873_v3  ;;  %5346 = vmatmul.bf16.gmra.mxu3 %v10187_v9 }
 0x1f5   :  { %5874 = vmatpush.bf16.msrb.mxu3 %v9881_v11  ;;  %v3761_v12 = vsel %vm802_vm0, %v3757_v21, %v3758_v0  ;;  %v9916_v11 = vld [vmem:[%s12221_s1 + $0x10f0] sm:$0xff] }
 0x1f6   :  { %5357 = vmatpush.bf16.msrb.mxu0 %v9856_v25  ;;  %v4114_v31 = vpop.f32.mrf.mxu2  ;;  %v3734_v3 = vpop.f32.mrf.mxu0  ;;  %v4112_v53 = vadd.f32 %v4111_v15, %v3761_v12  ;;  %v9899_v25 = vld [vmem:[%s12221_s1 + $0x1068] sm:$0xff] }
 0x1f7   :  { %5376 = vmatpush.bf16.msrb.mxu1 %v9864_v24  ;;  %v4133_v56 = vpop.f32.mrf.mxu3  ;;  %v3735_v5 = vadd.f32 %v3734_v3, %v11881_v18  ;;  %v9915_v18 = vld [vmem:[%s12221_s1 + $0x10e8] sm:$0xff] }
 0x1f8   :  { %5395 = vmatpush.bf16.msrb.mxu2 %v9872_v59  ;;  %v3753_v59 = vpop.f32.mrf.mxu1  ;;  %v4131_v17 = vadd.f32 %v4130_v20, %v4112_v53  ;;  %v9887_v3 = vld [vmem:[%s12221_s1 + $0x1008] sm:$0xff] }
 0x1f9   :  { %5875 = vmatpush.bf16.msrb.mxu3 %v9880_v14  ;;  %v3754_v4 = vadd.f32 %v3753_v59, %v3735_v5  ;;  %v9895_v53 = vld [vmem:[%s12221_s1 + $0x1048] sm:$0xff]  ;;  %v9902_v5 = vld [vmem:[%s12221_s1 + $0x1080] sm:$0xff] }
 0x1fa   :  { %5358 = vmatpush.bf16.msrb.mxu0 %v9855_v40 }
 0x1fb   :  { %5377 = vmatpush.bf16.msrb.mxu1 %v9863_v29  ;;  %v3759_v24 = vrot.slane %v3754_v4, 1 }
 0x1fc   :  { %5396 = vmatpush.bf16.msrb.mxu2 %v9871_v60  ;;  %v9906_v60 = vld [vmem:[%s12221_s1 + $0x10a0] sm:$0xff] }
 0x1fd   :  { %5876 = vmatpush.bf16.msrb.mxu3 %v9879_v30  ;;  %v3763_v14 = vsel %vm802_vm0, %v3759_v24, %v3756_v38  ;;  %v3760_v21 = vsel %vm802_vm0, %v3758_v0, %v3759_v24  ;;  %v9890_v38 = vld [vmem:[%s12221_s1 + $0x1020] sm:$0xff]  ;;  %v9888_v0 = vld [vmem:[%s12221_s1 + $0x1010] sm:$0xff] }
 0x1fe   :  { %5359 = vmatpush.bf16.msrb.mxu0 %v9854_v26  ;;  %v4116_v35 = vpop.f32.mrf.mxu2  ;;  %v4147_v30 = vpop.f32.mrf.mxu0  ;;  %v4115_v15 = vadd.f32 %v4114_v31, %v3760_v21  ;;  %v9889_v26 = vld [vmem:[%s12221_s1 + $0x1018] sm:$0xff]  ;;  %v9896_v31 = vld [vmem:[%s12221_s1 + $0x1050] sm:$0xff]  ;;  %v9894_v24 = vld [vmem:[%s12221_s1 + $0x1040] sm:$0xff] }
 0x1ff   :  { %5378 = vmatpush.bf16.msrb.mxu1 %v9862_v23  ;;  %v4117_v40 = vadd.f32 %v4116_v35, %v3763_v14  ;;  %v4135_v29 = vpop.f32.mrf.mxu3  ;;  %v4148_v16 = vadd.f32 %v4147_v30, %v4129_v51  ;;  %v9897_v51 = vld [vmem:[%s12221_s1 + $0x1058] sm:$0xff]  ;;  %v9910_v14 = vld [vmem:[%s12221_s1 + $0x10c0] sm:$0xff] }
 0x200   :  { %5397 = vmatpush.bf16.msrb.mxu2 %v9870_v39  ;;  %v4166_v39 = vpop.f32.mrf.mxu1  ;;  %v4134_v20 = vadd.f32 %v4133_v56, %v4115_v15  ;;  %v9913_v23 = vld [vmem:[%s12221_s1 + $0x10d8] sm:$0xff]  ;;  %v9903_v56 = vld [vmem:[%s12221_s1 + $0x1088] sm:$0xff] }
 0x201   :  { %5877 = vmatpush.bf16.msrb.mxu3 %v9878_v57  ;;  %v12005_v32 = vadd.f32 %v4135_v29, %v4117_v40  ;;  %v4167_v19 = vadd.f32 %v4166_v39, %v4148_v16  ;;  %5360 = vmatmul.bf16.vlgmr.msrb.gmra.mxu0 %v10265_v34  ;;  %v9933_v21 = vld [vmem:[%s12221_s1 + $0x1178] sm:$0xff]  ;;  %v9924_v29 = vld [vmem:[%s12221_s1 + $0x1130] sm:$0xff] }
 0x202   :  { %5889 = vmatpush.bf16.msra.mxu0 %v9893_v58  ;;  %5379 = vmatmul.bf16.vlgmr.msrb.gmra.mxu1 %v10270_v36  ;;  %v9932_v39 = vld [vmem:[%s12221_s1 + $0x1170] sm:$0xff] }
 0x203   :  { %5908 = vmatpush.bf16.msra.mxu1 %v9901_v28  ;;  %5398 = vmatmul.bf16.vlgmr.msrb.gmra.mxu2 %v10272_v37 }
 0x204   :  { %5927 = vmatpush.bf16.msra.mxu2 %v9909_v50  ;;  %5878 = vmatmul.bf16.vlgmr.msrb.gmra.mxu3 %v10097_v42  ;;  %v9904_v42 = vld [vmem:[%s12221_s1 + $0x1090] sm:$0xff] }
 0x205   :  { %5946 = vmatpush.bf16.msra.mxu3 %v9917_v61 }
 0x206   :  { %5890 = vmatpush.bf16.msra.mxu0 %v9892_v13  ;;  %v4185_v57 = vpop.f32.mrf.mxu2  ;;  %v4149_v58 = vpop.f32.mrf.mxu0 }
 0x207   :  { %5909 = vmatpush.bf16.msra.mxu1 %v9900_v55  ;;  %v4186_v49 = vadd.f32 %v4185_v57, %v4167_v19  ;;  %v4204_v50 = vpop.f32.mrf.mxu3  ;;  %v4150_v28 = vadd.f32 %v4149_v58, %v4131_v17  ;;  %v9911_v55 = vld [vmem:[%s12221_s1 + $0x10c8] sm:$0xff]  ;;  %v9921_v58 = vld [vmem:[%s12221_s1 + $0x1118] sm:$0xff] }
 0x208   :  { %5928 = vmatpush.bf16.msra.mxu2 %v9908_v33  ;;  %v4168_v61 = vpop.f32.mrf.mxu1  ;;  %v9912_v33 = vld [vmem:[%s12221_s1 + $0x10d0] sm:$0xff]  ;;  %v9931_v19 = vld [vmem:[%s12221_s1 + $0x1168] sm:$0xff] }
 0x209   :  { %5947 = vmatpush.bf16.msra.mxu3 %v9916_v11  ;;  %v12035_v12 = vadd.f32 %v4204_v50, %v4186_v49  ;;  %v4169_v13 = vadd.f32 %v4168_v61, %v4150_v28  ;;  %v9930_v50 = vld [vmem:[%s12221_s1 + $0x1160] sm:$0xff]  ;;  %v9929_v28 = vld [vmem:[%s12221_s1 + $0x1158] sm:$0xff] }
 0x20a   :  { %5891 = vmatpush.bf16.msra.mxu0 %v9891_v62 }
 0x20b   :  { %5910 = vmatpush.bf16.msra.mxu1 %v9899_v25  ;;  %v9886_v25 = vld [vmem:[%s12221_s1 + $0x1000] sm:$0xff] }
 0x20c   :  { %5929 = vmatpush.bf16.msra.mxu2 %v9907_v22 }
 0x20d   :  { %5948 = vmatpush.bf16.msra.mxu3 %v9915_v18 }
 0x20e   :  { %5892 = vmatpush.bf16.msra.mxu0 %v9890_v38  ;;  %v4187_v11 = vpop.f32.mrf.mxu2  ;;  %v4152_v4 = vpop.f32.mrf.mxu0 }
 0x20f   :  { %5911 = vmatpush.bf16.msra.mxu1 %v9898_v41  ;;  %v4188_v59 = vadd.f32 %v4187_v11, %v4169_v13  ;;  %v4206_v17 = vpop.f32.mrf.mxu3  ;;  %v4153_v22 = vadd.f32 %v4152_v4, %v4134_v20  ;;  %v9919_v13 = vld [vmem:[%s12221_s1 + $0x1108] sm:$0xff] }
 0x210   :  { %5930 = vmatpush.bf16.msra.mxu2 %v9906_v60  ;;  %v4171_v62 = vpop.f32.mrf.mxu1  ;;  %v9925_v60 = vld [vmem:[%s12221_s1 + $0x1138] sm:$0xff] }
 0x211   :  { %5949 = vmatpush.bf16.msra.mxu3 %v9914_v46  ;;  %v12061_v18 = vadd.f32 %v4206_v17, %v4188_v59  ;;  %v4172_v35 = vadd.f32 %v4171_v62, %v4153_v22  ;;  %5365 = vmatmul.bf16.gmra.mxu0 %v10341_v63  ;;  %v9923_v46 = vld [vmem:[%s12221_s1 + $0x1128] sm:$0xff]  ;;  %v9926_v22 = vld [vmem:[%s12221_s1 + $0x1140] sm:$0xff] }
 0x212   :  { %5893 = vmatpush.bf16.msra.mxu0 %v9889_v26  ;;  %5384 = vmatmul.bf16.gmra.mxu1 %v10346_v1 }
 0x213   :  { %5912 = vmatpush.bf16.msra.mxu1 %v9897_v51  ;;  %5403 = vmatmul.bf16.gmra.mxu2 %v10348_v2 }
 0x214   :  { %5931 = vmatpush.bf16.msra.mxu2 %v9905_v48  ;;  %5883 = vmatmul.bf16.gmra.mxu3 %v10181_v6 }
 0x215   :  { %5950 = vmatpush.bf16.msra.mxu3 %v9913_v23 }
 0x216   :  { %5894 = vmatpush.bf16.msra.mxu0 %v9888_v0  ;;  %v4190_v40 = vpop.f32.mrf.mxu2  ;;  %v4154_v16 = vpop.f32.mrf.mxu0 }
 0x217   :  { %5913 = vmatpush.bf16.msra.mxu1 %v9896_v31  ;;  %v4191_v30 = vadd.f32 %v4190_v40, %v4172_v35  ;;  %v4209_v15 = vpop.f32.mrf.mxu3  ;;  %v4155_v6 = vadd.f32 %v4154_v16, %v12005_v32  ;;  %v9922_v32 = vld [vmem:[%s12221_s1 + $0x1120] sm:$0xff] }
 0x218   :  { %5932 = vmatpush.bf16.msra.mxu2 %v9904_v42  ;;  %v4173_v38 = vpop.f32.mrf.mxu1 }
 0x219   :  { %5951 = vmatpush.bf16.msra.mxu3 %v9912_v33  ;;  %v4210_v20 = vadd.f32 %v4209_v15, %v4191_v30  ;;  %v4174_v41 = vadd.f32 %v4173_v38, %v4155_v6  ;;  %v9928_v33 = vld [vmem:[%s12221_s1 + $0x1150] sm:$0xff] }
 0x21a   :  { %5895 = vmatpush.bf16.msra.mxu0 %v9887_v3 }
 0x21b   :  { %5914 = vmatpush.bf16.msra.mxu1 %v9895_v53  ;;  %v9918_v53 = vld [vmem:[%s12221_s1 + $0x1100] sm:$0xff] }
 0x21c   :  { %5933 = vmatpush.bf16.msra.mxu2 %v9903_v56  ;;  %v9927_v56 = vld [vmem:[%s12221_s1 + $0x1148] sm:$0xff] }
 0x21d   :  { %5952 = vmatpush.bf16.msra.mxu3 %v9911_v55 }
 0x21e   :  { %5896 = vmatpush.bf16.msra.mxu0 %v9886_v25  ;;  %v4192_v48 = vpop.f32.mrf.mxu2  ;;  %v4223_v23 = vpop.f32.mrf.mxu0 }
 0x21f   :  { %5915 = vmatpush.bf16.msra.mxu1 %v9894_v24  ;;  %v4193_v26 = vadd.f32 %v4192_v48, %v4174_v41  ;;  %v4211_v51 = vpop.f32.mrf.mxu3  ;;  %v12096_v57 = vadd.f32 %v4223_v23, %v12035_v12 }
 0x220   :  { %5934 = vmatpush.bf16.msra.mxu2 %v9902_v5  ;;  %v4691_v42 = vpop.f32.mrf.mxu1 }
 0x221   :  { %5953 = vmatpush.bf16.msra.mxu3 %v9910_v14  ;;  %v4212_v49 = vadd.f32 %v4211_v51, %v4193_v26  ;;  %5897 = vmatmul.bf16.vlgmr.msra.gmra.mxu0 %v10099_v43  ;;  %v9920_v43 = vld [vmem:[%s12221_s1 + $0x1110] sm:$0xff] }
 0x222   :  { %5965 = vmatpush.bf16.msrb.mxu0 %v9925_v60  ;;  %5916 = vmatmul.bf16.vlgmr.msra.gmra.mxu1 %v10101_v44 }
 0x223   :  { %5984 = vmatpush.bf16.msrb.mxu1 %v9933_v21  ;;  %5935 = vmatmul.bf16.vlgmr.msra.gmra.mxu2 %v10103_v45 }
 0x224   :  { %9934 = vmatpush.bf16.msrb.mxu2 %v9925_v60  ;;  %5954 = vmatmul.bf16.vlgmr.msra.gmra.mxu3 %v10265_v34 }
 0x225   :  { %9942 = vmatpush.bf16.msrb.mxu3 %v9933_v21 }
 0x226   :  { %5966 = vmatpush.bf16.msrb.mxu0 %v9924_v29  ;;  %v4710_v61 = vpop.f32.mrf.mxu2  ;;  %v4225_v44 = vpop.f32.mrf.mxu0 }
 0x227   :  { %5985 = vmatpush.bf16.msrb.mxu1 %v9932_v39  ;;  %v4711_v0 = vadd.f32 %v4710_v61, %v4691_v42  ;;  %v4729_v12 = vpop.f32.mrf.mxu3  ;;  %v12115_v45 = vadd.f32 %v4225_v44, %v12061_v18 }
 0x228   :  { %9935 = vmatpush.bf16.msrb.mxu2 %v9924_v29  ;;  %v4693_v34 = vpop.f32.mrf.mxu1 }
 0x229   :  { %9943 = vmatpush.bf16.msrb.mxu3 %v9932_v39  ;;  %v4730_v31 = vadd.f32 %v4729_v12, %v4711_v0 }
 0x22a   :  { %5967 = vmatpush.bf16.msrb.mxu0 %v9923_v46 }
 0x22b   :  { %5986 = vmatpush.bf16.msrb.mxu1 %v9931_v19 }
 0x22c   :  { %9936 = vmatpush.bf16.msrb.mxu2 %v9923_v46 }
 0x22d   :  { %9944 = vmatpush.bf16.msrb.mxu3 %v9931_v19 }
 0x22e   :  { %5968 = vmatpush.bf16.msrb.mxu0 %v9922_v32  ;;  %v4712_v3 = vpop.f32.mrf.mxu2  ;;  %v4228_v5 = vpop.f32.mrf.mxu0 }
 0x22f   :  { %5987 = vmatpush.bf16.msrb.mxu1 %v9930_v50  ;;  %v4713_v55 = vadd.f32 %v4712_v3, %v4693_v34  ;;  %v4731_v11 = vpop.f32.mrf.mxu3  ;;  %v12129_v59 = vadd.f32 %v4228_v5, %v4210_v20 }
 0x230   :  { %9937 = vmatpush.bf16.msrb.mxu2 %v9922_v32  ;;  %v4696_v17 = vpop.f32.mrf.mxu1 }
 0x231   :  { %9945 = vmatpush.bf16.msrb.mxu3 %v9930_v50  ;;  %v4732_v4 = vadd.f32 %v4731_v11, %v4713_v55  ;;  %5902 = vmatmul.bf16.gmra.mxu0 %v10183_v7 }
 0x232   :  { %5969 = vmatpush.bf16.msrb.mxu0 %v9921_v58  ;;  %5921 = vmatmul.bf16.gmra.mxu1 %v10185_v8 }
 0x233   :  { %5988 = vmatpush.bf16.msrb.mxu1 %v9929_v28  ;;  %5940 = vmatmul.bf16.gmra.mxu2 %v10187_v9 }
 0x234   :  { %9938 = vmatpush.bf16.msrb.mxu2 %v9921_v58  ;;  %5959 = vmatmul.bf16.gmra.mxu3 %v10341_v63 }
 0x235   :  { %9946 = vmatpush.bf16.msrb.mxu3 %v9929_v28 }
 0x236   :  { %5970 = vmatpush.bf16.msrb.mxu0 %v9920_v43  ;;  %v4715_v62 = vpop.f32.mrf.mxu2  ;;  %v4230_v24 = vpop.f32.mrf.mxu0 }
 0x237   :  { %5989 = vmatpush.bf16.msrb.mxu1 %v9928_v33  ;;  %v4716_v25 = vadd.f32 %v4715_v62, %v4696_v17  ;;  %v4734_v18 = vpop.f32.mrf.mxu3  ;;  %v4231_v14 = vadd.f32 %v4230_v24, %v4212_v49 }
 0x238   :  { %9939 = vmatpush.bf16.msrb.mxu2 %v9920_v43  ;;  %v4698_v35 = vpop.f32.mrf.mxu1 }
 0x239   :  { %9947 = vmatpush.bf16.msrb.mxu3 %v9928_v33  ;;  %v4735_v60 = vadd.f32 %v4734_v18, %v4716_v25 }
 0x23a   :  { %5971 = vmatpush.bf16.msrb.mxu0 %v9919_v13 }
 0x23b   :  { %5990 = vmatpush.bf16.msrb.mxu1 %v9927_v56 }
 0x23c   :  { %9940 = vmatpush.bf16.msrb.mxu2 %v9919_v13 }
 0x23d   :  { %9948 = vmatpush.bf16.msrb.mxu3 %v9927_v56 }
 0x23e   :  { %5972 = vmatpush.bf16.msrb.mxu0 %v9918_v53  ;;  %v4717_v21 = vpop.f32.mrf.mxu2  ;;  %v4748_v29 = vpop.f32.mrf.mxu0 }
 0x23f   :  { %5991 = vmatpush.bf16.msrb.mxu1 %v9926_v22  ;;  %v4718_v40 = vadd.f32 %v4717_v21, %v4698_v35  ;;  %v4736_v7 = vpop.f32.mrf.mxu3  ;;  %v4749_v30 = vadd.f32 %v4748_v29, %v4730_v31 }
 0x240   :  { %9941 = vmatpush.bf16.msrb.mxu2 %v9918_v53  ;;  %v4767_v8 = vpop.f32.mrf.mxu1 }
 0x241   :  { %9949 = vmatpush.bf16.msrb.mxu3 %v9926_v22  ;;  %v4737_v15 = vadd.f32 %v4736_v7, %v4718_v40  ;;  %v4768_v9 = vadd.f32 %v4767_v8, %v4749_v30  ;;  %5973 = vmatmul.bf16.vlgmr.msrb.gmra.mxu0 %v10270_v36 }
 0x242   :  { %5992 = vmatmul.bf16.vlgmr.msrb.gmra.mxu1 %v10272_v37 }
 0x243   :  { %5978 = vmatmul.bf16.vlgmr.msrb.gmra.mxu2 %v10346_v1 }
 0x244   :  { %5997 = vmatmul.bf16.vlgmr.msrb.gmra.mxu3 %v10348_v2 }
 0x246   :  { %v4786_v63 = vpop.f32.mrf.mxu2  ;;  %v4750_v6 = vpop.f32.mrf.mxu0 }
 0x247   :  { %v4787_v16 = vadd.f32 %v4786_v63, %v4768_v9  ;;  %v4805_v39 = vpop.f32.mrf.mxu3  ;;  %v4751_v38 = vadd.f32 %v4750_v6, %v4732_v4 }
 0x248   :  { %v4769_v20 = vpop.f32.mrf.mxu1 }
 0x249   :  { %v4806_v41 = vadd.f32 %v4805_v39, %v4787_v16  ;;  %v4770_v46 = vadd.f32 %v4769_v20, %v4751_v38 }
 0x24b   :  { %v4815_v42 = vrot.slane %v4806_v41, 2 }
 0x24e   :  { %v4788_v19 = vpop.f32.mrf.mxu2  ;;  %v4753_v26 = vpop.f32.mrf.mxu0 }
 0x24f   :  { %v4789_v48 = vadd.f32 %v4788_v19, %v4770_v46  ;;  %v4807_v32 = vpop.f32.mrf.mxu3  ;;  %v4754_v51 = vadd.f32 %v4753_v26, %v4735_v60 }
 0x250   :  { %v4772_v36 = vpop.f32.mrf.mxu1 }
 0x251   :  { %v4808_v23 = vadd.f32 %v4807_v32, %v4789_v48  ;;  %v4773_v1 = vadd.f32 %v4772_v36, %v4754_v51 }
 0x253   :  { %v4816_v37 = vrot.slane %v4808_v23, 2 }
 0x255   :  { %v4821_v2 = vsel %vm1862_vm1, %v4815_v42, %v4816_v37 }
 0x256   :  { %v12145_v49 = vadd.f32 %v4821_v2, %v12096_v57  ;;  %v4791_v50 = vpop.f32.mrf.mxu2  ;;  %v4755_v61 = vpop.f32.mrf.mxu0 }
 0x257   :  { %v4792_v58 = vadd.f32 %v4791_v50, %v4773_v1  ;;  %v4810_v28 = vpop.f32.mrf.mxu3  ;;  %v4756_v43 = vadd.f32 %v4755_v61, %v4737_v15 }
 0x258   :  { %v4774_v0 = vpop.f32.mrf.mxu1 }
 0x259   :  { %v4811_v12 = vadd.f32 %v4810_v28, %v4792_v58  ;;  %v4775_v44 = vadd.f32 %v4774_v0, %v4756_v43 }
 0x25b   :  { %v4817_v34 = vrot.slane %v4811_v12, 2 }
 0x25d   :  { %v4820_v31 = vsel %vm1862_vm1, %v4816_v37, %v4817_v34 }
 0x25e   :  { %v12150_v33 = vadd.f32 %v4820_v31, %v12115_v45  ;;  %v4793_v13 = vpop.f32.mrf.mxu2  ;;  %v5285_v57 = vpop.f32.mrf.mxu0 }
 0x25f   :  { %v4794_v56 = vadd.f32 %v4793_v13, %v4775_v44  ;;  %v4812_v3 = vpop.f32.mrf.mxu3 }
 0x260   :  { %v5304_v53 = vpop.f32.mrf.mxu1 }
 0x261   :  { %v4813_v55 = vadd.f32 %v4812_v3, %v4794_v56  ;;  %v5305_v11 = vadd.f32 %v5304_v53, %v5285_v57 }
 0x263   :  { %v4818_v5 = vrot.slane %v4813_v55, 2 }
 0x265   :  { %v4819_v17 = vsel %vm1862_vm1, %v4817_v34, %v4818_v5  ;;  %v4822_v4 = vsel %vm1862_vm1, %v4818_v5, %v4815_v42 }
 0x266   :  { %v12157_v22 = vadd.f32 %v4819_v17, %v12129_v59  ;;  %v12159_v62 = vadd.f32 %v4822_v4, %v4231_v14  ;;  %v5323_v45 = vpop.f32.mrf.mxu2  ;;  %v5287_v24 = vpop.f32.mrf.mxu0 }
 0x267   :  { %v5324_v25 = vadd.f32 %v5323_v45, %v5305_v11  ;;  %v5342_v18 = vpop.f32.mrf.mxu3 }
 0x268   :  { %v5306_v35 = vpop.f32.mrf.mxu1 }
 0x269   :  { %v5343_v60 = vadd.f32 %v5342_v18, %v5324_v25  ;;  %v5307_v21 = vadd.f32 %v5306_v35, %v5287_v24 }
 0x26e   :  { %v5325_v40 = vpop.f32.mrf.mxu2  ;;  %v5290_v30 = vpop.f32.mrf.mxu0 }
 0x26f   :  { %v5326_v7 = vadd.f32 %v5325_v40, %v5307_v21  ;;  %v5344_v29 = vpop.f32.mrf.mxu3 }
 0x270   :  { %v5309_v8 = vpop.f32.mrf.mxu1 }
 0x271   :  { %v5345_v15 = vadd.f32 %v5344_v29, %v5326_v7  ;;  %v5310_v9 = vadd.f32 %v5309_v8, %v5290_v30 }
 0x276   :  { %v5328_v63 = vpop.f32.mrf.mxu2  ;;  %v5292_v39 = vpop.f32.mrf.mxu0 }
 0x277   :  { %v5329_v16 = vadd.f32 %v5328_v63, %v5310_v9  ;;  %v5347_v59 = vpop.f32.mrf.mxu3 }
 0x278   :  { %v5311_v14 = vpop.f32.mrf.mxu1 }
 0x279   :  { %v5348_v6 = vadd.f32 %v5347_v59, %v5329_v16  ;;  %v5312_v38 = vadd.f32 %v5311_v14, %v5292_v39 }
 0x27e   :  { %v5330_v20 = vpop.f32.mrf.mxu2  ;;  %v5361_v19 = vpop.f32.mrf.mxu0 }
 0x27f   :  { %v5331_v41 = vadd.f32 %v5330_v20, %v5312_v38  ;;  %v5349_v46 = vpop.f32.mrf.mxu3  ;;  %v5362_v48 = vadd.f32 %v5361_v19, %v5343_v60 }
 0x280   :  { %v5380_v32 = vpop.f32.mrf.mxu1 }
 0x281   :  { %v5350_v26 = vadd.f32 %v5349_v46, %v5331_v41  ;;  %v5381_v51 = vadd.f32 %v5380_v32, %v5362_v48 }
 0x286   :  { %v5399_v36 = vpop.f32.mrf.mxu2  ;;  %v5363_v42 = vpop.f32.mrf.mxu0 }
 0x287   :  { %v5400_v23 = vadd.f32 %v5399_v36, %v5381_v51  ;;  %v5879_v1 = vpop.f32.mrf.mxu3  ;;  %v5364_v2 = vadd.f32 %v5363_v42, %v5345_v15 }
 0x288   :  { %v5382_v37 = vpop.f32.mrf.mxu1 }
 0x289   :  { %v5383_v50 = vadd.f32 %v5382_v37, %v5364_v2  ;;  %v5409_v12 = vrot.slane %v5400_v23, 3 }
 0x28e   :  { %v5401_v58 = vpop.f32.mrf.mxu2  ;;  %v5366_v43 = vpop.f32.mrf.mxu0 }
 0x28f   :  { %v5402_v28 = vadd.f32 %v5401_v58, %v5383_v50  ;;  %v5881_v61 = vpop.f32.mrf.mxu3  ;;  %v5367_v34 = vadd.f32 %v5366_v43, %v5348_v6 }
 0x290   :  { %v5385_v0 = vpop.f32.mrf.mxu1 }
 0x291   :  { %v5410_v44 = vrot.slane %v5402_v28, 3  ;;  %v5386_v56 = vadd.f32 %v5385_v0, %v5367_v34 }
 0x293   :  { %v5415_v31 = vsel %vm2457_vm2, %v5409_v12, %v5410_v44 }
 0x294   :  { %v12164_v13 = vadd.f32 %v5415_v31, %v12145_v49 }
 0x296   :  { %v5404_v3 = vpop.f32.mrf.mxu2  ;;  %v5368_v55 = vpop.f32.mrf.mxu0 }
 0x297   :  { %v5405_v57 = vadd.f32 %v5404_v3, %v5386_v56  ;;  %v5884_v53 = vpop.f32.mrf.mxu3  ;;  %v5369_v17 = vadd.f32 %v5368_v55, %v5350_v26 }
 0x298   :  { %v5387_v11 = vpop.f32.mrf.mxu1 }
 0x299   :  { %v5411_v5 = vrot.slane %v5405_v57, 3  ;;  %v5388_v25 = vadd.f32 %v5387_v11, %v5369_v17 }
 0x29b   :  { %v5414_v4 = vsel %vm2457_vm2, %v5410_v44, %v5411_v5 }
 0x29c   :  { %v5418_v45 = vadd.f32 %v5414_v4, %v12150_v33 }
 0x29e   :  { %v5406_v18 = vpop.f32.mrf.mxu2  ;;  %v5898_v60 = vpop.f32.mrf.mxu0 }
 0x29f   :  { %v5407_v24 = vadd.f32 %v5406_v18, %v5388_v25  ;;  %v5886_v35 = vpop.f32.mrf.mxu3  ;;  %v5899_v20 = vadd.f32 %v5898_v60, %v5879_v1  ;;  %v9950_v60 = vld [vmem:[%s12223_s2] ss:$0 sm:$0xff] }
 0x2a0   :  { %v5917_v49 = vpop.f32.mrf.mxu1 }
 0x2a1   :  { %v5412_v21 = vrot.slane %v5407_v24, 3  ;;  %v5918_v19 = vadd.f32 %v5917_v49, %v5899_v20 }
 0x2a3   :  { %v5413_v40 = vsel %vm2457_vm2, %v5411_v5, %v5412_v21  ;;  %v5416_v7 = vsel %vm2457_vm2, %v5412_v21, %v5409_v12 }
 0x2a4   :  { %v12174_v29 = vadd.f32 %v5413_v40, %v12157_v22  ;;  %v12177_v30 = vadd.f32 %v5416_v7, %v12159_v62 }
 0x2a6   :  { %v5936_v33 = vpop.f32.mrf.mxu2  ;;  %v5900_v15 = vpop.f32.mrf.mxu0 }
 0x2a7   :  { %v5955_v8 = vpop.f32.mrf.mxu3  ;;  %v5901_v22 = vadd.f32 %v5900_v15, %v5881_v61  ;;  %v5937_v48 = vadd.f32 %v5936_v33, %v5918_v19 }
 0x2a8   :  { %v5919_v9 = vpop.f32.mrf.mxu1 }
 0x2a9   :  { %v5920_v36 = vadd.f32 %v5919_v9, %v5901_v22  ;;  %v5956_v37 = vadd.f32 %v5955_v8, %v5937_v48 }
 0x2ae   :  { %v5938_v63 = vpop.f32.mrf.mxu2  ;;  %v5903_v59 = vpop.f32.mrf.mxu0 }
 0x2af   :  { %v5957_v16 = vpop.f32.mrf.mxu3  ;;  %v5904_v46 = vadd.f32 %v5903_v59, %v5884_v53  ;;  %v5939_v2 = vadd.f32 %v5938_v63, %v5920_v36 }
 0x2b0   :  { %v5922_v39 = vpop.f32.mrf.mxu1 }
 0x2b1   :  { %v5923_v62 = vadd.f32 %v5922_v39, %v5904_v46  ;;  %v5958_v43 = vadd.f32 %v5957_v16, %v5939_v2 }
 0x2b6   :  { %v5941_v14 = vpop.f32.mrf.mxu2  ;;  %v5905_v38 = vpop.f32.mrf.mxu0 }
 0x2b7   :  { %v5960_v6 = vpop.f32.mrf.mxu3  ;;  %v5942_v42 = vadd.f32 %v5941_v14, %v5923_v62  ;;  %v5906_v50 = vadd.f32 %v5905_v38, %v5886_v35 }
 0x2b8   :  { %v5924_v41 = vpop.f32.mrf.mxu1 }
 0x2b9   :  { %v5961_v28 = vadd.f32 %v5960_v6, %v5942_v42  ;;  %v5925_v1 = vadd.f32 %v5924_v41, %v5906_v50 }
 0x2be   :  { %v5943_v32 = vpop.f32.mrf.mxu2  ;;  %v5974_v51 = vpop.f32.mrf.mxu0 }
 0x2bf   :  { %v5962_v26 = vpop.f32.mrf.mxu3  ;;  %v5975_v58 = vadd.f32 %v5974_v51, %v5956_v37  ;;  %v5944_v56 = vadd.f32 %v5943_v32, %v5925_v1 }
 0x2c0   :  { %v5993_v23 = vpop.f32.mrf.mxu1 }
 0x2c1   :  { %v5994_v61 = vadd.f32 %v5993_v23, %v5975_v58  ;;  %v5963_v17 = vadd.f32 %v5962_v26, %v5944_v56 }
 0x2c3   :  { %v6003_v55 = vrot.slane %v5994_v61, 4 }
 0x2c6   :  { %v5979_v0 = vpop.f32.mrf.mxu2  ;;  %v5976_v34 = vpop.f32.mrf.mxu0 }
 0x2c7   :  { %v5980_v12 = vadd.f32 %v5979_v0, %v5961_v28  ;;  %v5998_v44 = vpop.f32.mrf.mxu3  ;;  %v5977_v31 = vadd.f32 %v5976_v34, %v5958_v43 }
 0x2c8   :  { %v5995_v57 = vpop.f32.mrf.mxu1 }
 0x2c9   :  { %v5999_v3 = vadd.f32 %v5998_v44, %v5980_v12  ;;  %v5996_v53 = vadd.f32 %v5995_v57, %v5977_v31 }
 0x2cb   :  { %v6005_v11 = vrot.slane %v5999_v3, 4  ;;  %v6004_v5 = vrot.slane %v5996_v53, 4 }
 0x2cd   :  { %v6008_v4 = vsel %vm3052_vm3, %v6004_v5, %v6005_v11  ;;  %v6009_v25 = vsel %vm3052_vm3, %v6003_v55, %v6004_v5 }
 0x2ce   :  { %v5981_v18 = vpop.f32.mrf.mxu2  ;;  %v6011_v24 = vadd.f32 %v6009_v25, %v12164_v13  ;;  %v6012_v35 = vadd.f32 %v6008_v4, %v5418_v45 }
 0x2cf   :  { %v5982_v49 = vadd.f32 %v5981_v18, %v5963_v17  ;;  %v6000_v21 = vpop.f32.mrf.mxu3 }
 0x2d0   :  { %v6015_v40 = vmax.f32 %v11711_v10, %v6011_v24  ;;  %v6016_v7 = vmax.f32 %v11744_v54, %v6012_v35 }
 0x2d1   :  { %v6001_v33 = vadd.f32 %v6000_v21, %v5982_v49 }
 0x2d2   :  { %v6023_v8 = vadd.f32 %v9950_v60, %v6015_v40  ;;  %v6024_v15 = vadd.f32 %v9950_v60, %v6016_v7 }
 0x2d3   :  { %v6006_v9 = vrot.slane %v6001_v33, 4 }
 0x2d4   :  { %v6027_v63 = vmax.f32 %v6023_v8, 0.0  ;;  %v6028_v16 = vmax.f32 %v6024_v15, 0.0 }
 0x2d5   :  { %v6007_v13 = vsel %vm3052_vm3, %v6005_v11, %v6006_v9  ;;  %v6010_v45 = vsel %vm3052_vm3, %v6006_v9, %v6003_v55 }
 0x2d6   :  { %v6013_v59 = vadd.f32 %v6007_v13, %v12174_v29  ;;  %v6014_v39 = vadd.f32 %v6010_v45, %v12177_v30  ;;  %v6031_v14 = vrot.slane %v6027_v63, 1  ;;  %v6032_v10 = vrot.slane %v6028_v16, 1 }
 0x2d8   :  { %v6017_v54 = vmax.f32 %v11774_v47, %v6013_v59  ;;  %v6018_v6 = vmax.f32 %v11777_v52, %v6014_v39  ;;  %v6037_v38 = vsel %vm802_vm0, %v6031_v14, %v6032_v10 }
 0x2d9   :  { %v6039_v20 = vmax.f32 %v6027_v63, %v6037_v38 }
 0x2da   :  { %v6025_v41 = vadd.f32 %v9950_v60, %v6017_v54  ;;  %v6026_v46 = vadd.f32 %v9950_v60, %v6018_v6 }
 0x2db   :  { %v6043_v19 = vpack.c.bf16 %v6039_v20, %v6039_v20 }
 0x2dc   :  { %v6029_v22 = vmax.f32 %v6025_v41, 0.0  ;;  %v6030_v48 = vmax.f32 %v6026_v46, 0.0 }
 0x2dd   :  { %6048 = vst.msk [vmem:[%s12224_s3] sm:$0xf] %vm6047_vm4, %v6043_v19 }
 0x2de   :  { %v6033_v29 = vrot.slane %v6029_v22, 1  ;;  %v6034_v30 = vrot.slane %v6030_v48, 1 }
 0x2e0   :  { %v6035_v47 = vsel %vm802_vm0, %v6033_v29, %v6034_v30  ;;  %v6036_v52 = vsel %vm802_vm0, %v6032_v10, %v6033_v29  ;;  %v6038_v32 = vsel %vm802_vm0, %v6034_v30, %v6031_v14 }
 0x2e1   :  { %v6040_v62 = vmax.f32 %v6028_v16, %v6036_v52  ;;  %v6041_v26 = vmax.f32 %v6029_v22, %v6035_v47  ;;  %v6042_v51 = vmax.f32 %v6030_v48, %v6038_v32 }
 0x2e3   :  { %v6044_v36 = vpack.c.bf16 %v6040_v62, %v6040_v62  ;;  %v6045_v23 = vpack.c.bf16 %v6041_v26, %v6041_v26  ;;  %v6046_v42 = vpack.c.bf16 %v6042_v51, %v6042_v51 }
 0x2e5   :  { %6049 = vst.msk [vmem:[%s12224_s3 + $0x4] sm:$0xf] %vm6047_vm4, %v6044_v36 }
 0x2e6   :  { %6050 = vst.msk [vmem:[%s12224_s3 + $0x8] sm:$0xf] %vm6047_vm4, %v6045_v23 }
 0x2e7   :  { %6051 = vst.msk [vmem:[%s12224_s3 + $0xc] sm:$0xf] %vm6047_vm4, %v6046_v42 }

</bundles_post_ra>
